<compile_context>
chip_gen: v7x
topology: tpu7x:2x2x1
jax: 0.10.0
libtpu: 0.0.40
codegen_flags: <defaults>
</compile_context>

<pallas_src>
import math

import numpy as np
import jax
import jax.numpy as jnp
from jax.experimental import pallas as pl
from jax.experimental.pallas import tpu as pltpu

# ----------------------------- scaled config ---------------------------------
B = 2                      # batch
IMG_HW = 16                # image spatial (orig 448 / 224)
IMG_FLAT = 3 * IMG_HW * IMG_HW      # 768 (coincides with EVA02-base feat dim)
VIS_DIM = 64               # visual / text embedding dim (orig 768)
KEYWORD_LEN = 192          # keyword padding length (as in module)
DIM = 64                   # llama hidden dim (orig 4096)
N_HEADS = 4
HEAD_DIM = DIM // N_HEADS
FFN_DIM = 128              # llama FFN hidden (scaled)
ADP_DIM = DIM - 12         # adapter out dim (orig 4084; 4084 + 6*2 = 4096)
VOCAB = 128                # vocab (orig 32000)
N_LAYERS = 4               # llama layers (orig 32)
QUERY_LAYER = 2            # adapter layers (orig 32)
PREFIX_LEN = 48            # keyword-prefix token length (as in module)
TOK_LEN = 8                # caption tokens per sample
MAX_SEQ = 128              # rope table length (orig 512)


def _fullspec(*shape):
    return pl.BlockSpec(shape, lambda i: (0,) * len(shape))


# ------------------------- fused front-end kernel ----------------------------
def _front_kernel(img_ref, kw_ref, wvis_ref, bvis_ref, wtxt_ref, btxt_ref,
                  wadp_ref, badp_ref, wabn_ref, babn_ref,
                  vis_ref, txt_ref, vfeat_ref, abn_ref):
    # vision stubs (EVA02 + CLIP weights pre-summed in the wrapper)
    vis = jax.lax.dot_general(
        img_ref[...].astype(jnp.bfloat16), wvis_ref[...],
        (((1,), (0,)), ((), ())), preferred_element_type=jnp.float32) + bvis_ref[...]
    # adapter_text + L2 normalize (F.normalize)
    txt = jax.lax.dot_general(
        kw_ref[...].astype(jnp.bfloat16), wtxt_ref[...],
        (((1,), (0,)), ((), ())), preferred_element_type=jnp.float32) + btxt_ref[...]
    sumsq = jnp.sum(txt * txt, axis=-1, keepdims=True)
    txt_n = txt * jax.lax.rsqrt(jnp.maximum(sumsq, 1e-24))        # EUP rsqrt
    # adapter -> abnormality heads (6 x 2, fused weight)
    vfeat = jax.lax.dot_general(
        vis.astype(jnp.bfloat16), wadp_ref[...],
        (((1,), (0,)), ((), ())), preferred_element_type=jnp.float32) + badp_ref[...]
    abn = jax.lax.dot_general(
        vfeat.astype(jnp.bfloat16), wabn_ref[...],
        (((1,), (0,)), ((), ())), preferred_element_type=jnp.float32) + babn_ref[...]
    vis_ref[...] = vis
    txt_ref[...] = txt_n
    vfeat_ref[...] = vfeat
    abn_ref[...] = abn


def front_end(params, imgs, keyword):
    Bz = imgs.shape[0]
    img_flat = imgs.reshape(Bz, -1).astype(jnp.float32)
    kw = keyword.astype(jnp.float32)
    # visual_feats = eva(img) + clip(img) with linear stubs -> sum the weights.
    w_vis = (params['w_eva'] + params['w_clip']).astype(jnp.bfloat16)
    b_vis = (params['b_eva'] + params['b_clip']).reshape(1, VIS_DIM)
    w_txt = params['adapter_text_w'].astype(jnp.bfloat16)
    b_txt = params['adapter_text_b'].reshape(1, VIS_DIM)
    w_adp = params['adapter_w'].astype(jnp.bfloat16)
    b_adp = params['adapter_b'].reshape(1, ADP_DIM)
    w_abn = params['abn_w'].astype(jnp.bfloat16)
    b_abn = params['abn_b'].reshape(1, 12)
    return pl.pallas_call(
        _front_kernel,
        out_shape=(jax.ShapeDtypeStruct((Bz, VIS_DIM), jnp.float32),
                   jax.ShapeDtypeStruct((Bz, VIS_DIM), jnp.float32),
                   jax.ShapeDtypeStruct((Bz, ADP_DIM), jnp.float32),
                   jax.ShapeDtypeStruct((Bz, 12), jnp.float32)),
        grid=(1,),
        in_specs=[_fullspec(Bz, IMG_FLAT), _fullspec(Bz, KEYWORD_LEN),
                  _fullspec(IMG_FLAT, VIS_DIM), _fullspec(1, VIS_DIM),
                  _fullspec(KEYWORD_LEN, VIS_DIM), _fullspec(1, VIS_DIM),
                  _fullspec(VIS_DIM, ADP_DIM), _fullspec(1, ADP_DIM),
                  _fullspec(ADP_DIM, 12), _fullspec(1, 12)],
        out_specs=(_fullspec(Bz, VIS_DIM), _fullspec(Bz, VIS_DIM),
                   _fullspec(Bz, ADP_DIM), _fullspec(Bz, 12)),
    )(img_flat, kw, w_vis, b_vis, w_txt, b_txt, w_adp, b_adp, w_abn, b_abn)


# ------------------------- fused LLaMA block kernel ---------------------------
def _block_kernel(x_ref, adp_ref, cos_ref, sin_ref, an_ref, wqkv_ref, wo_ref,
                  gate_ref, fn_ref, w13_ref, w2_ref, o_ref):
    _, S, D = x_ref.shape
    H = N_HEADS
    hd = D // H
    F = w2_ref.shape[0]

    x = x_ref[0].astype(jnp.float32)                                   # (S, D)

    # ---- attention RMSNorm (fused prologue) ----
    ms = jnp.mean(x * x, axis=-1, keepdims=True)
    xn = x * jax.lax.rsqrt(ms + 1e-5) * an_ref[...]

    # ---- fused QKV projection (bf16 in, f32 acc) ----
    qkv = jax.lax.dot_general(
        xn.astype(jnp.bfloat16), wqkv_ref[...],
        (((1,), (0,)), ((), ())), preferred_element_type=jnp.float32)  # (S, 3D)

    # ---- RoPE on the lane-dense [q|k] slab: interleaved pair rotation ----
    qk = qkv[:, :2 * D]                                                # (S, 2D)
    col = jax.lax.broadcasted_iota(jnp.int32, qk.shape, 1)
    swapped = jnp.where((col & 1) == 0,
                        pltpu.roll(qk, shift=2 * D - 1, axis=1),       # x[2i+1]
                        pltpu.roll(qk, shift=1, axis=1))               # x[2i]
    qk = qk * cos_ref[...] + swapped * sin_ref[...]
    q = qk[:, :D]
    k = qk[:, D:]
    v = qkv[:, 2 * D:]

    # ---- causal mask built in-register ----
    rows = jax.lax.broadcasted_iota(jnp.int32, (S, S), 0)
    cols = jax.lax.broadcasted_iota(jnp.int32, (S, S), 1)
    mask = jnp.where(cols > rows, jnp.float32(-1e30), jnp.float32(0.0))

    # ---- gated visual-adapter value (gate is exactly 0 on non-adapter layers) ----
    # TODO(synk): external Transformer impl not given; LLaMA-Adapter v1 gated
    # injection used (softmax over a single adapter token is identically 1).
    av = jax.lax.dot_general(
        adp_ref[0].astype(jnp.bfloat16), wqkv_ref[:, 2 * D:],
        (((1,), (0,)), ((), ())), preferred_element_type=jnp.float32)  # (1, D)

    wo = wo_ref[...]                                                   # (D, D) bf16
    ctx = jax.lax.dot_general(
        (gate_ref[...] * av).astype(jnp.bfloat16), wo,
        (((1,), (0,)), ((), ())), preferred_element_type=jnp.float32)  # (1, D)

    scale = 1.0 / math.sqrt(hd)
    for hh in range(H):
        sl = slice(hh * hd, (hh + 1) * hd)
        qh = q[:, sl].astype(jnp.bfloat16)
        kh = k[:, sl].astype(jnp.bfloat16)
        vh = v[:, sl].astype(jnp.bfloat16)
        s = jax.lax.dot_general(qh, kh, (((1,), (1,)), ((), ())),
                                preferred_element_type=jnp.float32) * scale + mask
        s = s - jnp.max(s, axis=-1, keepdims=True)
        p = jnp.exp(s)
        p = p * pl.reciprocal(jnp.sum(p, axis=-1, keepdims=True), approx=True)
        oh = jax.lax.dot_general(p.astype(jnp.bfloat16), vh, (((1,), (0,)), ((), ())),
                                 preferred_element_type=jnp.float32)   # (S, hd)
        # accumulate head output through the matching rows of wo (== concat @ wo)
        ctx = ctx + jax.lax.dot_general(oh.astype(jnp.bfloat16), wo[sl, :],
                                        (((1,), (0,)), ((), ())),
                                        preferred_element_type=jnp.float32)

    h1 = x + ctx

    # ---- FFN RMSNorm prologue + SwiGLU (fused w1|w3) ----
    ms2 = jnp.mean(h1 * h1, axis=-1, keepdims=True)
    xn2 = h1 * jax.lax.rsqrt(ms2 + 1e-5) * fn_ref[...]
    gu = jax.lax.dot_general(xn2.astype(jnp.bfloat16), w13_ref[...],
                             (((1,), (0,)), ((), ())),
                             preferred_element_type=jnp.float32)       # (S, 2F)
    g = gu[:, :F]
    u = gu[:, F:]
    f = jax.nn.silu(g) * u
    ffn = jax.lax.dot_general(f.astype(jnp.bfloat16), w2_ref[...],
                              (((1,), (0,)), ((), ())),
                              preferred_element_type=jnp.float32)      # (S, D)
    o_ref[0] = (h1 + ffn).astype(o_ref.dtype)


def llama_block_fused(h, lx, cos, sin):
    Bh, S, D = h.shape
    return pl.pallas_call(
        _block_kernel,
        out_shape=jax.ShapeDtypeStruct((Bh, S, D), jnp.float32),
        grid=(Bh,),
        in_specs=[
            pl.BlockSpec((1, S, D), lambda b: (b, 0, 0)),              # h
            pl.BlockSpec((1, 1, D), lambda b: (b, 0, 0)),              # adapter token
            pl.BlockSpec((S, 2 * D), lambda b: (0, 0)),                # rope cos
            pl.BlockSpec((S, 2 * D), lambda b: (0, 0)),                # rope sin
            pl.BlockSpec((1, D), lambda b: (0, 0)),                    # attn_norm
            pl.BlockSpec((D, 3 * D), lambda b: (0, 0)),                # wqkv (bf16)
            pl.BlockSpec((D, D), lambda b: (0, 0)),                    # wo   (bf16)
            pl.BlockSpec((1, D), lambda b: (0, 0)),                    # tanh(gate) row
            pl.BlockSpec((1, D), lambda b: (0, 0)),                    # ffn_norm
            pl.BlockSpec((D, 2 * FFN_DIM), lambda b: (0, 0)),          # w1|w3 (bf16)
            pl.BlockSpec((FFN_DIM, D), lambda b: (0, 0)),              # w2    (bf16)
        ],
        out_specs=pl.BlockSpec((1, S, D), lambda b: (b, 0, 0)),
        compiler_params=pltpu.CompilerParams(dimension_semantics=("parallel",)),
    )(h, lx['adapter'], cos, sin, lx['attn_norm'], lx['wqkv'], lx['wo'],
      lx['gate_row'], lx['ffn_norm'], lx['w13'], lx['w2'])


# ------------------------- final norm + output head ---------------------------
def _head_kernel(h_ref, nw_ref, w_ref, o_ref):
    x = h_ref[...].astype(jnp.float32)
    ms = jnp.mean(x * x, axis=-1, keepdims=True)
    xn = x * jax.lax.rsqrt(ms + 1e-5) * nw_ref[...]
    o_ref[...] = jax.lax.dot_general(xn.astype(jnp.bfloat16), w_ref[...],
                                     (((1,), (0,)), ((), ())),
                                     preferred_element_type=jnp.float32)


def head_logits(params, h):
    M, D = h.shape
    return pl.pallas_call(
        _head_kernel,
        out_shape=jax.ShapeDtypeStruct((M, VOCAB), jnp.float32),
        grid=(1,),
        in_specs=[_fullspec(M, D), _fullspec(1, D), _fullspec(D, VOCAB)],
        out_specs=_fullspec(M, VOCAB),
    )(h, params['norm_w'].reshape(1, D), params['out_w'].astype(jnp.bfloat16))


# ----------------------------- small XLA helpers ------------------------------
def softmax_ce(logits, labels):
    logits = logits.astype(jnp.float32)
    lse = jax.nn.logsumexp(logits, axis=-1)
    picked = jnp.take_along_axis(logits, labels.astype(jnp.int32)[:, None], axis=-1)[:, 0]
    return lse - picked


# ----------------------------- forward pass ----------------------------------
def forward(params, tokens, labels, imgs, cls_label, keyword, target):
    Bz = imgs.shape[0]

    # ---- fused vision / text / adapter / abnormality front end (one kernel) ----
    # TODO(synk): timm EVA02-base, open_clip ViT-L/14 and the 224 Resize are external
    # pretrained models with no Pallas equivalent; deterministic linear stubs used.
    visual_feats, text_feats, vfeat, abn = front_end(params, imgs, keyword)

    # ---- CLIP-style contrastive loss (tiny (B,B) math: keep in XLA) ----
    scale = jnp.exp(jnp.clip(params['logit_scale'], 0.0, 4.6052))
    logits_per_text = (text_feats @ visual_feats.T) * scale            # (B, B)
    clip_loss = 0.5 * (jnp.mean(softmax_ce(logits_per_text, target))
                       + jnp.mean(softmax_ce(logits_per_text.T, target)))

    # ---- abnormality classification losses (tiny (B,2) CEs: keep in XLA) ----
    cls_loss = jnp.float32(0.0)
    for i in range(6):
        cls_loss = cls_loss + jnp.mean(softmax_ce(abn[:, 2 * i:2 * i + 2], cls_label[i]))

    vfeat_cat = jnp.concatenate([vfeat, abn], axis=1)                  # (B, DIM)
    vfeat_bf16 = vfeat_cat.astype(jnp.bfloat16)

    # ---- keyword-prefix token construction (string tokenizer replaced) ----
    preds = jnp.stack([jnp.argmax(abn[:, 2 * i:2 * i + 2], axis=-1)
                       for i in range(6)], axis=1)                     # (B, 6)
    num_pos = jnp.sum(preds > 0, axis=1)
    # TODO(synk): SentencePiece tokenization of KEYWORD_DICT strings cannot run on
    # TPU; deterministic token-count proxy (prefix rows are 1s then 0-padding,
    # matching the .ge(0)->long semantics of the original code).
    lengths = jnp.minimum(jnp.where(num_pos > 0, 1 + 6 * num_pos, 5), PREFIX_LEN)
    prefix = (jnp.arange(PREFIX_LEN)[None, :] < lengths[:, None]).astype(jnp.float32)
    rand_row = jax.random.uniform(jax.random.PRNGKey(1), (1, PREFIX_LEN), jnp.float32)
    # reproduces Keyword_temp = cat(rand, prefixes)[0:-1].long()
    keyword_temp = jnp.concatenate([rand_row, prefix], axis=0)[:-1].astype(jnp.int32)
    labels_prefix = jnp.zeros((Bz, PREFIX_LEN), jnp.int32)
    tokens_full = jnp.concatenate([keyword_temp, tokens.astype(jnp.int32)], axis=1)
    labels_full = jnp.concatenate([labels_prefix, labels.astype(jnp.int32)], axis=1)

    # ---- LLaMA (scan over one fused per-layer kernel) ----
    S = tokens_full.shape[1]
    h = jnp.take(params['tok_emb'], tokens_full, axis=0)               # (B, S, DIM)
    cos = params['rope_cos'][:S]
    sin = params['rope_sin'][:S]

    # per-layer adapter tokens & per-head gates (zero gate on non-adapter layers)
    gate_row = jnp.repeat(jnp.tanh(params['gate']), HEAD_DIM, axis=-1)[:, None, :]  # (L,1,D)
    adp_tail = (vfeat_bf16.astype(jnp.float32)[None, :, None, :]
                + params['prefix_query'][:, None, None, :])            # (Q, B, 1, D)
    adapters = jnp.concatenate(
        [jnp.zeros((N_LAYERS - QUERY_LAYER, Bz, 1, DIM), jnp.float32), adp_tail], axis=0)

    layer_xs = {
        'attn_norm': params['attn_norm'],
        'ffn_norm': params['ffn_norm'],
        'wqkv': params['wqkv'].astype(jnp.bfloat16),
        'wo': params['wo'].astype(jnp.bfloat16),
        'w13': params['w13'].astype(jnp.bfloat16),
        'w2': params['w2'].astype(jnp.bfloat16),
        'gate_row': gate_row,
        'adapter': adapters,
    }

    def body(hc, lx):
        return llama_block_fused(hc, lx, cos, sin), None

    h, _ = jax.lax.scan(body, h, layer_xs)

    # ---- output head + caption CE (ignore_index=0) ----
    logits = head_logits(params, h.reshape(Bz * S, DIM)).reshape(Bz, S, VOCAB)
    logits = logits[:, :-1, :]
    lab = labels_full[:, 1:]
    nll = softmax_ce(logits.reshape(-1, VOCAB), lab.reshape(-1))
    msk = (lab.reshape(-1) != 0).astype(jnp.float32)
    ce = jnp.sum(nll * msk) / jnp.maximum(jnp.sum(msk), 1.0)
    c_loss = jnp.where(jnp.sum(lab) == 0, jnp.mean(logits) * 0.0, ce)
    return c_loss, cls_loss, clip_loss


# ----------------------------- parameter init --------------------------------
def init_params(key):
    ks = iter(jax.random.split(key, 32))

    def nrm(shape, scale=0.02):
        return scale * jax.random.normal(next(ks), shape, jnp.float32)

    p = {
        'logit_scale': jnp.log(jnp.float32(1.0 / 0.07)),
        'w_eva': nrm((IMG_FLAT, VIS_DIM)), 'b_eva': jnp.zeros((VIS_DIM,), jnp.float32),
        'w_clip': nrm((IMG_FLAT, VIS_DIM)), 'b_clip': jnp.zeros((VIS_DIM,), jnp.float32),
        'adapter_w': nrm((VIS_DIM, ADP_DIM)), 'adapter_b': nrm((ADP_DIM,), 0.01),
        'adapter_text_w': nrm((KEYWORD_LEN, VIS_DIM)),
        'adapter_text_b': nrm((VIS_DIM,), 0.01),
        'abn_w': nrm((ADP_DIM, 12)), 'abn_b': nrm((12,), 0.01),   # 6 heads x 2, fused
        'tok_emb': nrm((VOCAB, DIM)),
        'prefix_query': nrm((QUERY_LAYER, DIM)),
        'out_w': nrm((DIM, VOCAB)),
        'norm_w': jnp.ones((DIM,), jnp.float32),
        # stacked llama layers (scan-friendly); wq|wk|wv and w1|w3 pre-fused
        'wqkv': nrm((N_LAYERS, DIM, 3 * DIM)),
        'wo': nrm((N_LAYERS, DIM, DIM)),
        'w13': nrm((N_LAYERS, DIM, 2 * FFN_DIM)),
        'w2': nrm((N_LAYERS, FFN_DIM, DIM)),
        'attn_norm': jnp.ones((N_LAYERS, 1, DIM), jnp.float32),
        'ffn_norm': jnp.ones((N_LAYERS, 1, DIM), jnp.float32),
        # original adapter gate is zero-init; small non-zero on adapter layers to
        # exercise the path, exact zero (=> no-op) on the non-adapter layers.
        'gate': jnp.concatenate(
            [jnp.zeros((N_LAYERS - QUERY_LAYER, N_HEADS), jnp.float32),
             jnp.full((QUERY_LAYER, N_HEADS), 0.1, jnp.float32)], axis=0),
    }

    # RoPE tables (like precompute_freqs_cis), laid out for the [q|k] slab:
    # width 2*DIM = 128 lanes, interleaved (even,odd) pairs per head.
    freqs = 1.0 / (10000.0 ** (np.arange(0, HEAD_DIM, 2)[: HEAD_DIM // 2] / HEAD_DIM))
    ang = np.outer(np.arange(MAX_SEQ), freqs)                       # (MAX_SEQ, hd/2)
    cos_pair = np.repeat(np.cos(ang), 2, axis=1)                    # c0 c0 c1 c1 ...
    sin_pair = np.stack([-np.sin(ang), np.sin(ang)], axis=-1).reshape(MAX_SEQ, HEAD_DIM)
    p['rope_cos'] = jnp.asarray(np.tile(cos_pair, (1, 2 * N_HEADS)), jnp.float32)
    p['rope_sin'] = jnp.asarray(np.tile(sin_pair, (1, 2 * N_HEADS)), jnp.float32)
    return p


# ----------------------------- main -------------------------------------------
if __name__ == "__main__":
    key = jax.random.PRNGKey(0)
    kp, k1, k2, k3, k4, k5 = jax.random.split(key, 6)
    params = init_params(kp)

    imgs = jax.random.normal(k1, (B, 3, IMG_HW, IMG_HW), jnp.float32)   # NCHW
    tokens = jax.random.randint(k2, (B, TOK_LEN), 1, VOCAB).astype(jnp.int32)
    labels = jax.random.randint(k3, (B, TOK_LEN), 1, VOCAB).astype(jnp.int32)
    cls_label = jax.random.randint(k4, (6, B), 0, 2).astype(jnp.int32)
    keyword = jax.random.randint(k5, (B, KEYWORD_LEN), 1, 100).astype(jnp.float32)
    target = jnp.arange(B, dtype=jnp.int32)

    fwd = jax.jit(forward)
    c_loss, cls_loss, clip_loss = fwd(params, tokens, labels, imgs,
                                      cls_label, keyword, target)
    jax.block_until_ready((c_loss, cls_loss, clip_loss))
    print("KERNEL_OK")
</pallas_src>

<mosaic_0001>
module attributes {stable_mosaic.version = 11 : i64} {
  func.func @_front_kernel(%arg0: i32, %arg1: memref<2x768xf32, #tpu.memory_space<vmem>>, %arg2: memref<2x192xf32, #tpu.memory_space<vmem>>, %arg3: memref<768x64xbf16, #tpu.memory_space<vmem>>, %arg4: memref<1x64xf32, #tpu.memory_space<vmem>>, %arg5: memref<192x64xbf16, #tpu.memory_space<vmem>>, %arg6: memref<1x64xf32, #tpu.memory_space<vmem>>, %arg7: memref<64x52xbf16, #tpu.memory_space<vmem>>, %arg8: memref<1x52xf32, #tpu.memory_space<vmem>>, %arg9: memref<52x12xbf16, #tpu.memory_space<vmem>>, %arg10: memref<1x12xf32, #tpu.memory_space<vmem>>, %arg11: memref<2x64xf32, #tpu.memory_space<vmem>>, %arg12: memref<2x64xf32, #tpu.memory_space<vmem>>, %arg13: memref<2x52xf32, #tpu.memory_space<vmem>>, %arg14: memref<2x12xf32, #tpu.memory_space<vmem>>) attributes {dimension_semantics = [#tpu.dimension_semantics<arbitrary>], iteration_bounds = array<i64: 1>, scalar_prefetch = 0 : i64, scratch_operands = 0 : i64, tpu.core_type = #tpu.core_type<tc>, window_params = [{pipeline_mode = #tpu.pipeline_mode<synchronous>, transform_indices = @transform_0, window_bounds = array<i64: 2, 768>}, {pipeline_mode = #tpu.pipeline_mode<synchronous>, transform_indices = @transform_1, window_bounds = array<i64: 2, 192>}, {pipeline_mode = #tpu.pipeline_mode<synchronous>, transform_indices = @transform_2, window_bounds = array<i64: 768, 64>}, {pipeline_mode = #tpu.pipeline_mode<synchronous>, transform_indices = @transform_3, window_bounds = array<i64: 1, 64>}, {pipeline_mode = #tpu.pipeline_mode<synchronous>, transform_indices = @transform_4, window_bounds = array<i64: 192, 64>}, {pipeline_mode = #tpu.pipeline_mode<synchronous>, transform_indices = @transform_5, window_bounds = array<i64: 1, 64>}, {pipeline_mode = #tpu.pipeline_mode<synchronous>, transform_indices = @transform_6, window_bounds = array<i64: 64, 52>}, {pipeline_mode = #tpu.pipeline_mode<synchronous>, transform_indices = @transform_7, window_bounds = array<i64: 1, 52>}, {pipeline_mode = #tpu.pipeline_mode<synchronous>, transform_indices = @transform_8, window_bounds = array<i64: 52, 12>}, {pipeline_mode = #tpu.pipeline_mode<synchronous>, transform_indices = @transform_9, window_bounds = array<i64: 1, 12>}, {pipeline_mode = #tpu.pipeline_mode<synchronous>, transform_indices = @transform_10, window_bounds = array<i64: 2, 64>}, {pipeline_mode = #tpu.pipeline_mode<synchronous>, transform_indices = @transform_11, window_bounds = array<i64: 2, 64>}, {pipeline_mode = #tpu.pipeline_mode<synchronous>, transform_indices = @transform_12, window_bounds = array<i64: 2, 52>}, {pipeline_mode = #tpu.pipeline_mode<synchronous>, transform_indices = @transform_13, window_bounds = array<i64: 2, 12>}]} {
    %c0 = arith.constant 0 : index
    %c0_0 = arith.constant 0 : index
    %0 = vector.load %arg1[%c0, %c0_0] : memref<2x768xf32, #tpu.memory_space<vmem>>, vector<2x768xf32>
    %1 = arith.truncf %0 : vector<2x768xf32> to vector<2x768xbf16>
    %c0_1 = arith.constant 0 : index
    %c0_2 = arith.constant 0 : index
    %2 = vector.load %arg3[%c0_1, %c0_2] : memref<768x64xbf16, #tpu.memory_space<vmem>>, vector<768x64xbf16>
    %cst = arith.constant dense<0.000000e+00> : vector<2x64xf32>
    %3 = tpu.matmul %1, %2, %cst {dimension_numbers = #tpu.dot_dimension_numbers<[1], [0], [0], [1], [0, 0, 1, 1], [], []>} : vector<2x768xbf16>, vector<768x64xbf16>, vector<2x64xf32> -> vector<2x64xf32>
    %c0_3 = arith.constant 0 : index
    %c0_4 = arith.constant 0 : index
    %4 = vector.load %arg4[%c0_3, %c0_4] : memref<1x64xf32, #tpu.memory_space<vmem>>, vector<1x64xf32>
    %5 = vector.broadcast %4 : vector<1x64xf32> to vector<2x64xf32>
    %6 = arith.addf %3, %5 : vector<2x64xf32>
    %c0_5 = arith.constant 0 : index
    %c0_6 = arith.constant 0 : index
    %7 = vector.load %arg2[%c0_5, %c0_6] : memref<2x192xf32, #tpu.memory_space<vmem>>, vector<2x192xf32>
    %8 = arith.truncf %7 : vector<2x192xf32> to vector<2x192xbf16>
    %c0_7 = arith.constant 0 : index
    %c0_8 = arith.constant 0 : index
    %9 = vector.load %arg5[%c0_7, %c0_8] : memref<192x64xbf16, #tpu.memory_space<vmem>>, vector<192x64xbf16>
    %cst_9 = arith.constant dense<0.000000e+00> : vector<2x64xf32>
    %10 = tpu.matmul %8, %9, %cst_9 {dimension_numbers = #tpu.dot_dimension_numbers<[1], [0], [0], [1], [0, 0, 1, 1], [], []>} : vector<2x192xbf16>, vector<192x64xbf16>, vector<2x64xf32> -> vector<2x64xf32>
    %c0_10 = arith.constant 0 : index
    %c0_11 = arith.constant 0 : index
    %11 = vector.load %arg6[%c0_10, %c0_11] : memref<1x64xf32, #tpu.memory_space<vmem>>, vector<1x64xf32>
    %12 = vector.broadcast %11 : vector<1x64xf32> to vector<2x64xf32>
    %13 = arith.addf %10, %12 : vector<2x64xf32>
    %14 = arith.mulf %13, %13 : vector<2x64xf32>
    %cst_12 = arith.constant dense<0.000000e+00> : vector<2xf32>
    %15 = vector.multi_reduction <add>, %14, %cst_12 [1] : vector<2x64xf32> to vector<2xf32>
    %16 = vector.shape_cast %15 : vector<2xf32> to vector<2x1xf32>
    %cst_13 = arith.constant 1.000000e-24 : f32
    %17 = vector.broadcast %cst_13 : f32 to vector<2x1xf32>
    %18 = arith.maximumf %16, %17 : vector<2x1xf32>
    %19 = math.rsqrt %18 : vector<2x1xf32>
    %20 = vector.broadcast %19 : vector<2x1xf32> to vector<2x64xf32>
    %21 = arith.mulf %13, %20 : vector<2x64xf32>
    %22 = arith.truncf %6 : vector<2x64xf32> to vector<2x64xbf16>
    %c0_14 = arith.constant 0 : index
    %c0_15 = arith.constant 0 : index
    %23 = vector.load %arg7[%c0_14, %c0_15] : memref<64x52xbf16, #tpu.memory_space<vmem>>, vector<64x52xbf16>
    %cst_16 = arith.constant dense<0.000000e+00> : vector<2x52xf32>
    %24 = tpu.matmul %22, %23, %cst_16 {dimension_numbers = #tpu.dot_dimension_numbers<[1], [0], [0], [1], [0, 0, 1, 1], [], []>} : vector<2x64xbf16>, vector<64x52xbf16>, vector<2x52xf32> -> vector<2x52xf32>
    %c0_17 = arith.constant 0 : index
    %c0_18 = arith.constant 0 : index
    %25 = vector.load %arg8[%c0_17, %c0_18] : memref<1x52xf32, #tpu.memory_space<vmem>>, vector<1x52xf32>
    %26 = vector.broadcast %25 : vector<1x52xf32> to vector<2x52xf32>
    %27 = arith.addf %24, %26 : vector<2x52xf32>
    %28 = arith.truncf %27 : vector<2x52xf32> to vector<2x52xbf16>
    %c0_19 = arith.constant 0 : index
    %c0_20 = arith.constant 0 : index
    %29 = vector.load %arg9[%c0_19, %c0_20] : memref<52x12xbf16, #tpu.memory_space<vmem>>, vector<52x12xbf16>
    %cst_21 = arith.constant dense<0.000000e+00> : vector<2x12xf32>
    %30 = tpu.matmul %28, %29, %cst_21 {dimension_numbers = #tpu.dot_dimension_numbers<[1], [0], [0], [1], [0, 0, 1, 1], [], []>} : vector<2x52xbf16>, vector<52x12xbf16>, vector<2x12xf32> -> vector<2x12xf32>
    %c0_22 = arith.constant 0 : index
    %c0_23 = arith.constant 0 : index
    %31 = vector.load %arg10[%c0_22, %c0_23] : memref<1x12xf32, #tpu.memory_space<vmem>>, vector<1x12xf32>
    %32 = vector.broadcast %31 : vector<1x12xf32> to vector<2x12xf32>
    %33 = arith.addf %30, %32 : vector<2x12xf32>
    %c0_24 = arith.constant 0 : index
    %c0_25 = arith.constant 0 : index
    %34 = vector.load %arg11[%c0_24, %c0_25] : memref<2x64xf32, #tpu.memory_space<vmem>>, vector<2x64xf32>
    tpu.vector_store %arg11[%c0_24, %c0_25], %6 {strides = array<i32>} : memref<2x64xf32, #tpu.memory_space<vmem>>, vector<2x64xf32>,
    %c0_26 = arith.constant 0 : index
    %c0_27 = arith.constant 0 : index
    %35 = vector.load %arg12[%c0_26, %c0_27] : memref<2x64xf32, #tpu.memory_space<vmem>>, vector<2x64xf32>
    tpu.vector_store %arg12[%c0_26, %c0_27], %21 {strides = array<i32>} : memref<2x64xf32, #tpu.memory_space<vmem>>, vector<2x64xf32>,
    %c0_28 = arith.constant 0 : index
    %c0_29 = arith.constant 0 : index
    %36 = vector.load %arg13[%c0_28, %c0_29] : memref<2x52xf32, #tpu.memory_space<vmem>>, vector<2x52xf32>
    tpu.vector_store %arg13[%c0_28, %c0_29], %27 {strides = array<i32>} : memref<2x52xf32, #tpu.memory_space<vmem>>, vector<2x52xf32>,
    %c0_30 = arith.constant 0 : index
    %c0_31 = arith.constant 0 : index
    %37 = vector.load %arg14[%c0_30, %c0_31] : memref<2x12xf32, #tpu.memory_space<vmem>>, vector<2x12xf32>
    tpu.vector_store %arg14[%c0_30, %c0_31], %33 {strides = array<i32>} : memref<2x12xf32, #tpu.memory_space<vmem>>, vector<2x12xf32>,
    return
  }
  func.func @transform_0(%arg0: i32) -> (i32, i32) {
    %c0_i32 = arith.constant 0 : i32
    %c0_i32_0 = arith.constant 0 : i32
    %c0_i32_1 = arith.constant 0 : i32
    return %c0_i32, %c0_i32_0 : i32, i32
  }
  func.func @transform_1(%arg0: i32) -> (i32, i32) {
    %c0_i32 = arith.constant 0 : i32
    %c0_i32_0 = arith.constant 0 : i32
    %c0_i32_1 = arith.constant 0 : i32
    return %c0_i32, %c0_i32_0 : i32, i32
  }
  func.func @transform_2(%arg0: i32) -> (i32, i32) {
    %c0_i32 = arith.constant 0 : i32
    %c0_i32_0 = arith.constant 0 : i32
    %c0_i32_1 = arith.constant 0 : i32
    return %c0_i32, %c0_i32_0 : i32, i32
  }
  func.func @transform_3(%arg0: i32) -> (i32, i32) {
    %c0_i32 = arith.constant 0 : i32
    %c0_i32_0 = arith.constant 0 : i32
    %c0_i32_1 = arith.constant 0 : i32
    return %c0_i32, %c0_i32_0 : i32, i32
  }
  func.func @transform_4(%arg0: i32) -> (i32, i32) {
    %c0_i32 = arith.constant 0 : i32
    %c0_i32_0 = arith.constant 0 : i32
    %c0_i32_1 = arith.constant 0 : i32
    return %c0_i32, %c0_i32_0 : i32, i32
  }
  func.func @transform_5(%arg0: i32) -> (i32, i32) {
    %c0_i32 = arith.constant 0 : i32
    %c0_i32_0 = arith.constant 0 : i32
    %c0_i32_1 = arith.constant 0 : i32
    return %c0_i32, %c0_i32_0 : i32, i32
  }
  func.func @transform_6(%arg0: i32) -> (i32, i32) {
    %c0_i32 = arith.constant 0 : i32
    %c0_i32_0 = arith.constant 0 : i32
    %c0_i32_1 = arith.constant 0 : i32
    return %c0_i32, %c0_i32_0 : i32, i32
  }
  func.func @transform_7(%arg0: i32) -> (i32, i32) {
    %c0_i32 = arith.constant 0 : i32
    %c0_i32_0 = arith.constant 0 : i32
    %c0_i32_1 = arith.constant 0 : i32
    return %c0_i32, %c0_i32_0 : i32, i32
  }
  func.func @transform_8(%arg0: i32) -> (i32, i32) {
    %c0_i32 = arith.constant 0 : i32
    %c0_i32_0 = arith.constant 0 : i32
    %c0_i32_1 = arith.constant 0 : i32
    return %c0_i32, %c0_i32_0 : i32, i32
  }
  func.func @transform_9(%arg0: i32) -> (i32, i32) {
    %c0_i32 = arith.constant 0 : i32
    %c0_i32_0 = arith.constant 0 : i32
    %c0_i32_1 = arith.constant 0 : i32
    return %c0_i32, %c0_i32_0 : i32, i32
  }
  func.func @transform_10(%arg0: i32) -> (i32, i32) {
    %c0_i32 = arith.constant 0 : i32
    %c0_i32_0 = arith.constant 0 : i32
    %c0_i32_1 = arith.constant 0 : i32
    return %c0_i32, %c0_i32_0 : i32, i32
  }
  func.func @transform_11(%arg0: i32) -> (i32, i32) {
    %c0_i32 = arith.constant 0 : i32
    %c0_i32_0 = arith.constant 0 : i32
    %c0_i32_1 = arith.constant 0 : i32
    return %c0_i32, %c0_i32_0 : i32, i32
  }
  func.func @transform_12(%arg0: i32) -> (i32, i32) {
    %c0_i32 = arith.constant 0 : i32
    %c0_i32_0 = arith.constant 0 : i32
    %c0_i32_1 = arith.constant 0 : i32
    return %c0_i32, %c0_i32_0 : i32, i32
  }
  func.func @transform_13(%arg0: i32) -> (i32, i32) {
    %c0_i32 = arith.constant 0 : i32
    %c0_i32_0 = arith.constant 0 : i32
    %c0_i32_1 = arith.constant 0 : i32
    return %c0_i32, %c0_i32_0 : i32, i32
  }
}

module attributes {stable_mosaic.version = 11 : i64} {
  func.func @_head_kernel(%arg0: i32, %arg1: memref<112x64xf32, #tpu.memory_space<vmem>>, %arg2: memref<1x64xf32, #tpu.memory_space<vmem>>, %arg3: memref<64x128xbf16, #tpu.memory_space<vmem>>, %arg4: memref<112x128xf32, #tpu.memory_space<vmem>>) attributes {dimension_semantics = [#tpu.dimension_semantics<arbitrary>], iteration_bounds = array<i64: 1>, scalar_prefetch = 0 : i64, scratch_operands = 0 : i64, tpu.core_type = #tpu.core_type<tc>, window_params = [{pipeline_mode = #tpu.pipeline_mode<synchronous>, transform_indices = @transform_0, window_bounds = array<i64: 112, 64>}, {pipeline_mode = #tpu.pipeline_mode<synchronous>, transform_indices = @transform_1, window_bounds = array<i64: 1, 64>}, {pipeline_mode = #tpu.pipeline_mode<synchronous>, transform_indices = @transform_2, window_bounds = array<i64: 64, 128>}, {pipeline_mode = #tpu.pipeline_mode<synchronous>, transform_indices = @transform_3, window_bounds = array<i64: 112, 128>}]} {
    %c0 = arith.constant 0 : index
    %c0_0 = arith.constant 0 : index
    %0 = vector.load %arg1[%c0, %c0_0] : memref<112x64xf32, #tpu.memory_space<vmem>>, vector<112x64xf32>
    %1 = arith.mulf %0, %0 : vector<112x64xf32>
    %cst = arith.constant dense<0.000000e+00> : vector<112xf32>
    %2 = vector.multi_reduction <add>, %1, %cst [1] : vector<112x64xf32> to vector<112xf32>
    %3 = vector.shape_cast %2 : vector<112xf32> to vector<112x1xf32>
    %cst_1 = arith.constant 6.400000e+01 : f32
    %4 = vector.broadcast %cst_1 : f32 to vector<112x1xf32>
    %5 = arith.divf %3, %4 : vector<112x1xf32>
    %cst_2 = arith.constant 9.99999974E-6 : f32
    %6 = vector.broadcast %cst_2 : f32 to vector<112x1xf32>
    %7 = arith.addf %5, %6 : vector<112x1xf32>
    %8 = math.rsqrt %7 : vector<112x1xf32>
    %9 = vector.broadcast %8 : vector<112x1xf32> to vector<112x64xf32>
    %10 = arith.mulf %0, %9 : vector<112x64xf32>
    %c0_3 = arith.constant 0 : index
    %c0_4 = arith.constant 0 : index
    %11 = vector.load %arg2[%c0_3, %c0_4] : memref<1x64xf32, #tpu.memory_space<vmem>>, vector<1x64xf32>
    %12 = vector.broadcast %11 : vector<1x64xf32> to vector<112x64xf32>
    %13 = arith.mulf %10, %12 : vector<112x64xf32>
    %14 = arith.truncf %13 : vector<112x64xf32> to vector<112x64xbf16>
    %c0_5 = arith.constant 0 : index
    %c0_6 = arith.constant 0 : index
    %15 = vector.load %arg3[%c0_5, %c0_6] : memref<64x128xbf16, #tpu.memory_space<vmem>>, vector<64x128xbf16>
    %cst_7 = arith.constant dense<0.000000e+00> : vector<112x128xf32>
    %16 = tpu.matmul %14, %15, %cst_7 {dimension_numbers = #tpu.dot_dimension_numbers<[1], [0], [0], [1], [0, 0, 1, 1], [], []>} : vector<112x64xbf16>, vector<64x128xbf16>, vector<112x128xf32> -> vector<112x128xf32>
    %c0_8 = arith.constant 0 : index
    %c0_9 = arith.constant 0 : index
    %17 = vector.load %arg4[%c0_8, %c0_9] : memref<112x128xf32, #tpu.memory_space<vmem>>, vector<112x128xf32>
    tpu.vector_store %arg4[%c0_8, %c0_9], %16 {strides = array<i32>} : memref<112x128xf32, #tpu.memory_space<vmem>>, vector<112x128xf32>,
    return
  }
  func.func @transform_0(%arg0: i32) -> (i32, i32) {
    %c0_i32 = arith.constant 0 : i32
    %c0_i32_0 = arith.constant 0 : i32
    %c0_i32_1 = arith.constant 0 : i32
    return %c0_i32, %c0_i32_0 : i32, i32
  }
  func.func @transform_1(%arg0: i32) -> (i32, i32) {
    %c0_i32 = arith.constant 0 : i32
    %c0_i32_0 = arith.constant 0 : i32
    %c0_i32_1 = arith.constant 0 : i32
    return %c0_i32, %c0_i32_0 : i32, i32
  }
  func.func @transform_2(%arg0: i32) -> (i32, i32) {
    %c0_i32 = arith.constant 0 : i32
    %c0_i32_0 = arith.constant 0 : i32
    %c0_i32_1 = arith.constant 0 : i32
    return %c0_i32, %c0_i32_0 : i32, i32
  }
  func.func @transform_3(%arg0: i32) -> (i32, i32) {
    %c0_i32 = arith.constant 0 : i32
    %c0_i32_0 = arith.constant 0 : i32
    %c0_i32_1 = arith.constant 0 : i32
    return %c0_i32, %c0_i32_0 : i32, i32
  }
}

module attributes {stable_mosaic.version = 11 : i64} {
  func.func @_block_kernel(%arg0: i32, %arg1: memref<1x56x64xf32, #tpu.memory_space<vmem>>, %arg2: memref<1x1x64xf32, #tpu.memory_space<vmem>>, %arg3: memref<56x128xf32, #tpu.memory_space<vmem>>, %arg4: memref<56x128xf32, #tpu.memory_space<vmem>>, %arg5: memref<1x64xf32, #tpu.memory_space<vmem>>, %arg6: memref<64x192xbf16, #tpu.memory_space<vmem>>, %arg7: memref<64x64xbf16, #tpu.memory_space<vmem>>, %arg8: memref<1x64xf32, #tpu.memory_space<vmem>>, %arg9: memref<1x64xf32, #tpu.memory_space<vmem>>, %arg10: memref<64x256xbf16, #tpu.memory_space<vmem>>, %arg11: memref<128x64xbf16, #tpu.memory_space<vmem>>, %arg12: memref<1x56x64xf32, #tpu.memory_space<vmem>>) attributes {dimension_semantics = [#tpu.dimension_semantics<parallel>], iteration_bounds = array<i64: 2>, scalar_prefetch = 0 : i64, scratch_operands = 0 : i64, tpu.core_type = #tpu.core_type<tc>, window_params = [{transform_indices = @transform_0, window_bounds = array<i64: 1, 56, 64>}, {transform_indices = @transform_1, window_bounds = array<i64: 1, 1, 64>}, {pipeline_mode = #tpu.pipeline_mode<synchronous>, transform_indices = @transform_2, window_bounds = array<i64: 56, 128>}, {pipeline_mode = #tpu.pipeline_mode<synchronous>, transform_indices = @transform_3, window_bounds = array<i64: 56, 128>}, {pipeline_mode = #tpu.pipeline_mode<synchronous>, transform_indices = @transform_4, window_bounds = array<i64: 1, 64>}, {pipeline_mode = #tpu.pipeline_mode<synchronous>, transform_indices = @transform_5, window_bounds = array<i64: 64, 192>}, {pipeline_mode = #tpu.pipeline_mode<synchronous>, transform_indices = @transform_6, window_bounds = array<i64: 64, 64>}, {pipeline_mode = #tpu.pipeline_mode<synchronous>, transform_indices = @transform_7, window_bounds = array<i64: 1, 64>}, {pipeline_mode = #tpu.pipeline_mode<synchronous>, transform_indices = @transform_8, window_bounds = array<i64: 1, 64>}, {pipeline_mode = #tpu.pipeline_mode<synchronous>, transform_indices = @transform_9, window_bounds = array<i64: 64, 256>}, {pipeline_mode = #tpu.pipeline_mode<synchronous>, transform_indices = @transform_10, window_bounds = array<i64: 128, 64>}, {transform_indices = @transform_11, window_bounds = array<i64: 1, 56, 64>}]} {
    %c0 = arith.constant 0 : index
    %c0_0 = arith.constant 0 : index
    %c0_1 = arith.constant 0 : index
    %0 = vector.load %arg1[%c0, %c0_0, %c0_1] : memref<1x56x64xf32, #tpu.memory_space<vmem>>, vector<1x56x64xf32>
    %1 = vector.shape_cast %0 : vector<1x56x64xf32> to vector<56x64xf32>
    %2 = arith.mulf %1, %1 : vector<56x64xf32>
    %cst = arith.constant dense<0.000000e+00> : vector<56xf32>
    %3 = vector.multi_reduction <add>, %2, %cst [1] : vector<56x64xf32> to vector<56xf32>
    %4 = vector.shape_cast %3 : vector<56xf32> to vector<56x1xf32>
    %cst_2 = arith.constant 6.400000e+01 : f32
    %5 = vector.broadcast %cst_2 : f32 to vector<56x1xf32>
    %6 = arith.divf %4, %5 : vector<56x1xf32>
    %cst_3 = arith.constant 9.99999974E-6 : f32
    %7 = vector.broadcast %cst_3 : f32 to vector<56x1xf32>
    %8 = arith.addf %6, %7 : vector<56x1xf32>
    %9 = math.rsqrt %8 : vector<56x1xf32>
    %10 = vector.broadcast %9 : vector<56x1xf32> to vector<56x64xf32>
    %11 = arith.mulf %1, %10 : vector<56x64xf32>
    %c0_4 = arith.constant 0 : index
    %c0_5 = arith.constant 0 : index
    %12 = vector.load %arg5[%c0_4, %c0_5] : memref<1x64xf32, #tpu.memory_space<vmem>>, vector<1x64xf32>
    %13 = vector.broadcast %12 : vector<1x64xf32> to vector<56x64xf32>
    %14 = arith.mulf %11, %13 : vector<56x64xf32>
    %15 = arith.truncf %14 : vector<56x64xf32> to vector<56x64xbf16>
    %c0_6 = arith.constant 0 : index
    %c0_7 = arith.constant 0 : index
    %16 = vector.load %arg6[%c0_6, %c0_7] : memref<64x192xbf16, #tpu.memory_space<vmem>>, vector<64x192xbf16>
    %cst_8 = arith.constant dense<0.000000e+00> : vector<56x192xf32>
    %17 = tpu.matmul %15, %16, %cst_8 {dimension_numbers = #tpu.dot_dimension_numbers<[1], [0], [0], [1], [0, 0, 1, 1], [], []>} : vector<56x64xbf16>, vector<64x192xbf16>, vector<56x192xf32> -> vector<56x192xf32>
    %18 = vector.extract_strided_slice %17 {offsets = [0, 0], sizes = [56, 128], strides = [1, 1]} : vector<56x192xf32> to vector<56x128xf32>
    %19 = tpu.iota {dimensions = array<i32: 1>} : vector<56x128xi32>
    %c1_i32 = arith.constant 1 : i32
    %20 = vector.broadcast %c1_i32 : i32 to vector<56x128xi32>
    %21 = arith.andi %19, %20 : vector<56x128xi32>
    %c0_i32 = arith.constant 0 : i32
    %22 = vector.broadcast %c0_i32 : i32 to vector<56x128xi32>
    %23 = arith.cmpi eq, %21, %22 : vector<56x128xi32>
    %c127_i32 = arith.constant 127 : i32
    %24 = tpu.dynamic_rotate %18 by %c127_i32 dim 1 : vector<56x128xf32>, i32 -> vector<56x128xf32>
    %c1_i32_9 = arith.constant 1 : i32
    %25 = tpu.dynamic_rotate %18 by %c1_i32_9 dim 1 : vector<56x128xf32>, i32 -> vector<56x128xf32>
    %26 = arith.select %23, %24, %25 : vector<56x128xi1>, vector<56x128xf32>
    %c0_10 = arith.constant 0 : index
    %c0_11 = arith.constant 0 : index
    %27 = vector.load %arg3[%c0_10, %c0_11] : memref<56x128xf32, #tpu.memory_space<vmem>>, vector<56x128xf32>
    %28 = arith.mulf %18, %27 : vector<56x128xf32>
    %c0_12 = arith.constant 0 : index
    %c0_13 = arith.constant 0 : index
    %29 = vector.load %arg4[%c0_12, %c0_13] : memref<56x128xf32, #tpu.memory_space<vmem>>, vector<56x128xf32>
    %30 = arith.mulf %26, %29 : vector<56x128xf32>
    %31 = arith.addf %28, %30 : vector<56x128xf32>
    %32 = vector.extract_strided_slice %31 {offsets = [0, 0], sizes = [56, 64], strides = [1, 1]} : vector<56x128xf32> to vector<56x64xf32>
    %33 = vector.extract_strided_slice %31 {offsets = [0, 64], sizes = [56, 64], strides = [1, 1]} : vector<56x128xf32> to vector<56x64xf32>
    %34 = vector.extract_strided_slice %17 {offsets = [0, 128], sizes = [56, 64], strides = [1, 1]} : vector<56x192xf32> to vector<56x64xf32>
    %35 = tpu.iota {dimensions = array<i32: 0>} : vector<56x56xi32>
    %36 = tpu.iota {dimensions = array<i32: 1>} : vector<56x56xi32>
    %37 = arith.cmpi sgt, %36, %35 : vector<56x56xi32>
    %cst_14 = arith.constant -1.000000e+30 : f32
    %cst_15 = arith.constant 0.000000e+00 : f32
    %38 = vector.broadcast %cst_14 : f32 to vector<56x56xf32>
    %39 = vector.broadcast %cst_15 : f32 to vector<56x56xf32>
    %40 = arith.select %37, %38, %39 : vector<56x56xi1>, vector<56x56xf32>
    %c0_16 = arith.constant 0 : index
    %c0_17 = arith.constant 0 : index
    %c0_18 = arith.constant 0 : index
    %41 = vector.load %arg2[%c0_16, %c0_17, %c0_18] : memref<1x1x64xf32, #tpu.memory_space<vmem>>, vector<1x1x64xf32>
    %42 = vector.shape_cast %41 : vector<1x1x64xf32> to vector<1x64xf32>
    %43 = arith.truncf %42 : vector<1x64xf32> to vector<1x64xbf16>
    %c0_19 = arith.constant 0 : index
    %c128 = arith.constant 128 : index
    %44 = vector.load %arg6[%c0_19, %c128] : memref<64x192xbf16, #tpu.memory_space<vmem>>, vector<64x64xbf16>
    %cst_20 = arith.constant dense<0.000000e+00> : vector<1x64xf32>
    %45 = tpu.matmul %43, %44, %cst_20 {dimension_numbers = #tpu.dot_dimension_numbers<[1], [0], [0], [1], [0, 0, 1, 1], [], []>} : vector<1x64xbf16>, vector<64x64xbf16>, vector<1x64xf32> -> vector<1x64xf32>
    %c0_21 = arith.constant 0 : index
    %c0_22 = arith.constant 0 : index
    %46 = vector.load %arg7[%c0_21, %c0_22] : memref<64x64xbf16, #tpu.memory_space<vmem>>, vector<64x64xbf16>
    %c0_23 = arith.constant 0 : index
    %c0_24 = arith.constant 0 : index
    %47 = vector.load %arg8[%c0_23, %c0_24] : memref<1x64xf32, #tpu.memory_space<vmem>>, vector<1x64xf32>
    %48 = arith.mulf %47, %45 : vector<1x64xf32>
    %49 = arith.truncf %48 : vector<1x64xf32> to vector<1x64xbf16>
    %cst_25 = arith.constant dense<0.000000e+00> : vector<1x64xf32>
    %50 = tpu.matmul %49, %46, %cst_25 {dimension_numbers = #tpu.dot_dimension_numbers<[1], [0], [0], [1], [0, 0, 1, 1], [], []>} : vector<1x64xbf16>, vector<64x64xbf16>, vector<1x64xf32> -> vector<1x64xf32>
    %51 = vector.extract_strided_slice %32 {offsets = [0, 0], sizes = [56, 16], strides = [1, 1]} : vector<56x64xf32> to vector<56x16xf32>
    %52 = arith.truncf %51 : vector<56x16xf32> to vector<56x16xbf16>
    %53 = vector.extract_strided_slice %33 {offsets = [0, 0], sizes = [56, 16], strides = [1, 1]} : vector<56x64xf32> to vector<56x16xf32>
    %54 = arith.truncf %53 : vector<56x16xf32> to vector<56x16xbf16>
    %55 = vector.extract_strided_slice %34 {offsets = [0, 0], sizes = [56, 16], strides = [1, 1]} : vector<56x64xf32> to vector<56x16xf32>
    %56 = arith.truncf %55 : vector<56x16xf32> to vector<56x16xbf16>
    %cst_26 = arith.constant dense<0.000000e+00> : vector<56x56xf32>
    %57 = tpu.matmul %52, %54, %cst_26 {dimension_numbers = #tpu.dot_dimension_numbers<[1], [1], [0], [0], [0, 0, 1, 0], [], []>} : vector<56x16xbf16>, vector<56x16xbf16>, vector<56x56xf32> -> vector<56x56xf32>
    %cst_27 = arith.constant 2.500000e-01 : f32
    %58 = vector.broadcast %cst_27 : f32 to vector<56x56xf32>
    %59 = arith.mulf %57, %58 : vector<56x56xf32>
    %60 = arith.addf %59, %40 : vector<56x56xf32>
    %cst_28 = arith.constant dense<0xFF800000> : vector<56xf32>
    %61 = vector.multi_reduction <maximumf>, %60, %cst_28 [1] : vector<56x56xf32> to vector<56xf32>
    %62 = vector.shape_cast %61 : vector<56xf32> to vector<56x1xf32>
    %63 = vector.broadcast %62 : vector<56x1xf32> to vector<56x56xf32>
    %64 = arith.subf %60, %63 : vector<56x56xf32>
    %65 = math.exp %64 : vector<56x56xf32>
    %cst_29 = arith.constant dense<0.000000e+00> : vector<56xf32>
    %66 = vector.multi_reduction <add>, %65, %cst_29 [1] : vector<56x56xf32> to vector<56xf32>
    %67 = vector.shape_cast %66 : vector<56xf32> to vector<56x1xf32>
    %68 = tpu.reciprocal %67 {approx = true} : vector<56x1xf32> -> vector<56x1xf32>
    %69 = vector.broadcast %68 : vector<56x1xf32> to vector<56x56xf32>
    %70 = arith.mulf %65, %69 : vector<56x56xf32>
    %71 = arith.truncf %70 : vector<56x56xf32> to vector<56x56xbf16>
    %cst_30 = arith.constant dense<0.000000e+00> : vector<56x16xf32>
    %72 = tpu.matmul %71, %56, %cst_30 {dimension_numbers = #tpu.dot_dimension_numbers<[1], [0], [0], [1], [0, 0, 1, 1], [], []>} : vector<56x56xbf16>, vector<56x16xbf16>, vector<56x16xf32> -> vector<56x16xf32>
    %73 = arith.truncf %72 : vector<56x16xf32> to vector<56x16xbf16>
    %74 = vector.extract_strided_slice %46 {offsets = [0, 0], sizes = [16, 64], strides = [1, 1]} : vector<64x64xbf16> to vector<16x64xbf16>
    %cst_31 = arith.constant dense<0.000000e+00> : vector<56x64xf32>
    %75 = tpu.matmul %73, %74, %cst_31 {dimension_numbers = #tpu.dot_dimension_numbers<[1], [0], [0], [1], [0, 0, 1, 1], [], []>} : vector<56x16xbf16>, vector<16x64xbf16>, vector<56x64xf32> -> vector<56x64xf32>
    %76 = vector.broadcast %50 : vector<1x64xf32> to vector<56x64xf32>
    %77 = arith.addf %76, %75 : vector<56x64xf32>
    %78 = vector.extract_strided_slice %32 {offsets = [0, 16], sizes = [56, 16], strides = [1, 1]} : vector<56x64xf32> to vector<56x16xf32>
    %79 = arith.truncf %78 : vector<56x16xf32> to vector<56x16xbf16>
    %80 = vector.extract_strided_slice %33 {offsets = [0, 16], sizes = [56, 16], strides = [1, 1]} : vector<56x64xf32> to vector<56x16xf32>
    %81 = arith.truncf %80 : vector<56x16xf32> to vector<56x16xbf16>
    %82 = vector.extract_strided_slice %34 {offsets = [0, 16], sizes = [56, 16], strides = [1, 1]} : vector<56x64xf32> to vector<56x16xf32>
    %83 = arith.truncf %82 : vector<56x16xf32> to vector<56x16xbf16>
    %cst_32 = arith.constant dense<0.000000e+00> : vector<56x56xf32>
    %84 = tpu.matmul %79, %81, %cst_32 {dimension_numbers = #tpu.dot_dimension_numbers<[1], [1], [0], [0], [0, 0, 1, 0], [], []>} : vector<56x16xbf16>, vector<56x16xbf16>, vector<56x56xf32> -> vector<56x56xf32>
    %cst_33 = arith.constant 2.500000e-01 : f32
    %85 = vector.broadcast %cst_33 : f32 to vector<56x56xf32>
    %86 = arith.mulf %84, %85 : vector<56x56xf32>
    %87 = arith.addf %86, %40 : vector<56x56xf32>
    %cst_34 = arith.constant dense<0xFF800000> : vector<56xf32>
    %88 = vector.multi_reduction <maximumf>, %87, %cst_34 [1] : vector<56x56xf32> to vector<56xf32>
    %89 = vector.shape_cast %88 : vector<56xf32> to vector<56x1xf32>
    %90 = vector.broadcast %89 : vector<56x1xf32> to vector<56x56xf32>
    %91 = arith.subf %87, %90 : vector<56x56xf32>
    %92 = math.exp %91 : vector<56x56xf32>
    %cst_35 = arith.constant dense<0.000000e+00> : vector<56xf32>
    %93 = vector.multi_reduction <add>, %92, %cst_35 [1] : vector<56x56xf32> to vector<56xf32>
    %94 = vector.shape_cast %93 : vector<56xf32> to vector<56x1xf32>
    %95 = tpu.reciprocal %94 {approx = true} : vector<56x1xf32> -> vector<56x1xf32>
    %96 = vector.broadcast %95 : vector<56x1xf32> to vector<56x56xf32>
    %97 = arith.mulf %92, %96 : vector<56x56xf32>
    %98 = arith.truncf %97 : vector<56x56xf32> to vector<56x56xbf16>
    %cst_36 = arith.constant dense<0.000000e+00> : vector<56x16xf32>
    %99 = tpu.matmul %98, %83, %cst_36 {dimension_numbers = #tpu.dot_dimension_numbers<[1], [0], [0], [1], [0, 0, 1, 1], [], []>} : vector<56x56xbf16>, vector<56x16xbf16>, vector<56x16xf32> -> vector<56x16xf32>
    %100 = arith.truncf %99 : vector<56x16xf32> to vector<56x16xbf16>
    %101 = vector.extract_strided_slice %46 {offsets = [16, 0], sizes = [16, 64], strides = [1, 1]} : vector<64x64xbf16> to vector<16x64xbf16>
    %cst_37 = arith.constant dense<0.000000e+00> : vector<56x64xf32>
    %102 = tpu.matmul %100, %101, %cst_37 {dimension_numbers = #tpu.dot_dimension_numbers<[1], [0], [0], [1], [0, 0, 1, 1], [], []>} : vector<56x16xbf16>, vector<16x64xbf16>, vector<56x64xf32> -> vector<56x64xf32>
    %103 = arith.addf %77, %102 : vector<56x64xf32>
    %104 = vector.extract_strided_slice %32 {offsets = [0, 32], sizes = [56, 16], strides = [1, 1]} : vector<56x64xf32> to vector<56x16xf32>
    %105 = arith.truncf %104 : vector<56x16xf32> to vector<56x16xbf16>
    %106 = vector.extract_strided_slice %33 {offsets = [0, 32], sizes = [56, 16], strides = [1, 1]} : vector<56x64xf32> to vector<56x16xf32>
    %107 = arith.truncf %106 : vector<56x16xf32> to vector<56x16xbf16>
    %108 = vector.extract_strided_slice %34 {offsets = [0, 32], sizes = [56, 16], strides = [1, 1]} : vector<56x64xf32> to vector<56x16xf32>
    %109 = arith.truncf %108 : vector<56x16xf32> to vector<56x16xbf16>
    %cst_38 = arith.constant dense<0.000000e+00> : vector<56x56xf32>
    %110 = tpu.matmul %105, %107, %cst_38 {dimension_numbers = #tpu.dot_dimension_numbers<[1], [1], [0], [0], [0, 0, 1, 0], [], []>} : vector<56x16xbf16>, vector<56x16xbf16>, vector<56x56xf32> -> vector<56x56xf32>
    %cst_39 = arith.constant 2.500000e-01 : f32
    %111 = vector.broadcast %cst_39 : f32 to vector<56x56xf32>
    %112 = arith.mulf %110, %111 : vector<56x56xf32>
    %113 = arith.addf %112, %40 : vector<56x56xf32>
    %cst_40 = arith.constant dense<0xFF800000> : vector<56xf32>
    %114 = vector.multi_reduction <maximumf>, %113, %cst_40 [1] : vector<56x56xf32> to vector<56xf32>
    %115 = vector.shape_cast %114 : vector<56xf32> to vector<56x1xf32>
    %116 = vector.broadcast %115 : vector<56x1xf32> to vector<56x56xf32>
    %117 = arith.subf %113, %116 : vector<56x56xf32>
    %118 = math.exp %117 : vector<56x56xf32>
    %cst_41 = arith.constant dense<0.000000e+00> : vector<56xf32>
    %119 = vector.multi_reduction <add>, %118, %cst_41 [1] : vector<56x56xf32> to vector<56xf32>
    %120 = vector.shape_cast %119 : vector<56xf32> to vector<56x1xf32>
    %121 = tpu.reciprocal %120 {approx = true} : vector<56x1xf32> -> vector<56x1xf32>
    %122 = vector.broadcast %121 : vector<56x1xf32> to vector<56x56xf32>
    %123 = arith.mulf %118, %122 : vector<56x56xf32>
    %124 = arith.truncf %123 : vector<56x56xf32> to vector<56x56xbf16>
    %cst_42 = arith.constant dense<0.000000e+00> : vector<56x16xf32>
    %125 = tpu.matmul %124, %109, %cst_42 {dimension_numbers = #tpu.dot_dimension_numbers<[1], [0], [0], [1], [0, 0, 1, 1], [], []>} : vector<56x56xbf16>, vector<56x16xbf16>, vector<56x16xf32> -> vector<56x16xf32>
    %126 = arith.truncf %125 : vector<56x16xf32> to vector<56x16xbf16>
    %127 = vector.extract_strided_slice %46 {offsets = [32, 0], sizes = [16, 64], strides = [1, 1]} : vector<64x64xbf16> to vector<16x64xbf16>
    %cst_43 = arith.constant dense<0.000000e+00> : vector<56x64xf32>
    %128 = tpu.matmul %126, %127, %cst_43 {dimension_numbers = #tpu.dot_dimension_numbers<[1], [0], [0], [1], [0, 0, 1, 1], [], []>} : vector<56x16xbf16>, vector<16x64xbf16>, vector<56x64xf32> -> vector<56x64xf32>
    %129 = arith.addf %103, %128 : vector<56x64xf32>
    %130 = vector.extract_strided_slice %32 {offsets = [0, 48], sizes = [56, 16], strides = [1, 1]} : vector<56x64xf32> to vector<56x16xf32>
    %131 = arith.truncf %130 : vector<56x16xf32> to vector<56x16xbf16>
    %132 = vector.extract_strided_slice %33 {offsets = [0, 48], sizes = [56, 16], strides = [1, 1]} : vector<56x64xf32> to vector<56x16xf32>
    %133 = arith.truncf %132 : vector<56x16xf32> to vector<56x16xbf16>
    %134 = vector.extract_strided_slice %34 {offsets = [0, 48], sizes = [56, 16], strides = [1, 1]} : vector<56x64xf32> to vector<56x16xf32>
    %135 = arith.truncf %134 : vector<56x16xf32> to vector<56x16xbf16>
    %cst_44 = arith.constant dense<0.000000e+00> : vector<56x56xf32>
    %136 = tpu.matmul %131, %133, %cst_44 {dimension_numbers = #tpu.dot_dimension_numbers<[1], [1], [0], [0], [0, 0, 1, 0], [], []>} : vector<56x16xbf16>, vector<56x16xbf16>, vector<56x56xf32> -> vector<56x56xf32>
    %cst_45 = arith.constant 2.500000e-01 : f32
    %137 = vector.broadcast %cst_45 : f32 to vector<56x56xf32>
    %138 = arith.mulf %136, %137 : vector<56x56xf32>
    %139 = arith.addf %138, %40 : vector<56x56xf32>
    %cst_46 = arith.constant dense<0xFF800000> : vector<56xf32>
    %140 = vector.multi_reduction <maximumf>, %139, %cst_46 [1] : vector<56x56xf32> to vector<56xf32>
    %141 = vector.shape_cast %140 : vector<56xf32> to vector<56x1xf32>
    %142 = vector.broadcast %141 : vector<56x1xf32> to vector<56x56xf32>
    %143 = arith.subf %139, %142 : vector<56x56xf32>
    %144 = math.exp %143 : vector<56x56xf32>
    %cst_47 = arith.constant dense<0.000000e+00> : vector<56xf32>
    %145 = vector.multi_reduction <add>, %144, %cst_47 [1] : vector<56x56xf32> to vector<56xf32>
    %146 = vector.shape_cast %145 : vector<56xf32> to vector<56x1xf32>
    %147 = tpu.reciprocal %146 {approx = true} : vector<56x1xf32> -> vector<56x1xf32>
    %148 = vector.broadcast %147 : vector<56x1xf32> to vector<56x56xf32>
    %149 = arith.mulf %144, %148 : vector<56x56xf32>
    %150 = arith.truncf %149 : vector<56x56xf32> to vector<56x56xbf16>
    %cst_48 = arith.constant dense<0.000000e+00> : vector<56x16xf32>
    %151 = tpu.matmul %150, %135, %cst_48 {dimension_numbers = #tpu.dot_dimension_numbers<[1], [0], [0], [1], [0, 0, 1, 1], [], []>} : vector<56x56xbf16>, vector<56x16xbf16>, vector<56x16xf32> -> vector<56x16xf32>
    %152 = arith.truncf %151 : vector<56x16xf32> to vector<56x16xbf16>
    %153 = vector.extract_strided_slice %46 {offsets = [48, 0], sizes = [16, 64], strides = [1, 1]} : vector<64x64xbf16> to vector<16x64xbf16>
    %cst_49 = arith.constant dense<0.000000e+00> : vector<56x64xf32>
    %154 = tpu.matmul %152, %153, %cst_49 {dimension_numbers = #tpu.dot_dimension_numbers<[1], [0], [0], [1], [0, 0, 1, 1], [], []>} : vector<56x16xbf16>, vector<16x64xbf16>, vector<56x64xf32> -> vector<56x64xf32>
    %155 = arith.addf %129, %154 : vector<56x64xf32>
    %156 = arith.addf %1, %155 : vector<56x64xf32>
    %157 = arith.mulf %156, %156 : vector<56x64xf32>
    %cst_50 = arith.constant dense<0.000000e+00> : vector<56xf32>
    %158 = vector.multi_reduction <add>, %157, %cst_50 [1] : vector<56x64xf32> to vector<56xf32>
    %159 = vector.shape_cast %158 : vector<56xf32> to vector<56x1xf32>
    %cst_51 = arith.constant 6.400000e+01 : f32
    %160 = vector.broadcast %cst_51 : f32 to vector<56x1xf32>
    %161 = arith.divf %159, %160 : vector<56x1xf32>
    %cst_52 = arith.constant 9.99999974E-6 : f32
    %162 = vector.broadcast %cst_52 : f32 to vector<56x1xf32>
    %163 = arith.addf %161, %162 : vector<56x1xf32>
    %164 = math.rsqrt %163 : vector<56x1xf32>
    %165 = vector.broadcast %164 : vector<56x1xf32> to vector<56x64xf32>
    %166 = arith.mulf %156, %165 : vector<56x64xf32>
    %c0_53 = arith.constant 0 : index
    %c0_54 = arith.constant 0 : index
    %167 = vector.load %arg9[%c0_53, %c0_54] : memref<1x64xf32, #tpu.memory_space<vmem>>, vector<1x64xf32>
    %168 = vector.broadcast %167 : vector<1x64xf32> to vector<56x64xf32>
    %169 = arith.mulf %166, %168 : vector<56x64xf32>
    %170 = arith.truncf %169 : vector<56x64xf32> to vector<56x64xbf16>
    %c0_55 = arith.constant 0 : index
    %c0_56 = arith.constant 0 : index
    %171 = vector.load %arg10[%c0_55, %c0_56] : memref<64x256xbf16, #tpu.memory_space<vmem>>, vector<64x256xbf16>
    %cst_57 = arith.constant dense<0.000000e+00> : vector<56x256xf32>
    %172 = tpu.matmul %170, %171, %cst_57 {dimension_numbers = #tpu.dot_dimension_numbers<[1], [0], [0], [1], [0, 0, 1, 1], [], []>} : vector<56x64xbf16>, vector<64x256xbf16>, vector<56x256xf32> -> vector<56x256xf32>
    %173 = vector.extract_strided_slice %172 {offsets = [0, 0], sizes = [56, 128], strides = [1, 1]} : vector<56x256xf32> to vector<56x128xf32>
    %174 = vector.extract_strided_slice %172 {offsets = [0, 128], sizes = [56, 128], strides = [1, 1]} : vector<56x256xf32> to vector<56x128xf32>
    %175 = arith.negf %173 : vector<56x128xf32>
    %176 = math.exp %175 : vector<56x128xf32>
    %cst_58 = arith.constant 1.000000e+00 : f32
    %177 = vector.broadcast %cst_58 : f32 to vector<56x128xf32>
    %178 = arith.addf %177, %176 : vector<56x128xf32>
    %179 = arith.divf %177, %178 : vector<56x128xf32>
    %180 = arith.mulf %173, %179 : vector<56x128xf32>
    %181 = arith.mulf %180, %174 : vector<56x128xf32>
    %182 = arith.truncf %181 : vector<56x128xf32> to vector<56x128xbf16>
    %c0_59 = arith.constant 0 : index
    %c0_60 = arith.constant 0 : index
    %183 = vector.load %arg11[%c0_59, %c0_60] : memref<128x64xbf16, #tpu.memory_space<vmem>>, vector<128x64xbf16>
    %cst_61 = arith.constant dense<0.000000e+00> : vector<56x64xf32>
    %184 = tpu.matmul %182, %183, %cst_61 {dimension_numbers = #tpu.dot_dimension_numbers<[1], [0], [0], [1], [0, 0, 1, 1], [], []>} : vector<56x128xbf16>, vector<128x64xbf16>, vector<56x64xf32> -> vector<56x64xf32>
    %185 = arith.addf %156, %184 : vector<56x64xf32>
    %c0_62 = arith.constant 0 : index
    %c0_63 = arith.constant 0 : index
    %c0_64 = arith.constant 0 : index
    %186 = vector.load %arg12[%c0_62, %c0_63, %c0_64] : memref<1x56x64xf32, #tpu.memory_space<vmem>>, vector<1x56x64xf32>
    %187 = vector.shape_cast %186 : vector<1x56x64xf32> to vector<56x64xf32>
    %188 = vector.shape_cast %185 : vector<56x64xf32> to vector<1x56x64xf32>
    tpu.vector_store %arg12[%c0_62, %c0_63, %c0_64], %188 {strides = array<i32>} : memref<1x56x64xf32, #tpu.memory_space<vmem>>, vector<1x56x64xf32>,
    return
  }
  func.func @transform_0(%arg0: i32) -> (i32, i32, i32) {
    %c0_i32 = arith.constant 0 : i32
    %c0_i32_0 = arith.constant 0 : i32
    %c0_i32_1 = arith.constant 0 : i32
    return %arg0, %c0_i32, %c0_i32_0 : i32, i32, i32
  }
  func.func @transform_1(%arg0: i32) -> (i32, i32, i32) {
    %c0_i32 = arith.constant 0 : i32
    %c0_i32_0 = arith.constant 0 : i32
    %c0_i32_1 = arith.constant 0 : i32
    return %arg0, %c0_i32, %c0_i32_0 : i32, i32, i32
  }
  func.func @transform_2(%arg0: i32) -> (i32, i32) {
    %c0_i32 = arith.constant 0 : i32
    %c0_i32_0 = arith.constant 0 : i32
    %c0_i32_1 = arith.constant 0 : i32
    return %c0_i32, %c0_i32_0 : i32, i32
  }
  func.func @transform_3(%arg0: i32) -> (i32, i32) {
    %c0_i32 = arith.constant 0 : i32
    %c0_i32_0 = arith.constant 0 : i32
    %c0_i32_1 = arith.constant 0 : i32
    return %c0_i32, %c0_i32_0 : i32, i32
  }
  func.func @transform_4(%arg0: i32) -> (i32, i32) {
    %c0_i32 = arith.constant 0 : i32
    %c0_i32_0 = arith.constant 0 : i32
    %c0_i32_1 = arith.constant 0 : i32
    return %c0_i32, %c0_i32_0 : i32, i32
  }
  func.func @transform_5(%arg0: i32) -> (i32, i32) {
    %c0_i32 = arith.constant 0 : i32
    %c0_i32_0 = arith.constant 0 : i32
    %c0_i32_1 = arith.constant 0 : i32
    return %c0_i32, %c0_i32_0 : i32, i32
  }
  func.func @transform_6(%arg0: i32) -> (i32, i32) {
    %c0_i32 = arith.constant 0 : i32
    %c0_i32_0 = arith.constant 0 : i32
    %c0_i32_1 = arith.constant 0 : i32
    return %c0_i32, %c0_i32_0 : i32, i32
  }
  func.func @transform_7(%arg0: i32) -> (i32, i32) {
    %c0_i32 = arith.constant 0 : i32
    %c0_i32_0 = arith.constant 0 : i32
    %c0_i32_1 = arith.constant 0 : i32
    return %c0_i32, %c0_i32_0 : i32, i32
  }
  func.func @transform_8(%arg0: i32) -> (i32, i32) {
    %c0_i32 = arith.constant 0 : i32
    %c0_i32_0 = arith.constant 0 : i32
    %c0_i32_1 = arith.constant 0 : i32
    return %c0_i32, %c0_i32_0 : i32, i32
  }
  func.func @transform_9(%arg0: i32) -> (i32, i32) {
    %c0_i32 = arith.constant 0 : i32
    %c0_i32_0 = arith.constant 0 : i32
    %c0_i32_1 = arith.constant 0 : i32
    return %c0_i32, %c0_i32_0 : i32, i32
  }
  func.func @transform_10(%arg0: i32) -> (i32, i32) {
    %c0_i32 = arith.constant 0 : i32
    %c0_i32_0 = arith.constant 0 : i32
    %c0_i32_1 = arith.constant 0 : i32
    return %c0_i32, %c0_i32_0 : i32, i32
  }
  func.func @transform_11(%arg0: i32) -> (i32, i32, i32) {
    %c0_i32 = arith.constant 0 : i32
    %c0_i32_0 = arith.constant 0 : i32
    %c0_i32_1 = arith.constant 0 : i32
    return %arg0, %c0_i32, %c0_i32_0 : i32, i32, i32
  }
}

</mosaic_0001>

<bundles_post_ra>
// kernel: forward.3
= control target key start
LH: loop header
LB: loop body
LE: loop exit
PB: predicated region body
PF: predicated region fallthrough
CT: control target
= control target key end

     0   :  { %vm43_vm0 = vcmask 523264   ;;  %v432_v43 = vmov 0.0   ;;  %vm433_vm1 = vmmov 0   ;;  %s682_s0 = inlined_call_operand.vmem [shape: f32[112,64], index: 0, kind: input, shape index: {}]   ;;  %s683_s2 = inlined_call_operand.vmem [shape: bf16[64,128], index: 2, kind: input, shape index: {}]   ;;  %s684_s1 = inlined_call_operand.vmem [shape: f32[1,64], index: 1, kind: input, shape index: {}]   ;;  %s685_s3 = inlined_call_operand.vmem [shape: f32[112,128], index: 3, kind: output, shape index: {}]  }
   0x1   :  { %v457_v0 = vld [vmem:[%s682_s0 + $0x10] sm:$0xff]  ;;  %v462_v1 = vld [vmem:[%s682_s0] sm:$0xff]  ;;  %v467_v2 = vld [vmem:[%s682_s0 + $0x18] sm:$0xff]  ;;  %354 = vmatprep.subr.bf16.mxu0 %v432_v43  ;;  %390 = vmatprep.subr.bf16.mxu1 %v432_v43 }
   0x2   :  { %v31_v3 = vmul.f32 %v457_v0, %v457_v0  ;;  %v29_v4 = vmul.f32 %v462_v1, %v462_v1  ;;  %v32_v5 = vmul.f32 %v467_v2, %v467_v2  ;;  %v478_v6 = vld [vmem:[%s682_s0 + $0x8] sm:$0xff]  ;;  %v490_v9 = vld [vmem:[%s682_s0 + $0x40] sm:$0xff]  ;;  %v519_v22 = vld [vmem:[%s682_s0 + $0x58] sm:$0xff]  ;;  %362 = vmatprep.mubr.msk.bf16.mxu0 %vm433_vm1, %v432_v43  ;;  %378 = vmatprep.mubr.msk.bf16.mxu1 %vm433_vm1, %v432_v43 }
   0x3   :  { %v30_v7 = vmul.f32 %v478_v6, %v478_v6  ;;  %v485_v8 = vld [vmem:[%s682_s0 + $0x48] sm:$0xff]  ;;  %v37_v15 = vmul.f32 %v490_v9, %v490_v9  ;;  %v508_v17 = vld [vmem:[%s682_s0 + $0x20] sm:$0xff]  ;;  %v524_v23 = vld [vmem:[%s682_s0 + $0x50] sm:$0xff]  ;;  %v40_v26 = vmul.f32 %v519_v22, %v519_v22 }
   0x4   :  { %v50_v10 = vsel %vm43_vm0, %v31_v3, 0.0  ;;  %v44_v11 = vsel %vm43_vm0, %v29_v4, 0.0  ;;  %v53_v12 = vsel %vm43_vm0, %v32_v5, 0.0  ;;  %v38_v14 = vmul.f32 %v485_v8, %v485_v8  ;;  %v503_v16 = vld [vmem:[%s682_s0 + $0x28] sm:$0xff]  ;;  %v535_v28 = vld [vmem:[%s682_s0 + $0x38] sm:$0xff]  ;;  %v540_v29 = vld [vmem:[%s682_s0 + $0x30] sm:$0xff] }
   0x5   :  { %51 = vadd.xlane.f32.xlu1 %v50_v10  ;;  %45 = vadd.xlane.f32.xlu0 %v44_v11  ;;  %v47_v13 = vsel %vm43_vm0, %v30_v7, 0.0  ;;  %v68_v19 = vsel %vm43_vm0, %v37_v15, 0.0  ;;  %v34_v20 = vmul.f32 %v503_v16, %v503_v16  ;;  %v33_v21 = vmul.f32 %v508_v17, %v508_v17  ;;  %v551_v34 = vld [vmem:[%s682_s0 + $0x68] sm:$0xff]  ;;  %v556_v35 = vld [vmem:[%s682_s0 + $0x60] sm:$0xff]  ;;  %v402_v45 = vld [vmem:[%s683_s2 + $0x10] sm:$0xff]  }
   0x6   :  { %v71_v18 = vsel %vm43_vm0, %v38_v14, 0.0  ;;  %v39_v27 = vmul.f32 %v524_v23, %v524_v23  ;;  %v77_v30 = vsel %vm43_vm0, %v40_v26, 0.0  ;;  %v36_v32 = vmul.f32 %v535_v28, %v535_v28  ;;  %v400_v42 = vld [vmem:[%s683_s2] sm:$0xff]   ;;  %v401_v44 = vld [vmem:[%s683_s2 + $0x8] sm:$0xff]   ;;  %v403_v46 = vld [vmem:[%s683_s2 + $0x18] sm:$0xff]  }
   0x7   :  { %v59_v24 = vsel %vm43_vm0, %v34_v20, 0.0  ;;  %v56_v25 = vsel %vm43_vm0, %v33_v21, 0.0  ;;  %v35_v33 = vmul.f32 %v540_v29, %v540_v29  ;;  %v42_v38 = vmul.f32 %v551_v34, %v551_v34  ;;  %355 = vmatpush3.bf16.msra.mxu0 %v400_v42  ;;  %394 = vmatpush3.bf16.msra.mxu1 %v400_v42 }
   0x8   :  { %v74_v31 = vsel %vm43_vm0, %v39_v27, 0.0  ;;  %v65_v36 = vsel %vm43_vm0, %v36_v32, 0.0  ;;  %v41_v39 = vmul.f32 %v556_v35, %v556_v35  ;;  %356 = vmatprep.subr.bf16.mxu0 %v432_v43  ;;  %391 = vmatprep.subr.bf16.mxu1 %v432_v43 }
   0x9   :  { %54 = vadd.xlane.f32.xlu1 %v53_v12  ;;  %48 = vadd.xlane.f32.xlu0 %v47_v13  ;;  %v62_v37 = vsel %vm43_vm0, %v35_v33, 0.0  ;;  %v83_v40 = vsel %vm43_vm0, %v42_v38, 0.0 }
   0xa   :  { %v80_v41 = vsel %vm43_vm0, %v41_v39, 0.0 }
   0xb   :  { %357 = vmatpush3.bf16.msra.mxu0 %v401_v44  ;;  %395 = vmatpush3.bf16.msra.mxu1 %v401_v44 }
   0xc   :  { %358 = vmatprep.subr.bf16.mxu0 %v432_v43  ;;  %392 = vmatprep.subr.bf16.mxu1 %v432_v43 }
   0xd   :  { %72 = vadd.xlane.f32.xlu1 %v71_v18  ;;  %69 = vadd.xlane.f32.xlu0 %v68_v19 }
   0xf   :  { %359 = vmatpush3.bf16.msra.mxu0 %v402_v45  ;;  %396 = vmatpush3.bf16.msra.mxu1 %v402_v45 }
  0x10   :  { %360 = vmatprep.subr.bf16.mxu0 %v432_v43  ;;  %393 = vmatprep.subr.bf16.mxu1 %v432_v43 }
  0x11   :  { %60 = vadd.xlane.f32.xlu1 %v59_v24  ;;  %57 = vadd.xlane.f32.xlu0 %v56_v25 }
  0x13   :  { %361 = vmatpush3.bf16.msra.mxu0 %v403_v46  ;;  %397 = vmatpush3.bf16.msra.mxu1 %v403_v46 }
  0x15   :  { %78 = vadd.xlane.f32.xlu1 %v77_v30  ;;  %75 = vadd.xlane.f32.xlu0 %v74_v31  ;;  %v594_v30 = vld [vmem:[%s684_s1] ss:$0 sm:$0xff] }
  0x19   :  { %66 = vadd.xlane.f32.xlu1 %v65_v36  ;;  %63 = vadd.xlane.f32.xlu0 %v62_v37 }
  0x1d   :  { %84 = vadd.xlane.f32.xlu1 %v83_v40  ;;  %81 = vadd.xlane.f32.xlu0 %v80_v41 }
  0x92   :  { %v52_v47 = vpop.xlane.xlu1 %51  ;;  %v46_v48 = vpop.xlane.xlu0 %45 }
  0x93   :  { %v87_v49 = vmul.f32 0.015625, %v46_v48  ;;  %v89_v50 = vmul.f32 0.015625, %v52_v47 }
  0x95   :  { %v101_v51 = vadd.f32 1e-05, %v87_v49  ;;  %v103_v56 = vadd.f32 1e-05, %v89_v50 }
  0x96   :  { %v55_v52 = vpop.xlane.xlu1 %54  ;;  %v49_v53 = vpop.xlane.xlu0 %48 }
  0x97   :  { %v90_v54 = vmul.f32 0.015625, %v55_v52  ;;  %v88_v55 = vmul.f32 0.015625, %v49_v53  ;;  %404 = vrsqrt.f32 %v101_v51 }
  0x99   :  { %v102_v57 = vadd.f32 1e-05, %v88_v55  ;;  %v104_v58 = vadd.f32 1e-05, %v90_v54 }
  0x9a   :  { %v73_v59 = vpop.xlane.xlu1 %72  ;;  %v70_v60 = vpop.xlane.xlu0 %69 }
  0x9b   :  { %v96_v61 = vmul.f32 0.015625, %v73_v59  ;;  %v95_v62 = vmul.f32 0.015625, %v70_v60  ;;  %406 = vrsqrt.f32 %v102_v57 }
  0x9c   :  { %408 = vrsqrt.f32 %v103_v56 }
  0x9d   :  { %v110_v63 = vadd.f32 1e-05, %v96_v61  ;;  %v109_v3 = vadd.f32 1e-05, %v95_v62  ;;  %410 = vrsqrt.f32 %v104_v58 }
  0x9e   :  { %v61_v4 = vpop.xlane.xlu1 %60  ;;  %v58_v5 = vpop.xlane.xlu0 %57 }
  0x9f   :  { %412 = vrsqrt.f32 %v110_v63  ;;  %v92_v7 = vmul.f32 0.015625, %v61_v4  ;;  %v91_v10 = vmul.f32 0.015625, %v58_v5 }
  0xa0   :  { %414 = vrsqrt.f32 %v109_v3 }
  0xa1   :  { %v106_v11 = vadd.f32 1e-05, %v92_v7  ;;  %v405_v12 = vpop.eup %404  ;;  %v105_v13 = vadd.f32 1e-05, %v91_v10 }
  0xa2   :  { %v79_v14 = vpop.xlane.xlu1 %78  ;;  %v76_v15 = vpop.xlane.xlu0 %75  ;;  %v129_v24 = vmul.f32 %v405_v12, %v462_v1 }
  0xa3   :  { %v98_v18 = vmul.f32 0.015625, %v79_v14  ;;  %v97_v19 = vmul.f32 0.015625, %v76_v15  ;;  %416 = vrsqrt.f32 %v106_v11 }
  0xa4   :  { %418 = vrsqrt.f32 %v105_v13  ;;  %v150_v1 = vmul.f32 %v594_v30, %v129_v24 }
  0xa5   :  { %v112_v20 = vadd.f32 1e-05, %v98_v18  ;;  %v111_v21 = vadd.f32 1e-05, %v97_v19  ;;  %v407_v25 = vpop.eup %406 }
  0xa6   :  { %v67_v26 = vpop.xlane.xlu1 %66  ;;  %v64_v27 = vpop.xlane.xlu0 %63  ;;  %v130_v36 = vmul.f32 %v407_v25, %v478_v6 }
  0xa7   :  { %v409_v31 = vpop.eup %408  ;;  %420 = vrsqrt.f32 %v112_v20  ;;  %v94_v32 = vmul.f32 0.015625, %v67_v26  ;;  %v93_v33 = vmul.f32 0.015625, %v64_v27 }
  0xa8   :  { %v411_v37 = vpop.eup %410  ;;  %422 = vrsqrt.f32 %v111_v21  ;;  %v151_v40 = vmul.f32 %v594_v30, %v130_v36  ;;  %v131_v47 = vmul.f32 %v409_v31, %v457_v0 }
  0xa9   :  { %v413_v38 = vpop.eup %412  ;;  %v108_v39 = vadd.f32 1e-05, %v94_v32  ;;  %v107_v42 = vadd.f32 1e-05, %v93_v33  ;;  %v132_v6 = vmul.f32 %v411_v37, %v467_v2 }
  0xaa   :  { %v415_v41 = vpop.eup %414  ;;  %v85_v44 = vpop.xlane.xlu1 %84  ;;  %v138_v46 = vmul.f32 %v413_v38, %v485_v8  ;;  %v164_v50 = vpack.c.bf16 %v151_v40, %v150_v1  ;;  %v152_v8 = vmul.f32 %v594_v30, %v131_v47 }
  0xab   :  { %v82_v45 = vpop.xlane.xlu0 %81  ;;  %v100_v48 = vmul.f32 0.015625, %v85_v44  ;;  %v137_v51 = vmul.f32 %v415_v41, %v490_v9  ;;  %424 = vrsqrt.f32 %v108_v39  ;;  %v153_v2 = vmul.f32 %v594_v30, %v132_v6 }
  0xac   :  { %v99_v49 = vmul.f32 0.015625, %v82_v45  ;;  %v159_v52 = vmul.f32 %v594_v30, %v138_v46  ;;  %363 = vmatmul.mubr.msk.bf16.vlgmr.msra.gmra.mrb[0].mxu0 %vm43_vm0, %v164_v50  ;;  %426 = vrsqrt.f32 %v107_v42 }
  0xad   :  { %v114_v53 = vadd.f32 1e-05, %v100_v48  ;;  %v158_v55 = vmul.f32 %v594_v30, %v137_v51  ;;  %366 = vmatprep.mubr.msk.bf16.mxu0 %vm433_vm1, %v432_v43  ;;  %v417_v0 = vpop.eup %416  ;;  %v165_v60 = vpack.c.bf16 %v153_v2, %v152_v8 }
  0xae   :  { %v113_v54 = vadd.f32 1e-05, %v99_v49  ;;  %v419_v9 = vpop.eup %418  ;;  %v134_v63 = vmul.f32 %v417_v0, %v503_v16 }
  0xaf   :  { %428 = vrsqrt.f32 %v114_v53  ;;  %v168_v56 = vpack.c.bf16 %v159_v52, %v158_v55  ;;  %v133_v62 = vmul.f32 %v419_v9, %v508_v17 }
  0xb0   :  { %430 = vrsqrt.f32 %v113_v54  ;;  %v155_v10 = vmul.f32 %v594_v30, %v134_v63 }
  0xb1   :  { %v421_v57 = vpop.eup %420  ;;  %379 = vmatmul.mubr.msk.bf16.vlgmr.msra.gmra.mrb[0].mxu1 %vm43_vm0, %v168_v56  ;;  %v154_v7 = vmul.f32 %v594_v30, %v133_v62 }
  0xb2   :  { %v423_v58 = vpop.eup %422  ;;  %v140_v59 = vmul.f32 %v421_v57, %v519_v22  ;;  %382 = vmatprep.mubr.msk.bf16.mxu1 %vm433_vm1, %v432_v43 }
  0xb3   :  { %v139_v61 = vmul.f32 %v423_v58, %v524_v23  ;;  %v166_v12 = vpack.c.bf16 %v155_v10, %v154_v7 }
  0xb4   :  { %v161_v3 = vmul.f32 %v594_v30, %v140_v59  ;;  %367 = vmatmul.mubr.msk.bf16.gmra.mrb[4].mxu0 %vm43_vm0, %v165_v60 }
  0xb5   :  { %v160_v4 = vmul.f32 %v594_v30, %v139_v61  ;;  %370 = vmatprep.mubr.msk.bf16.mxu0 %vm433_vm1, %v432_v43  ;;  %v425_v22 = vpop.eup %424 }
  0xb6   :  { %v427_v23 = vpop.eup %426  ;;  %v136_v15 = vmul.f32 %v425_v22, %v535_v28 }
  0xb7   :  { %v169_v5 = vpack.c.bf16 %v161_v3, %v160_v4  ;;  %v135_v14 = vmul.f32 %v427_v23, %v540_v29 }
  0xb8   :  { %v157_v21 = vmul.f32 %v594_v30, %v136_v15 }
  0xb9   :  { %v429_v11 = vpop.eup %428  ;;  %383 = vmatmul.mubr.msk.bf16.gmra.mrb[4].mxu1 %vm43_vm0, %v169_v5  ;;  %v156_v20 = vmul.f32 %v594_v30, %v135_v14 }
  0xba   :  { %v431_v17 = vpop.eup %430  ;;  %v142_v16 = vmul.f32 %v429_v11, %v551_v34  ;;  %386 = vmatprep.mubr.msk.bf16.mxu1 %vm433_vm1, %v432_v43 }
  0xbb   :  { %v141_v13 = vmul.f32 %v431_v17, %v556_v35  ;;  %v167_v35 = vpack.c.bf16 %v157_v21, %v156_v20 }
  0xbc   :  { %v163_v18 = vmul.f32 %v594_v30, %v142_v16  ;;  %371 = vmatmul.mubr.msk.bf16.gmra.mrb[8].mxu0 %vm43_vm0, %v166_v12 }
  0xbd   :  { %v162_v19 = vmul.f32 %v594_v30, %v141_v13  ;;  %374 = vmatprep.mubr.msk.bf16.mxu0 %vm433_vm1, %v432_v43 }
  0xbf   :  { %v170_v34 = vpack.c.bf16 %v163_v18, %v162_v19 }
  0xc1   :  { %387 = vmatmul.mubr.msk.bf16.gmra.mrb[8].mxu1 %vm43_vm0, %v170_v34 }
  0xc4   :  { %375 = vmatmul.mubr.msk.bf16.gmra.mrb[12].mxu0 %vm43_vm0, %v167_v35 }
 0x17f   :  { %v258_v28 = vpop.f32.mrb[0].mxu0 }
 0x180   :  { %313 = vst [vmem:[%s685_s3] sm:$0xff] %v258_v28  ;;  %v364_v29 = vpop.f32.mrb[1].mxu0 }
 0x181   :  { %v261_v24 = vpop.f32.mrb[2].mxu0 }
 0x182   :  { %314 = vst [vmem:[%s685_s3 + $0x8] sm:$0xff] %v261_v24  ;;  %v365_v43 = vpop.f32.mrb[3].mxu0 }
 0x184   :  { %v290_v25 = vpop.f32.mrb[0].mxu1 }
 0x185   :  { %321 = vst [vmem:[%s685_s3 + $0x40] sm:$0xff] %v290_v25  ;;  %v380_v26 = vpop.f32.mrb[1].mxu1 }
 0x186   :  { %v293_v27 = vpop.f32.mrb[2].mxu1 }
 0x187   :  { %322 = vst [vmem:[%s685_s3 + $0x48] sm:$0xff] %v293_v27  ;;  %v266_v30 = vpop.f32.mrb[4].mxu0  ;;  %v381_v31 = vpop.f32.mrb[3].mxu1 }
 0x188   :  { %315 = vst [vmem:[%s685_s3 + $0x10] sm:$0xff] %v266_v30  ;;  %v368_v32 = vpop.f32.mrb[5].mxu0 }
 0x189   :  { %v269_v33 = vpop.f32.mrb[6].mxu0 }
 0x18a   :  { %316 = vst [vmem:[%s685_s3 + $0x18] sm:$0xff] %v269_v33  ;;  %v369_v36 = vpop.f32.mrb[7].mxu0 }
 0x18c   :  { %v298_v37 = vpop.f32.mrb[4].mxu1 }
 0x18d   :  { %323 = vst [vmem:[%s685_s3 + $0x50] sm:$0xff] %v298_v37  ;;  %v384_v38 = vpop.f32.mrb[5].mxu1 }
 0x18e   :  { %v301_v39 = vpop.f32.mrb[6].mxu1 }
 0x18f   :  { %324 = vst [vmem:[%s685_s3 + $0x58] sm:$0xff] %v301_v39  ;;  %v274_v1 = vpop.f32.mrb[8].mxu0  ;;  %v385_v40 = vpop.f32.mrb[7].mxu1 }
 0x190   :  { %317 = vst [vmem:[%s685_s3 + $0x20] sm:$0xff] %v274_v1  ;;  %v372_v41 = vpop.f32.mrb[9].mxu0 }
 0x191   :  { %v277_v42 = vpop.f32.mrb[10].mxu0 }
 0x192   :  { %318 = vst [vmem:[%s685_s3 + $0x28] sm:$0xff] %v277_v42  ;;  %v373_v44 = vpop.f32.mrb[11].mxu0 }
 0x194   :  { %v306_v45 = vpop.f32.mrb[8].mxu1 }
 0x195   :  { %325 = vst [vmem:[%s685_s3 + $0x60] sm:$0xff] %v306_v45  ;;  %v388_v46 = vpop.f32.mrb[9].mxu1 }
 0x196   :  { %v309_v47 = vpop.f32.mrb[10].mxu1 }
 0x197   :  { %326 = vst [vmem:[%s685_s3 + $0x68] sm:$0xff] %v309_v47  ;;  %v282_v48 = vpop.f32.mrb[12].mxu0  ;;  %v389_v49 = vpop.f32.mrb[11].mxu1 }
 0x198   :  { %319 = vst [vmem:[%s685_s3 + $0x30] sm:$0xff] %v282_v48  ;;  %v376_v50 = vpop.f32.mrb[13].mxu0 }
 0x199   :  { %v285_v6 = vpop.f32.mrb[14].mxu0 }
 0x19a   :  { %320 = vst [vmem:[%s685_s3 + $0x38] sm:$0xff] %v285_v6  ;;  %v377_v51 = vpop.f32.mrb[15].mxu0 }

// kernel: forward.2
= control target key start
LH: loop header
LB: loop body
LE: loop exit
PB: predicated region body
PF: predicated region fallthrough
CT: control target
= control target key end

     0   :  { %v1202_v21 = vmov 1983009808   ;;  %v48_v23 = vlaneseq  ;;  %v1203_v45 = vmov 0   ;;  %vm709_vm0 = vcmask 523264   ;;  %s1532_s2 = inlined_call_operand.vmem [shape: bf16[768,64], index: 2, kind: input, shape index: {}]   ;;  %s1533_s0 = inlined_call_operand.vmem [shape: f32[2,768], index: 0, kind: input, shape index: {}]   ;;  %s1534_s4 = inlined_call_operand.vmem [shape: bf16[192,64], index: 4, kind: input, shape index: {}]   ;;  %s1535_s1 = inlined_call_operand.vmem [shape: f32[2,192], index: 1, kind: input, shape index: {}]   ;;  %s1536_s6 = inlined_call_operand.vmem [shape: bf16[64,52], index: 6, kind: input, shape index: {}]   ;;  %s1537_s8 = inlined_call_operand.vmem [shape: bf16[52,12], index: 8, kind: input, shape index: {}]   ;;  %s1538_s3 = inlined_call_operand.vmem [shape: f32[1,64], index: 3, kind: input, shape index: {}]   ;;  %s1539_s10 = inlined_call_operand.vmem [shape: f32[2,64], index: 10, kind: output, shape index: {0}]   ;;  %s1540_s5 = inlined_call_operand.vmem [shape: f32[1,64], index: 5, kind: input, shape index: {}]   ;;  %s1541_s11 = inlined_call_operand.vmem [shape: f32[2,64], index: 11, kind: output, shape index: {1}]   ;;  %s1542_s7 = inlined_call_operand.vmem [shape: f32[1,52], index: 7, kind: input, shape index: {}]   ;;  %s1543_s12 = inlined_call_operand.vmem [shape: f32[2,52], index: 12, kind: output, shape index: {2}]   ;;  %s1544_s9 = inlined_call_operand.vmem [shape: f32[1,12], index: 9, kind: input, shape index: {}]   ;;  %s1545_s13 = inlined_call_operand.vmem [shape: f32[2,12], index: 13, kind: output, shape index: {3}]  }
   0x1   :  { %v1131_v0 = vld [vmem:[%s1532_s2 + $0x40] sm:$0xff]   ;;  %v1135_v4 = vld [vmem:[%s1532_s2 + $0x48] sm:$0xff]   ;;  %v1139_v8 = vld [vmem:[%s1532_s2 + $0x50] sm:$0xff]   ;;  %v46_v22 = vunpack.c.l.s4 %v1202_v21  ;;  %v1204_v21 = vmov 0.0   ;;  %vm1205_vm1 = vmmov 0   ;;  %vm754_vm2 = vcmask 517120  }
   0x2   :  { %v1132_v1 = vld [vmem:[%s1532_s2] sm:$0xff]   ;;  %1027 = vmatprep.subr.bf16.mxu0 %v1131_v0  ;;  %v1136_v5 = vld [vmem:[%s1532_s2 + $0x8] sm:$0xff]   ;;  %v1140_v9 = vld [vmem:[%s1532_s2 + $0x10] sm:$0xff]   ;;  %v49_v29 = vshrl.u32 %v48_v23, 7  ;;  %vm884_vm3 = vcmask 1041408   ;;  %vm930_vm4 = vcmask 418816  }
   0x3   :  { %v1133_v2 = vld [vmem:[%s1532_s2 + $0xc0] sm:$0xff]   ;;  %1028 = vmatpush3.bf16.msra.mxu0 %v1132_v1  ;;  %v1137_v6 = vld [vmem:[%s1532_s2 + $0xc8] sm:$0xff]   ;;  %v1141_v10 = vld [vmem:[%s1532_s2 + $0xd0] sm:$0xff]   ;;  %v47_v28 = vunpack.c.0.s8 %v46_v22  ;;  %vm880_vm5 = vcmask 424960   ;;  %vm932_vm6 = vcmask 91136  }
   0x4   :  { %v1134_v3 = vld [vmem:[%s1532_s2 + $0x80] sm:$0xff]   ;;  %1049 = vmatprep.subr.bf16.mxu1 %v1133_v2  ;;  %1029 = vmatprep.subr.bf16.mxu0 %v1135_v4  ;;  %v1138_v7 = vld [vmem:[%s1532_s2 + $0x88] sm:$0xff]   ;;  %v1142_v11 = vld [vmem:[%s1532_s2 + $0x90] sm:$0xff]  }
   0x5   :  { %1050 = vmatpush3.bf16.msra.mxu1 %v1134_v3  ;;  %v1143_v12 = vld [vmem:[%s1532_s2 + $0x58] sm:$0xff]   ;;  %v1147_v16 = vld [vmem:[%s1532_s2 + $0x60] sm:$0xff]   ;;  %v1151_v20 = vld [vmem:[%s1532_s2 + $0x68] sm:$0xff]   ;;  %v50_v34 = vsub.s32 %v47_v28, %v49_v29 }
   0x6   :  { %1051 = vmatprep.subr.bf16.mxu1 %v1137_v6  ;;  %v1144_v13 = vld [vmem:[%s1532_s2 + $0x18] sm:$0xff]   ;;  %v1148_v17 = vld [vmem:[%s1532_s2 + $0x20] sm:$0xff]   ;;  %v1152_v24 = vld [vmem:[%s1532_s2 + $0x28] sm:$0xff]  }
   0x7   :  { %1030 = vmatpush3.bf16.msra.mxu0 %v1136_v5  ;;  %v1145_v14 = vld [vmem:[%s1532_s2 + $0xd8] sm:$0xff]   ;;  %v1149_v18 = vld [vmem:[%s1532_s2 + $0xe0] sm:$0xff]   ;;  %v1153_v25 = vld [vmem:[%s1532_s2 + $0xe8] sm:$0xff]  }
   0x8   :  { %1031 = vmatprep.subr.bf16.mxu0 %v1139_v8  ;;  %v1146_v15 = vld [vmem:[%s1532_s2 + $0x98] sm:$0xff]   ;;  %v1150_v19 = vld [vmem:[%s1532_s2 + $0xa0] sm:$0xff]   ;;  %v1154_v26 = vld [vmem:[%s1532_s2 + $0xa8] sm:$0xff]  }
   0x9   :  { %1052 = vmatpush3.bf16.msra.mxu1 %v1138_v7  ;;  %v1155_v27 = vld [vmem:[%s1532_s2 + $0x70] sm:$0xff]   ;;  %v1159_v33 = vld [vmem:[%s1532_s2 + $0x78] sm:$0xff]   ;;  %v40_v37 = vld [vmem:[%s1533_s0] sm:$0xff] }
   0xa   :  { %1053 = vmatprep.subr.bf16.mxu1 %v1141_v10  ;;  %v1156_v30 = vld [vmem:[%s1532_s2 + $0x30] sm:$0xff]   ;;  %v1160_v35 = vld [vmem:[%s1532_s2 + $0x38] sm:$0xff]   ;;  %v51_v38 = vrot.slane %v40_v37, %v50_v34  ;;  %v44_v40 = vcombine.high %v40_v37, %v40_v37  ;;  %v1163_v41 = vld [vmem:[%s1532_s2 + $0x140] sm:$0xff]  }
   0xb   :  { %1032 = vmatpush3.bf16.msra.mxu0 %v1140_v9  ;;  %v1157_v31 = vld [vmem:[%s1532_s2 + $0xf0] sm:$0xff]   ;;  %v1161_v36 = vld [vmem:[%s1532_s2 + $0xf8] sm:$0xff]   ;;  %v1165_v48 = vld [vmem:[%s1532_s2 + $0x100] sm:$0xff]  }
   0xc   :  { %1033 = vmatprep.subr.bf16.mxu0 %v1143_v12  ;;  %v1158_v32 = vld [vmem:[%s1532_s2 + $0xb0] sm:$0xff]   ;;  %v1162_v39 = vld [vmem:[%s1532_s2 + $0xb8] sm:$0xff]   ;;  %v59_v42 = vcombine.high %v51_v38, %v51_v38  ;;  %v58_v43 = vrot.slane %v44_v40, %v50_v34  ;;  %v75_v44 = vpack.c.bf16 %v51_v38, %v51_v38  ;;  %v1166_v50 = vld [vmem:[%s1532_s2 + $0x148] sm:$0xff]  }
   0xd   :  { %1054 = vmatpush3.bf16.msra.mxu1 %v1142_v11  ;;  %v1167_v52 = vld [vmem:[%s1532_s2 + $0x108] sm:$0xff]   ;;  %v1168_v53 = vld [vmem:[%s1532_s2 + $0x150] sm:$0xff]   ;;  %v1170_v55 = vld [vmem:[%s1532_s2 + $0x158] sm:$0xff]  }
   0xe   :  { %1055 = vmatprep.subr.bf16.mxu1 %v1145_v14  ;;  %v76_v46 = vpack.c.bf16 %v59_v42, %v59_v42  ;;  %v60_v47 = vcombine.high %v58_v43, %v58_v43  ;;  %v77_v49 = vpack.c.bf16 %v58_v43, %v58_v43  ;;  %v1169_v54 = vld [vmem:[%s1532_s2 + $0x110] sm:$0xff]   ;;  %v1171_v56 = vld [vmem:[%s1532_s2 + $0x118] sm:$0xff]   ;;  %v1172_v57 = vld [vmem:[%s1532_s2 + $0x160] sm:$0xff]  }
   0xf   :  { %1034 = vmatpush3.bf16.msra.mxu0 %v1144_v13  ;;  %v950_v58 = vld.sshfl [vmem:[%s1533_s0 + $0x8] sm:$0x33 pattern:$0x76325410]  ;;  %v1180_v59 = vld [vmem:[%s1534_s4] sm:$0xff]   ;;  %v1182_v1 = vld [vmem:[%s1534_s4 + $0x10] sm:$0xff]  }
  0x10   :  { %1035 = vmatprep.subr.bf16.mxu0 %v1147_v16  ;;  %504 = vmatprep.mubr.bf16.mxu0 %v76_v46  ;;  %v78_v51 = vpack.c.bf16 %v60_v47, %v60_v47  ;;  %v68_v60 = vcombine.high %v950_v58, %v950_v58  ;;  %v1181_v61 = vld [vmem:[%s1534_s4 + $0x8] sm:$0xff]   ;;  %v1173_v63 = vld [vmem:[%s1532_s2 + $0x120] sm:$0xff]   ;;  %v1176_v3 = vld [vmem:[%s1532_s2 + $0x170] sm:$0xff]   ;;  %v79_v13 = vpack.c.bf16 %v950_v58, %v950_v58 }
  0x11   :  { %1056 = vmatpush3.bf16.msra.mxu1 %v1146_v15  ;;  %v1174_v0 = vld [vmem:[%s1532_s2 + $0x168] sm:$0xff]   ;;  %v1183_v4 = vld [vmem:[%s1534_s4 + $0x18] sm:$0xff]   ;;  %v1177_v5 = vld [vmem:[%s1532_s2 + $0x130] sm:$0xff]  }
  0x12   :  { %1057 = vmatprep.subr.bf16.mxu1 %v1149_v18  ;;  %544 = vmatprep.mubr.bf16.mxu1 %v78_v51  ;;  %v80_v62 = vpack.c.bf16 %v68_v60, %v68_v60  ;;  %v1175_v2 = vld [vmem:[%s1532_s2 + $0x128] sm:$0xff]   ;;  %v1178_v6 = vld [vmem:[%s1532_s2 + $0x178] sm:$0xff]   ;;  %v1000_v7 = vld.sshfl [vmem:[%s1535_s1] sm:$0x33 pattern:$0x76325410] }
  0x13   :  { %1036 = vmatpush3.bf16.msra.mxu0 %v1148_v17  ;;  %v1184_v8 = vld [vmem:[%s1534_s4 + $0x20] sm:$0xff]   ;;  %v601_v9 = vcombine.high %v1000_v7, %v1000_v7  ;;  %v1179_v10 = vld [vmem:[%s1532_s2 + $0x138] sm:$0xff]   ;;  %v1185_v12 = vld [vmem:[%s1534_s4 + $0x28] sm:$0xff]  }
  0x14   :  { %1037 = vmatprep.subr.bf16.mxu0 %v1151_v20  ;;  %v1186_v14 = vld [vmem:[%s1534_s4 + $0x30] sm:$0xff]   ;;  %v1187_v15 = vld [vmem:[%s1534_s4 + $0x38] sm:$0xff]   ;;  %v1188_v16 = vld [vmem:[%s1534_s4 + $0x40] sm:$0xff]   ;;  %v604_v20 = vpack.c.bf16 %v1000_v7, %v1000_v7 }
  0x15   :  { %1058 = vmatpush3.bf16.msra.mxu1 %v1150_v19  ;;  %v605_v11 = vpack.c.bf16 %v601_v9, %v601_v9  ;;  %v1189_v17 = vld [vmem:[%s1534_s4 + $0x48] sm:$0xff]   ;;  %v1190_v18 = vld [vmem:[%s1534_s4 + $0x50] sm:$0xff]   ;;  %v1191_v19 = vld [vmem:[%s1534_s4 + $0x58] sm:$0xff]  }
  0x16   :  { %1059 = vmatprep.subr.bf16.mxu1 %v1153_v25  ;;  %v1192_v22 = vld [vmem:[%s1536_s6] sm:$0xff]   ;;  %v1193_v23 = vld [vmem:[%s1536_s6 + $0x8] sm:$0xff]   ;;  %v1195_v25 = vld [vmem:[%s1536_s6 + $0x18] sm:$0xff]  }
  0x17   :  { %1038 = vmatpush3.bf16.msra.mxu0 %v1152_v24  ;;  %v1194_v24 = vld [vmem:[%s1536_s6 + $0x10] sm:$0xff]   ;;  %v1197_v47 = vld [vmem:[%s1537_s8 + $0x8] sm:$0xff]  }
  0x18   :  { %1039 = vmatprep.subr.bf16.mxu0 %v1155_v27  ;;  %v951_v27 = vld [vmem:[%s1538_s3] ss:$0 sm:$0xff] }
  0x19   :  { %1060 = vmatpush3.bf16.msra.mxu1 %v1154_v26 }
  0x1a   :  { %1061 = vmatprep.subr.bf16.mxu1 %v1157_v31 }
  0x1b   :  { %1040 = vmatpush3.bf16.msra.mxu0 %v1156_v30 }
  0x1c   :  { %1041 = vmatprep.subr.bf16.mxu0 %v1159_v33 }
  0x1d   :  { %1062 = vmatpush3.bf16.msra.mxu1 %v1158_v32 }
  0x1e   :  { %1063 = vmatprep.subr.bf16.mxu1 %v1161_v36 }
  0x1f   :  { %1042 = vmatpush3.bf16.msra.mxu0 %v1160_v35 }
  0x20   :  { %1071 = vmatprep.subr.bf16.mxu0 %v1163_v41 }
  0x21   :  { %1064 = vmatpush3.bf16.msra.mxu1 %v1162_v39 }
  0x22   :  { %713 = vmatprep.subr.bf16.mxu1 %v1203_v45  ;;  %505 = vmatmul.mubr.bf16.vlgmr.msra.gmra.mrb[0].mxu0 %v75_v44 }
  0x23   :  { %1072 = vmatpush3.bf16.msra.mxu0 %v1165_v48  ;;  %584 = vmatprep.mubr.bf16.mxu0 %v80_v62  ;;  %v1198_v48 = vld [vmem:[%s1537_s8 + $0x10] sm:$0xff]  }
  0x24   :  { %545 = vmatmul.mubr.bf16.vlgmr.msra.gmra.mrb[0].mxu1 %v77_v49  ;;  %1073 = vmatprep.subr.bf16.mxu0 %v1166_v50  ;;  %v1001_v49 = vld [vmem:[%s1540_s5] ss:$0 sm:$0xff] }
  0x25   :  { %714 = vmatpush1.bf16.msra.mxu1 %v1180_v59  ;;  %1014 = vmatprep.mubr.msk.bf16.mxu1 %vm709_vm0, %v605_v11 }
  0x26   :  { %715 = vmatprep.subr.bf16.mxu1 %v1203_v45 }
  0x27   :  { %1074 = vmatpush3.bf16.msra.mxu0 %v1167_v52 }
  0x28   :  { %1075 = vmatprep.subr.bf16.mxu0 %v1168_v53 }
  0x29   :  { %716 = vmatpush1.bf16.msra.mxu1 %v1181_v61 }
  0x2a   :  { %717 = vmatprep.subr.bf16.mxu1 %v1203_v45 }
  0x2b   :  { %1076 = vmatpush3.bf16.msra.mxu0 %v1169_v54 }
  0x2c   :  { %1077 = vmatprep.subr.bf16.mxu0 %v1170_v55 }
  0x2d   :  { %718 = vmatpush1.bf16.msra.mxu1 %v1182_v1 }
  0x2e   :  { %719 = vmatprep.subr.bf16.mxu1 %v1203_v45 }
  0x2f   :  { %1078 = vmatpush3.bf16.msra.mxu0 %v1171_v56 }
  0x30   :  { %1079 = vmatprep.subr.bf16.mxu0 %v1172_v57  ;;  %v1199_v57 = vld [vmem:[%s1537_s8 + $0x18] ss:$0 sps:$4 sm:$0x33]  }
  0x31   :  { %720 = vmatpush1.bf16.msra.mxu1 %v1183_v4  ;;  %v886_v58 = vsel %vm884_vm3, %v1199_v57, 0 }
  0x32   :  { %721 = vmatprep.subr.bf16.mxu1 %v1203_v45 }
  0x33   :  { %1080 = vmatpush3.bf16.msra.mxu0 %v1173_v63  ;;  %v1015_v63 = vld [vmem:[%s1542_s7] ss:$0 sm:$0xff] }
  0x34   :  { %1081 = vmatprep.subr.bf16.mxu0 %v1174_v0 }
  0x35   :  { %722 = vmatpush1.bf16.msra.mxu1 %v1184_v8 }
  0x36   :  { %723 = vmatprep.subr.bf16.mxu1 %v1203_v45 }
  0x37   :  { %1082 = vmatpush3.bf16.msra.mxu0 %v1175_v2 }
  0x38   :  { %1083 = vmatprep.subr.bf16.mxu0 %v1176_v3 }
  0x39   :  { %724 = vmatpush1.bf16.msra.mxu1 %v1185_v12 }
  0x3a   :  { %725 = vmatprep.subr.bf16.mxu1 %v1203_v45 }
  0x3b   :  { %1084 = vmatpush3.bf16.msra.mxu0 %v1177_v5 }
  0x3c   :  { %1085 = vmatprep.subr.bf16.mxu0 %v1178_v6  ;;  %v1021_v6 = vld [vmem:[%s1544_s9] ss:$0 sm:$0xff] }
  0x3d   :  { %726 = vmatpush1.bf16.msra.mxu1 %v1186_v14 }
  0x3e   :  { %727 = vmatprep.subr.bf16.mxu1 %v1203_v45 }
  0x3f   :  { %1086 = vmatpush3.bf16.msra.mxu0 %v1179_v10 }
  0x40   :  { %1103 = vmatprep.subr.bf16.mxu0 %v1204_v21 }
  0x41   :  { %728 = vmatpush1.bf16.msra.mxu1 %v1187_v15 }
  0x42   :  { %585 = vmatmul.mubr.bf16.vlgmr.msra.gmra.mrb[4].mxu0 %v79_v13  ;;  %729 = vmatprep.subr.bf16.mxu1 %v1203_v45 }
  0x43   :  { %1104 = vmatpush3.bf16.msra.mxu0 %v1192_v22  ;;  %1111 = vmatprep.mubr.msk.bf16.mxu0 %vm1205_vm1, %v1204_v21 }
  0x44   :  { %1105 = vmatprep.subr.bf16.mxu0 %v1204_v21 }
  0x45   :  { %730 = vmatpush1.bf16.msra.mxu1 %v1188_v16 }
  0x46   :  { %731 = vmatprep.subr.bf16.mxu1 %v1203_v45 }
  0x47   :  { %1106 = vmatpush3.bf16.msra.mxu0 %v1193_v23 }
  0x48   :  { %1107 = vmatprep.subr.bf16.mxu0 %v1204_v21 }
  0x49   :  { %732 = vmatpush1.bf16.msra.mxu1 %v1189_v17 }
  0x4a   :  { %733 = vmatprep.subr.bf16.mxu1 %v1203_v45 }
  0x4b   :  { %1108 = vmatpush3.bf16.msra.mxu0 %v1194_v24 }
  0x4c   :  { %1109 = vmatprep.subr.bf16.mxu0 %v1204_v21 }
  0x4d   :  { %734 = vmatpush1.bf16.msra.mxu1 %v1190_v18 }
  0x4e   :  { %735 = vmatprep.subr.bf16.mxu1 %v1203_v45  ;;  %v1196_v45 = vld [vmem:[%s1537_s8] sm:$0xff]  }
  0x4f   :  { %1110 = vmatpush3.bf16.msra.mxu0 %v1195_v25 }
  0x50   :  { %1115 = vmatprep.subr.bf16.mxu0 %v1204_v21 }
  0x51   :  { %736 = vmatpush1.bf16.msra.mxu1 %v1191_v19 }
  0x54   :  { %746 = vmatmul.mubr.bf16.vlgmr.msra.gmra.mrb[4].mxu1 %v604_v20 }
  0xf5   :  { %v1043_v26 = vpop.f32.mrb[0].mxu0 }
  0xf6   :  { %v1044_v28 = vpop.f32.mrb[1].mxu0 }
  0xf7   :  { %v1045_v29 = vadd.f32 %v1044_v28, %v1043_v26  ;;  %v1046_v30 = vpop.f32.mrb[2].mxu0  ;;  %v1065_v31 = vpop.f32.mrb[0].mxu1 }
  0xf8   :  { %v1047_v32 = vpop.f32.mrb[3].mxu0  ;;  %v1066_v33 = vpop.f32.mrb[1].mxu1 }
  0xf9   :  { %v507_v34 = vadd.f32 %v1045_v29, %v951_v27  ;;  %v1067_v35 = vadd.f32 %v1066_v33, %v1065_v31  ;;  %v1068_v36 = vpop.f32.mrb[2].mxu1 }
  0xfa   :  { %v1069_v37 = vpop.f32.mrb[3].mxu1 }
  0xfb   :  { %v547_v38 = vadd.f32 %v1067_v35, %v507_v34 }
 0x115   :  { %v1087_v39 = vpop.f32.mrb[4].mxu0 }
 0x116   :  { %v1088_v40 = vpop.f32.mrb[5].mxu0 }
 0x117   :  { %v1089_v41 = vadd.f32 %v1088_v40, %v1087_v39  ;;  %v1090_v42 = vpop.f32.mrb[6].mxu0 }
 0x118   :  { %v1091_v43 = vpop.f32.mrb[7].mxu0 }
 0x119   :  { %v587_v44 = vadd.f32 %v1089_v41, %v547_v38 }
 0x11b   :  { %v761_v46 = vpack.c.bf16 %v587_v44, %v587_v44  ;;  %928 = vst.msk [vmem:[%s1539_s10] sm:$0x3] %vm754_vm2, %v587_v44 }
 0x11d   :  { %1112 = vmatmul.mubr.msk.bf16.vlgmr.msra.gmra.mrb[8].mxu0 %vm709_vm0, %v761_v46 }
 0x11e   :  { %1116 = vmatpush3.bf16.msra.mxu0 %v1196_v45  ;;  %1123 = vmatprep.mubr.msk.bf16.mxu0 %vm1205_vm1, %v1204_v21 }
 0x11f   :  { %1117 = vmatprep.subr.bf16.mxu0 %v1204_v21 }
 0x122   :  { %1118 = vmatpush3.bf16.msra.mxu0 %v1197_v47 }
 0x123   :  { %1119 = vmatprep.subr.bf16.mxu0 %v1204_v21 }
 0x126   :  { %1120 = vmatpush3.bf16.msra.mxu0 %v1198_v48 }
 0x127   :  { %1121 = vmatprep.subr.bf16.mxu0 %v1204_v21  ;;  %v747_v50 = vpop.f32.mrb[4].mxu1 }
 0x128   :  { %v748_v51 = vadd.f32 %v1001_v49, %v747_v50  ;;  %v749_v52 = vpop.f32.mrb[5].mxu1 }
 0x129   :  { %v750_v53 = vpop.f32.mrb[6].mxu1 }
 0x12a   :  { %v753_v54 = vmul.f32 %v748_v51, %v748_v51  ;;  %v751_v55 = vpop.f32.mrb[7].mxu1  ;;  %1122 = vmatpush3.bf16.msra.mxu0 %v886_v58 }
 0x12c   :  { %v755_v56 = vsel %vm754_vm2, %v753_v54, 0.0 }
 0x12d   :  { %756 = vadd.xlane.f32.xlu0 %v755_v56 }
 0x1ba   :  { %v757_v59 = vpop.xlane.xlu0 %756 }
 0x1bb   :  { %v758_v60 = vmax.f32 %v757_v59, 1e-24 }
 0x1bd   :  { %1200 = vrsqrt.f32 %v758_v60 }
 0x1c7   :  { %v1201_v61 = vpop.eup %1200 }
 0x1c8   :  { %v760_v62 = vmul.f32 %v1201_v61, %v748_v51 }
 0x1ca   :  { %929 = vst.msk [vmem:[%s1541_s11] sm:$0x3] %vm754_vm2, %v760_v62 }
 0x1f0   :  { %v838_v0 = vpop.f32.mrb[8].mxu0 }
 0x1f1   :  { %v839_v1 = vadd.f32 %v1015_v63, %v838_v0  ;;  %v1113_v2 = vpop.f32.mrb[9].mxu0 }
 0x1f2   :  { %v841_v3 = vpop.f32.mrb[10].mxu0 }
 0x1f3   :  { %v844_v4 = vpack.c.bf16 %v839_v1, %v839_v1  ;;  %931 = vst.msk [vmem:[%s1543_s12] sm:$0x3] %vm930_vm4, %v839_v1  ;;  %v1114_v5 = vpop.f32.mrb[11].mxu0 }
 0x1f5   :  { %1124 = vmatmul.mubr.msk.bf16.vlgmr.msra.gmra.mrb[12].mxu0 %vm880_vm5, %v844_v4 }
 0x2c8   :  { %v922_v7 = vpop.f32.mrb[12].mxu0 }
 0x2c9   :  { %v923_v8 = vadd.f32 %v1021_v6, %v922_v7  ;;  %v1125_v9 = vpop.f32.mrb[13].mxu0 }
 0x2ca   :  { %v925_v10 = vpop.f32.mrb[14].mxu0 }
 0x2cb   :  { %933 = vst.msk [vmem:[%s1545_s13] sm:$0x3] %vm932_vm6, %v923_v8  ;;  %v1126_v11 = vpop.f32.mrb[15].mxu0 }

// kernel: closed_call.3
= control target key start
LH: loop header
LB: loop body
LE: loop exit
PB: predicated region body
PF: predicated region fallthrough
CT: control target
= control target key end

     0   :  { %s3654_s17 = smov 0   ;;  %s4540_s0 = inlined_call_operand.vmem [shape: f32[2,56,64], index: 0, kind: input, shape index: {}]   ;;  %s4541_s1 = inlined_call_operand.vmem [shape: f32[2,1,64], index: 1, kind: input, shape index: {}]   ;;  %s4542_s2 = inlined_call_operand.vmem [shape: f32[56,128], index: 2, kind: input, shape index: {}]   ;;  %s4543_s3 = inlined_call_operand.vmem [shape: f32[56,128], index: 3, kind: input, shape index: {}]   ;;  %s4544_s4 = inlined_call_operand.vmem [shape: f32[1,64], index: 4, kind: input, shape index: {}]   ;;  %s4545_s5 = inlined_call_operand.vmem [shape: bf16[64,192], index: 5, kind: input, shape index: {}]   ;;  %s4546_s6 = inlined_call_operand.vmem [shape: bf16[64,64], index: 6, kind: input, shape index: {}]   ;;  %s4547_s7 = inlined_call_operand.vmem [shape: f32[1,64], index: 7, kind: input, shape index: {}]   ;;  %s4548_s8 = inlined_call_operand.vmem [shape: f32[1,64], index: 8, kind: input, shape index: {}]   ;;  %s4549_s9 = inlined_call_operand.vmem [shape: bf16[64,256], index: 9, kind: input, shape index: {}]   ;;  %s4550_s10 = inlined_call_operand.vmem [shape: bf16[128,64], index: 10, kind: input, shape index: {}]   ;;  %s4551_s11 = inlined_call_operand.vmem [shape: f32[2,56,64], index: 11, kind: output, shape index: {}]  }
   0x1 LB: > { %s2853_s18 = sadd.s32 4294967295, %s3580_s17   ;;  %p2857_p0 = scmp.ge.s32.totalorder %s3580_s17, 1  ;;  %s3580_s17 = sphi %s3654_s17, %s21_s17  }
   0x2   : > { %p345_p1 = scmp.lt.s32.totalorder %s3580_s17, 3 }
   0x4   : > { %p346_p2 = pnand %p2857_p0, %p345_p1 }
   0x5   : > { %p388_p3 = scmp.lt.s32.totalorder (!%p346_p2), %s2853_s18, 1  ;;  %vm416_vm0 = vcmask (!%p346_p2), 523264   ;;  %v3356_v21 = vld [vmem:[%s4545_s5 + $0x4] ss:$8 sps:$4 sm:$0xff] (!%p346_p2)   ;;  %v3358_v22 = vld [vmem:[%s4545_s5] ss:$8 sps:$4 sm:$0xff] (!%p346_p2)  }
   0x6   : > { %349 = sbr.rel (%p346_p2) target bundleno = 3554 (0xde2), region = 64  ;;  %545 = vmatprep.subr.bf16.mxu0 (!%p346_p2), %v3356_v21  ;;  %v3359_v23 = vld [vmem:[%s4545_s5 + $0x4] ss:$8 sps:$4 sm:$0xff] (!%p346_p2)   ;;  %v3360_v24 = vld [vmem:[%s4545_s5 + $0x14] ss:$8 sps:$4 sm:$0xff] (!%p346_p2)   ;;  %v3582_v25 = vmov (!%p346_p2), 0.0  }
   0x7   : > { %546 = vmatpush1.bf16.msra.mxu0 (!%p346_p2), %v3358_v22  ;;  %3067 = vmatprep.subr.bf16.mxu1 (!%p346_p2), %v3582_v25  ;;  %v3362_v26 = vld [vmem:[%s4545_s5 + $0x10] ss:$8 sps:$4 sm:$0xff] (!%p346_p2)   ;;  %v3363_v27 = vld [vmem:[%s4545_s5 + $0x14] ss:$8 sps:$4 sm:$0xff] (!%p346_p2)   ;;  %v3364_v28 = vld [vmem:[%s4545_s5 + $0x24] ss:$8 sps:$4 sm:$0xff] (!%p346_p2)  }
   0x8   : > { %3068 = vmatpush3.bf16.msra.mxu1 (!%p346_p2), %v3359_v23  ;;  %547 = vmatprep.subr.bf16.mxu0 (!%p346_p2), %v3360_v24  ;;  %v3366_v29 = vld [vmem:[%s4545_s5 + $0x20] ss:$8 sps:$4 sm:$0xff] (!%p346_p2)   ;;  %v3367_v30 = vld [vmem:[%s4545_s5 + $0x24] ss:$8 sps:$4 sm:$0xff] (!%p346_p2)   ;;  %v3368_v31 = vld [vmem:[%s4545_s5 + $0x34] ss:$8 sps:$4 sm:$0xff] (!%p346_p2)  }
   0x9   : > { %3069 = vmatprep.subr.bf16.mxu1 (!%p346_p2), %v3582_v25  ;;  %v3583_v32 = vmov (!%p346_p2), 0   ;;  %v3370_v33 = vld [vmem:[%s4545_s5 + $0x30] ss:$8 sps:$4 sm:$0xff] (!%p346_p2)   ;;  %v3371_v34 = vld [vmem:[%s4545_s5 + $0x34] ss:$8 sps:$4 sm:$0xff] (!%p346_p2)   ;;  %vm3584_vm1 = vmmov (!%p346_p2), 0  }
   0xa   : > { %577 = vmatprep.mubr.bf16.mxu0 (!%p346_p2), %v3583_v32  ;;  %3075 = vmatprep.mubr.msk.bf16.mxu1 (!%p346_p2), %vm3584_vm1, %v3582_v25  ;;  %v3766_v37 = vld [vmem:[%s4546_s6] sm:$0xff] (!%p346_p2)   ;;  %v3373_v38 = vld [vmem:[%s4546_s6 + $0x8] sm:$0xff] (!%p346_p2)   ;;  %v3374_v39 = vld [vmem:[%s4546_s6 + $0x10] sm:$0xff] (!%p346_p2)   ;;  %s3585_s13 = smov (!%p346_p2), 127   ;;  %s3586_s14 = smov (!%p346_p2), 1   ;;  %vm1084_vm2 = vcmask (!%p346_p2), 1043456  }
   0xb   : > { %548 = vmatpush1.bf16.msra.mxu0 (!%p346_p2), %v3362_v26  ;;  %v2860_v63 = vld [vmem:[%s4544_s4] ss:$0 sm:$0xff] (!%p346_p2)  ;;  %vm887_vm4 = vcmask (!%p346_p2), 130048   ;;  %s3587_s16 = smov (!%p346_p2), 64   ;;  %vm990_vm8 = vcmask (!%p346_p2), 457728   ;;  %s3591_s20 = smov (!%p346_p2), 96  }
   0xc   : > { %3070 = vmatpush3.bf16.msra.mxu1 (!%p346_p2), %v3363_v27  ;;  %549 = vmatprep.subr.bf16.mxu0 (!%p346_p2), %v3364_v28  ;;  %v797_v27 = vld [vmem:[%s4547_s7] sm:$0x1] (!%p346_p2)  ;;  %s3592_s21 = smov (!%p346_p2), 16   ;;  %s3593_s23 = smov (!%p346_p2), 80  }
   0xd   : > { %s4555_s18 = smov (!%p388_p3, %s2853_s18), 1  ;;  %3071 = vmatprep.subr.bf16.mxu1 %v3582_v25 }
   0xe   : > { %s3335_s19 = smul.u32 56, %s4555_s18  ;;  %s395_s15 = scalar_lea.vmem %s4541_s1, %s4555_s18 }
   0xf   : > { %550 = vmatpush1.bf16.msra.mxu0 %v3366_v29  ;;  %v712_v35 = vld [vmem:[%s395_s15] sm:$0x1]  ;;  %s3589_s15 = smov 112  }
  0x10   : > { %s3670_s22 = scalar_lea.vmem %s4540_s0, %s3335_s19  ;;  %3072 = vmatpush3.bf16.msra.mxu1 %v3367_v30  ;;  %551 = vmatprep.subr.bf16.mxu0 %v3368_v31  ;;  %v713_v36 = vpack.c.bf16 %v712_v35, %v712_v35 }
  0x11   : > { %v3673_v0 = vld [vmem:[%s3670_s22] sm:$0xff]  ;;  %v3676_v1 = vld [vmem:[%s3670_s22 + $0x8] sm:$0xff]  ;;  %v3679_v2 = vld [vmem:[%s3670_s22 + $0x10] sm:$0xff]  ;;  %3073 = vmatprep.subr.bf16.mxu1 %v3582_v25 }
  0x12   : > { %v409_v3 = vmul.f32 %v3673_v0, %v3673_v0  ;;  %v410_v4 = vmul.f32 %v3676_v1, %v3676_v1  ;;  %v411_v5 = vmul.f32 %v3679_v2, %v3679_v2  ;;  %v3688_v6 = vld [vmem:[%s3670_s22 + $0x18] sm:$0xff]  ;;  %v3691_v7 = vld [vmem:[%s3670_s22 + $0x28] sm:$0xff]  ;;  %v3694_v8 = vld [vmem:[%s3670_s22 + $0x20] sm:$0xff] }
  0x13   : > { %v412_v9 = vmul.f32 %v3688_v6, %v3688_v6  ;;  %v414_v10 = vmul.f32 %v3691_v7, %v3691_v7  ;;  %v413_v11 = vmul.f32 %v3694_v8, %v3694_v8  ;;  %v3705_v14 = vld [vmem:[%s3670_s22 + $0x30] sm:$0xff]  ;;  %552 = vmatpush1.bf16.msra.mxu0 %v3370_v33 }
  0x14   : > { %v417_v12 = vsel %vm416_vm0, %v409_v3, 0.0  ;;  %v423_v13 = vsel %vm416_vm0, %v411_v5, 0.0  ;;  %v420_v15 = vsel %vm416_vm0, %v410_v4, 0.0  ;;  %v415_v19 = vmul.f32 %v3705_v14, %v3705_v14  ;;  %3074 = vmatpush3.bf16.msra.mxu1 %v3371_v34 }
  0x15   : > { %418 = vadd.xlane.f32.xlu0 %v417_v12  ;;  %424 = vadd.xlane.f32.xlu1 %v423_v13  ;;  %v426_v16 = vsel %vm416_vm0, %v412_v9, 0.0  ;;  %v432_v17 = vsel %vm416_vm0, %v414_v10, 0.0  ;;  %v429_v18 = vsel %vm416_vm0, %v413_v11, 0.0 }
  0x16   : > { %v435_v20 = vsel %vm416_vm0, %v415_v19, 0.0  ;;  %3079 = vmatprep.subr.bf16.mxu1 %v3582_v25 }
  0x17   : > { %3076 = vmatmul.mubr.msk.bf16.vlgmr.msra.gmra.mrb[0].mxu1 %vm416_vm0, %v713_v36 }
  0x18   : > { %3087 = vmatprep.mubr.msk.bf16.mxu1 %vm3584_vm1, %v3582_v25  ;;  %3080 = vmatpush3.bf16.msra.mxu1 %v3766_v37 }
  0x19   : > { %421 = vadd.xlane.f32.xlu0 %v420_v15  ;;  %427 = vadd.xlane.f32.xlu1 %v426_v16 }
  0x1a   : > { %3081 = vmatprep.subr.bf16.mxu1 %v3582_v25 }
  0x1c   : > { %3082 = vmatpush3.bf16.msra.mxu1 %v3373_v38 }
  0x1d   : > { %433 = vadd.xlane.f32.xlu1 %v432_v17  ;;  %430 = vadd.xlane.f32.xlu0 %v429_v18 }
  0x1e   : > { %3083 = vmatprep.subr.bf16.mxu1 %v3582_v25 }
  0x20   : > { %3084 = vmatpush3.bf16.msra.mxu1 %v3374_v39 }
  0x21   : > { %436 = vadd.xlane.f32.xlu0 %v435_v20  ;;  %3085 = vmatprep.subr.bf16.mxu1 %v3582_v25 }
  0xa2   : > { %v419_v40 = vpop.xlane.xlu0 %418  ;;  %v425_v41 = vpop.xlane.xlu1 %424 }
  0xa3   : > { %v439_v42 = vmul.f32 0.015625, %v419_v40  ;;  %v441_v43 = vmul.f32 0.015625, %v425_v41 }
  0xa5   : > { %v446_v44 = vadd.f32 1e-05, %v439_v42  ;;  %v448_v49 = vadd.f32 1e-05, %v441_v43 }
  0xa6   : > { %v422_v45 = vpop.xlane.xlu0 %421  ;;  %v428_v46 = vpop.xlane.xlu1 %427 }
  0xa7   : > { %3396 = vrsqrt.f32 %v446_v44  ;;  %v440_v47 = vmul.f32 0.015625, %v422_v45  ;;  %v442_v48 = vmul.f32 0.015625, %v428_v46 }
  0xa9   : > { %v447_v50 = vadd.f32 1e-05, %v440_v47  ;;  %v449_v51 = vadd.f32 1e-05, %v442_v48 }
  0xaa   : > { %v434_v52 = vpop.xlane.xlu1 %433  ;;  %v431_v53 = vpop.xlane.xlu0 %430 }
  0xab   : > { %3398 = vrsqrt.f32 %v447_v50  ;;  %v444_v54 = vmul.f32 0.015625, %v434_v52  ;;  %v443_v55 = vmul.f32 0.015625, %v431_v53 }
  0xac   : > { %3400 = vrsqrt.f32 %v448_v49 }
  0xad   : > { %3402 = vrsqrt.f32 %v449_v51  ;;  %v451_v56 = vadd.f32 1e-05, %v444_v54  ;;  %v450_v57 = vadd.f32 1e-05, %v443_v55  ;;  %v616_v55 = vlaneseq }
  0xae   : > { %v437_v58 = vpop.xlane.xlu0 %436 }
  0xaf   : > { %3404 = vrsqrt.f32 %v451_v56  ;;  %v445_v60 = vmul.f32 0.015625, %v437_v58  ;;  %v3855_v56 = vand.u32 127, %v616_v55 }
  0xb0   : > { %3406 = vrsqrt.f32 %v450_v57 }
  0xb1   : > { %v3397_v59 = vpop.eup %3396  ;;  %v452_v9 = vadd.f32 1e-05, %v445_v60  ;;  %v618_v57 = vand.u32 1, %v3855_v56 }
  0xb2   : > { %v460_v61 = vmul.f32 %v3397_v59, %v3673_v0 }
  0xb3   : > { %3408 = vrsqrt.f32 %v452_v9  ;;  %vm3858_vm3 = vcmp.eq.s32.totalorder %v618_v57, 0  ;;  %v675_v57 = vld [vmem:[%s4543_s3 + $0x30] sm:$0xff] }
  0xb4   : > { %v474_v10 = vmul.f32 %v2860_v63, %v460_v61  ;;  %v669_v61 = vld [vmem:[%s4543_s3] sm:$0xff] }
  0xb5   : > { %v3399_v62 = vpop.eup %3398 }
  0xb6   : > { %v3401_v3 = vpop.eup %3400  ;;  %v461_v4 = vmul.f32 %v3399_v62, %v3676_v1 }
  0xb7   : > { %v3403_v5 = vpop.eup %3402  ;;  %v462_v13 = vmul.f32 %v3401_v3, %v3679_v2  ;;  %v655_v3 = vld [vmem:[%s4542_s2] sm:$0xff] }
  0xb8   : > { %v475_v11 = vmul.f32 %v2860_v63, %v461_v4  ;;  %v463_v15 = vmul.f32 %v3403_v5, %v3688_v6  ;;  %v656_v4 = vld [vmem:[%s4542_s2 + $0x8] sm:$0xff] }
  0xb9   : > { %v3405_v16 = vpop.eup %3404  ;;  %v476_v17 = vmul.f32 %v2860_v63, %v462_v13  ;;  %v670_v5 = vld [vmem:[%s4543_s3 + $0x8] sm:$0xff] }
  0xba   : > { %v481_v12 = vpack.c.bf16 %v475_v11, %v474_v10  ;;  %v3407_v0 = vpop.eup %3406  ;;  %v477_v18 = vmul.f32 %v2860_v63, %v463_v15  ;;  %v465_v19 = vmul.f32 %v3405_v16, %v3691_v7  ;;  %v3375_v7 = vld [vmem:[%s4546_s6 + $0x18] sm:$0xff]  }
  0xbb   : > { %v464_v1 = vmul.f32 %v3407_v0, %v3694_v8  ;;  %3086 = vmatpush3.bf16.msra.mxu1 %v3375_v7 }
  0xbc   : > { %2869 = vmatmul.mubr.msk.bf16.vlgmr.msra.gmra.mrb[0].mxu0 %vm416_vm0, %v481_v12  ;;  %v482_v20 = vpack.c.bf16 %v477_v18, %v476_v17  ;;  %v479_v2 = vmul.f32 %v2860_v63, %v465_v19 }
  0xbd   : > { %587 = vmatprep.mubr.bf16.mxu0 %v3583_v32  ;;  %v478_v21 = vmul.f32 %v2860_v63, %v464_v1  ;;  %v3409_v22 = vpop.eup %3408  ;;  %v672_v1 = vld [vmem:[%s4543_s3 + $0x18] sm:$0xff] }
  0xbe   : > { %v466_v23 = vmul.f32 %v3409_v22, %v3705_v14 }
  0xbf   : > { %v483_v6 = vpack.c.bf16 %v479_v2, %v478_v21  ;;  %v657_v21 = vld [vmem:[%s4542_s2 + $0x10] sm:$0xff]  ;;  %v658_v2 = vld [vmem:[%s4542_s2 + $0x18] sm:$0xff] }
  0xc0   : > { %v480_v24 = vmul.f32 %v2860_v63, %v466_v23 }
  0xc2   : > { %v484_v26 = vpack.c.bf16 %v480_v24, %v480_v24 }
  0xc4   : > { %2870 = vmatmul.mubr.msk.bf16.gmra.mrb[4].mxu0 %vm416_vm0, %v482_v20 }
  0xc5   : > { %597 = vmatprep.mubr.bf16.mxu0 %v3583_v32 }
  0xcc   : > { %2871 = vmatmul.mubr.msk.bf16.gmra.mrb[8].mxu0 %vm416_vm0, %v483_v6  ;;  %v671_v6 = vld [vmem:[%s4543_s3 + $0x10] sm:$0xff] }
  0xcd   : > { %607 = vmatprep.mubr.bf16.mxu0 %v3583_v32 }
  0xd4   : > { %2872 = vmatmul.mubr.msk.bf16.gmra.mrb[12].mxu0 %vm416_vm0, %v484_v26 }
  0xea   : > { %v783_v8 = vpop.f32.mrb[0].mxu1 }
  0xeb   : > { %v798_v28 = vmul.f32 %v797_v27, %v783_v8  ;;  %v3077_v14 = vpop.f32.mrb[1].mxu1 }
  0xec   : > { %v786_v29 = vpop.f32.mrb[2].mxu1 }
  0xed   : > { %v799_v30 = vpack.c.bf16 %v798_v28, %v798_v28  ;;  %v3078_v31 = vpop.f32.mrb[3].mxu1 }
  0xee   : > { %v674_v31 = vld [vmem:[%s4543_s3 + $0x28] sm:$0xff] }
  0xef   : > { %3088 = vmatmul.mubr.msk.bf16.vlgmr.msra.gmra.mrb[4].mxu1 %vm416_vm0, %v799_v30 }
 0x18f   : > { %v579_v33 = vpop.f32.mrb[0].mxu0 }
 0x190   : > { %620 = vrot.lane.b32.xlu1 %v579_v33, %s3585_s13  ;;  %v581_v34 = vpop.f32.mrb[1].mxu0  ;;  %v662_v12 = vmul.f32 %v655_v3, %v579_v33 }
 0x191   : > { %v583_v35 = vpop.f32.mrb[2].mxu0 }
 0x192   : > { %622 = vrot.lane.b32.xlu0 %v583_v35, %s3585_s13  ;;  %v585_v36 = vpop.f32.mrb[3].mxu0  ;;  %v663_v13 = vmul.f32 %v656_v4, %v583_v35 }
 0x193   : > { %v3804_v38 = vpack.c.bf16 %v585_v36, %v581_v34  ;;  %v660_v36 = vld [vmem:[%s4542_s2 + $0x28] sm:$0xff] }
 0x194   : > { %634 = vrot.lane.b32.xlu1 %v579_v33, %s3586_s14 }
 0x195   : > { %3107 = vmatprep.subr.bf16.mxu1 %v3804_v38 }
 0x196   : > { %3108 = vmatpush3.bf16.msra.mxu1 %v3804_v38 }
 0x197   : > { %v3809_v39 = vpop.f32.mrb[4].mxu0 }
 0x198   : > { %636 = vrot.lane.b32.xlu1 %v583_v35, %s3586_s14  ;;  %v591_v40 = vpop.f32.mrb[5].mxu0  ;;  %v664_v7 = vmul.f32 %v657_v21, %v3809_v39  ;;  %v659_v35 = vld [vmem:[%s4542_s2 + $0x20] sm:$0xff] }
 0x199   : > { %v3812_v41 = vpop.f32.mrb[6].mxu0 }
 0x19a   : > { %626 = vrot.lane.b32.xlu0 %v3812_v41, %s3585_s13  ;;  %v595_v42 = vpop.f32.mrb[7].mxu0  ;;  %v665_v8 = vmul.f32 %v658_v2, %v3812_v41 }
 0x19b   : > { %v3816_v43 = vpack.c.bf16 %v595_v42, %v591_v40  ;;  %v673_v40 = vld [vmem:[%s4543_s3 + $0x20] sm:$0xff] }
 0x19c   : > { %624 = vrot.lane.b32.xlu1 %v3809_v39, %s3585_s13 }
 0x19d   : > { %3109 = vmatprep.subr.bf16.mxu1 %v3816_v43 }
 0x19e   : > { %640 = vrot.lane.b32.xlu0 %v3812_v41, %s3586_s14  ;;  %3110 = vmatpush3.bf16.msra.mxu1 %v3816_v43 }
 0x19f   : > { %v3824_v44 = vpop.f32.mrb[8].mxu0 }
 0x1a0   : > { %638 = vrot.lane.b32.xlu1 %v3809_v39, %s3586_s14  ;;  %v601_v45 = vpop.f32.mrb[9].mxu0 }
 0x1a1   : > { %v3828_v46 = vpop.f32.mrb[10].mxu0 }
 0x1a2   : > { %630 = vrot.lane.b32.xlu0 %v3828_v46, %s3585_s13  ;;  %v605_v47 = vpop.f32.mrb[11].mxu0 }
 0x1a3   : > { %v3832_v48 = vpack.c.bf16 %v605_v47, %v601_v45  ;;  %v666_v47 = vmul.f32 %v659_v35, %v3824_v44 }
 0x1a4   : > { %628 = vrot.lane.b32.xlu1 %v3824_v44, %s3585_s13 }
 0x1a5   : > { %3111 = vmatprep.subr.bf16.mxu1 %v3832_v48 }
 0x1a6   : > { %644 = vrot.lane.b32.xlu0 %v3828_v46, %s3586_s14  ;;  %3112 = vmatpush3.bf16.msra.mxu1 %v3832_v48 }
 0x1a7   : > { %v3840_v49 = vpop.f32.mrb[12].mxu0 }
 0x1a8   : > { %642 = vrot.lane.b32.xlu1 %v3824_v44, %s3586_s14  ;;  %v611_v50 = vpop.f32.mrb[13].mxu0 }
 0x1a9   : > { %v3844_v51 = vpack.c.bf16 %v611_v50, %v611_v50  ;;  %v613_v52 = vpop.f32.mrb[14].mxu0  ;;  %v667_v50 = vmul.f32 %v660_v36, %v3828_v46 }
 0x1aa   : > { %646 = vrot.lane.b32.xlu0 %v3840_v49, %s3586_s14  ;;  %v614_v53 = vpop.f32.mrb[15].mxu0  ;;  %s3588_s14 = smov 48  }
 0x1ab   : > { %3319 = vmatprep.subr.msk.bf16.mxu1 %vm1084_vm2, %v3844_v51  ;;  %v1086_v54 = vsel %vm1084_vm2, %v3844_v51, 0 }
 0x1ac   : > { %632 = vrot.lane.b32.xlu1 %v3840_v49, %s3585_s13  ;;  %3114 = vmatpush3.bf16.msra.mxu1 %v1086_v54  ;;  %v661_v54 = vld [vmem:[%s4542_s2 + $0x30] sm:$0xff] }
 0x1ad   : > { %v668_v44 = vmul.f32 %v661_v54, %v3840_v49 }
 0x202   : > { %v621_v58 = vpop.permute.xlu1 %620 }
 0x204   : > { %v623_v63 = vpop.permute.xlu0 %622 }
 0x206   : > { %v635_v60 = vpop.permute.xlu1 %634 }
 0x207   : > { %v648_v62 = vsel %vm3858_vm3, %v621_v58, %v635_v60 }
 0x208   : > { %v676_v9 = vmul.f32 %v669_v61, %v648_v62 }
 0x20a   : > { %v637_v10 = vpop.permute.xlu1 %636  ;;  %v683_v0 = vadd.f32 %v676_v9, %v662_v12 }
 0x20b   : > { %v649_v11 = vsel %vm3858_vm3, %v623_v63, %v637_v10 }
 0x20c   : > { %v677_v15 = vmul.f32 %v670_v5, %v649_v11  ;;  %v627_v16 = vpop.permute.xlu0 %626 }
 0x20e   : > { %v684_v17 = vadd.f32 %v677_v15, %v663_v13  ;;  %v625_v18 = vpop.permute.xlu1 %624  ;;  %v3958_v15 = vshrl.u32 %v616_v55, 7 }
 0x210   : > { %v3881_v19 = vpack.c.bf16 %v684_v17, %v683_v0  ;;  %v641_v20 = vpop.permute.xlu0 %640  ;;  %v692_v0 = vadd.s32 8, %v3958_v15  ;;  %vm698_vm6 = vcmp.gt.s32.totalorder %v3855_v56, %v3958_v15  ;;  %v694_v17 = vadd.s32 24, %v3958_v15 }
 0x211   : > { %v651_v22 = vsel %vm3858_vm3, %v627_v16, %v641_v20  ;;  %v693_v16 = vadd.s32 16, %v3958_v15  ;;  %v3971_v20 = vsel %vm698_vm6, -1e+30, %v3582_v25 }
 0x212   : > { %v679_v23 = vmul.f32 %v672_v1, %v651_v22  ;;  %v639_v24 = vpop.permute.xlu1 %638  ;;  %879 = vrot.lane.b32.xlu1 %v3881_v19, %s3587_s16  ;;  %3099 = vmatprep.mubr.msk.bf16.mxu0 %vm887_vm4, %v3881_v19  ;;  %vm699_vm7 = vcmp.gt.s32.totalorder %v3855_v56, %v692_v0  ;;  %v695_v22 = vadd.s32 32, %v3958_v15  ;;  %vm701_vm9 = vcmp.gt.s32.totalorder %v3855_v56, %v694_v17 }
 0x213   : > { %v650_v26 = vsel %vm3858_vm3, %v625_v18, %v639_v24  ;;  %vm700_vm5 = vcmp.gt.s32.totalorder %v3855_v56, %v693_v16  ;;  %v3976_v24 = vsel %vm699_vm7, -1e+30, %v3582_v25 }
 0x214   : > { %v678_v27 = vmul.f32 %v671_v6, %v650_v26  ;;  %v631_v28 = vpop.permute.xlu0 %630  ;;  %v686_v14 = vadd.f32 %v679_v23, %v665_v8  ;;  %v696_v8 = vadd.s32 40, %v3958_v15  ;;  %vm702_vm10 = vcmp.gt.s32.totalorder %v3855_v56, %v695_v22 }
 0x216   : > { %v685_v29 = vadd.f32 %v678_v27, %v664_v7  ;;  %v629_v30 = vpop.permute.xlu1 %628  ;;  %v697_v27 = vadd.s32 48, %v3958_v15  ;;  %vm703_vm11 = vcmp.gt.s32.totalorder %v3855_v56, %v696_v8 }
 0x218   : > { %v3905_v33 = vpack.c.bf16 %v686_v14, %v685_v29  ;;  %v645_v34 = vpop.permute.xlu0 %644  ;;  %vm704_vm12 = vcmp.gt.s32.totalorder %v3855_v56, %v697_v27 }
 0x219   : > { %v653_v39 = vsel %vm3858_vm3, %v631_v28, %v645_v34 }
 0x21a   : > { %v681_v41 = vmul.f32 %v674_v31, %v653_v39  ;;  %v643_v42 = vpop.permute.xlu1 %642  ;;  %881 = vrot.lane.b32.xlu0 %v3905_v33, %s3587_s16  ;;  %v3986_v31 = vsel %vm701_vm9, -1e+30, %v3582_v25 }
 0x21b   : > { %v652_v45 = vsel %vm3858_vm3, %v629_v30, %v643_v42 }
 0x21c   : > { %v680_v52 = vmul.f32 %v673_v40, %v652_v45  ;;  %v647_v53 = vpop.permute.xlu0 %646  ;;  %v688_v58 = vadd.f32 %v681_v41, %v667_v50  ;;  %v3994_v40 = vsel %vm702_vm10, -1e+30, %v3582_v25  ;;  %v3997_v50 = vsel %vm703_vm11, -1e+30, %v3582_v25 }
 0x21e   : > { %v687_v60 = vadd.f32 %v680_v52, %v666_v47  ;;  %v633_v61 = vpop.permute.xlu1 %632  ;;  %v4000_v52 = vsel %vm704_vm12, -1e+30, %v3582_v25 }
 0x21f   : > { %v654_v62 = vsel %vm3858_vm3, %v633_v61, %v647_v53 }
 0x220   : > { %v3933_v63 = vpack.c.bf16 %v688_v58, %v687_v60  ;;  %v682_v46 = vmul.f32 %v675_v57, %v654_v62 }
 0x222   : > { %v689_v3 = vadd.f32 %v682_v46, %v668_v44  ;;  %883 = vrot.lane.b32.xlu1 %v3933_v63, %s3587_s16 }
 0x224   : > { %v3937_v4 = vpack.c.bf16 %v689_v3, %v689_v3 }
 0x226   : > { %885 = vrot.lane.b32.xlu0 %v3937_v4, %s3587_s16  ;;  %s3590_s16 = smov 32  }
 0x284   : > { %v880_v5 = vpop.permute.xlu1 %879 }
 0x285   : > { %3315 = vmatprep.subr.msk.bf16.mxu0 %vm887_vm4, %v880_v5  ;;  %v901_v59 = vsel %vm887_vm4, %v880_v5, 0 }
 0x286   : > { %3092 = vmatpush3.bf16.xpose.msra.mxu0 %v901_v59 }
 0x28c   : > { %v882_v9 = vpop.permute.xlu0 %881 }
 0x28d   : > { %3316 = vmatprep.subr.msk.bf16.mxu0 %vm887_vm4, %v882_v9  ;;  %v904_v49 = vsel %vm887_vm4, %v882_v9, 0 }
 0x28e   : > { %3094 = vmatpush3.bf16.xpose.msra.mxu0 %v904_v49 }
 0x294   : > { %v884_v10 = vpop.permute.xlu1 %883 }
 0x295   : > { %3317 = vmatprep.subr.msk.bf16.mxu0 %vm887_vm4, %v884_v10  ;;  %v907_v11 = vsel %vm887_vm4, %v884_v10, 0 }
 0x296   : > { %3096 = vmatpush3.bf16.xpose.msra.mxu0 %v907_v11 }
 0x298   : > { %v886_v12 = vpop.permute.xlu0 %885 }
 0x299   : > { %3318 = vmatprep.subr.msk.bf16.mxu0 %vm887_vm4, %v886_v12  ;;  %v910_v13 = vsel %vm887_vm4, %v886_v12, 0 }
 0x29e   : > { %3098 = vmatpush3.bf16.xpose.msra.mxu0 %v910_v13 }
 0x29f   : > { %3123 = vmatprep.subr.bf16.mxu0 %v3766_v37 }
 0x2a5   : > { %3100 = vmatmul.mubr.msk.bf16.vlgmr.msra.gmra.mrb[16].mxu0 %vm887_vm4, %v3905_v33 }
 0x2a6   : > { %3103 = vmatprep.mubr.msk.bf16.mxu0 %vm887_vm4, %v3933_v63  ;;  %3124 = vmatpush3.bf16.msra.mxu0 %v3766_v37  ;;  %v3967_v37 = vsel %vm700_vm5, -1e+30, %v3582_v25 }
 0x2ad   : > { %3104 = vmatmul.mubr.msk.bf16.gmra.mrb[20].mxu0 %vm887_vm4, %v3937_v4 }
 0x378   : > { %v3101_v18 = vpop.f32.mrb[16].mxu0 }
 0x379   : > { %v978_v1 = vmul.f32 0.25, %v3101_v18  ;;  %v946_v55 = vpop.f32.mrb[17].mxu0 }
 0x37a   : > { %v976_v21 = vmul.f32 0.25, %v946_v55  ;;  %v3102_v2 = vpop.f32.mrb[18].mxu0 }
 0x37b   : > { %v949_v6 = vpop.f32.mrb[19].mxu0  ;;  %v985_v23 = vadd.f32 %v978_v1, %v3967_v37  ;;  %v979_v28 = vmul.f32 0.25, %v3102_v2 }
 0x37c   : > { %v977_v26 = vmul.f32 0.25, %v949_v6  ;;  %v983_v7 = vadd.f32 %v976_v21, %v3971_v20 }
 0x37d   : > { %v997_v14 = vsel %vm990_vm8, %v985_v23, -inf  ;;  %v986_v39 = vadd.f32 %v979_v28, %v3986_v31 }
 0x37e   : > { %998 = vmax.xlane.f32.xlu0 %v997_v14  ;;  %v991_v29 = vsel %vm990_vm8, %v983_v7, -inf  ;;  %v984_v30 = vadd.f32 %v977_v26, %v3976_v24 }
 0x37f   : > { %992 = vmax.xlane.f32.xlu1 %v991_v29  ;;  %v1000_v54 = vsel %vm990_vm8, %v986_v39, -inf }
 0x380   : > { %v3105_v34 = vpop.f32.mrb[20].mxu0  ;;  %v994_v35 = vsel %vm990_vm8, %v984_v30, -inf }
 0x381   : > { %v962_v36 = vpop.f32.mrb[21].mxu0  ;;  %v982_v41 = vmul.f32 0.25, %v3105_v34 }
 0x382   : > { %v980_v42 = vmul.f32 0.25, %v962_v36  ;;  %995 = vmax.xlane.f32.xlu0 %v994_v35  ;;  %v3106_v45 = vpop.f32.mrb[22].mxu0 }
 0x383   : > { %v965_v47 = vpop.f32.mrb[23].mxu0  ;;  %v989_v60 = vadd.f32 %v982_v41, %v4000_v52  ;;  %v4060_v45 = vpop.f32.mrb[4].mxu1 }
 0x384   : > { %v981_v53 = vmul.f32 0.25, %v965_v47  ;;  %v987_v56 = vadd.f32 %v980_v42, %v3994_v40  ;;  %v3089_v47 = vpop.f32.mrb[5].mxu1 }
 0x385   : > { %v1009_v62 = vsel %vm990_vm8, %v989_v60, -inf }
 0x386   : > { %1001 = vmax.xlane.f32.xlu0 %v1000_v54  ;;  %v1003_v57 = vsel %vm990_vm8, %v987_v56, -inf  ;;  %v988_v58 = vadd.f32 %v981_v53, %v3997_v50  ;;  %v864_v53 = vpop.f32.mrb[6].mxu1 }
 0x387   : > { %1004 = vmax.xlane.f32.xlu1 %v1003_v57 }
 0x388   : > { %v1006_v61 = vsel %vm990_vm8, %v988_v58, -inf }
 0x38a   : > { %1007 = vmax.xlane.f32.xlu0 %v1006_v61 }
 0x38b   : > { %1010 = vmax.xlane.f32.xlu1 %v1009_v62 }
 0x39c   : > { %1251 = vrot.lane.b32.xlu1 %v3881_v19, %s3588_s14 }
 0x40b   : > { %v999_v25 = vpop.xlane.xlu0 %998 }
 0x40c   : > { %v1014_v44 = vsub.f32 %v985_v23, %v999_v25  ;;  %v993_v46 = vpop.xlane.xlu1 %992 }
 0x40d   : > { %v1012_v3 = vsub.f32 %v983_v7, %v993_v46 }
 0x40e   : > { %v1023_v5 = vmul.f32 1.442695, %v1014_v44 }
 0x40f   : > { %v1019_v59 = vmul.f32 1.442695, %v1012_v3  ;;  %v996_v9 = vpop.xlane.xlu0 %995 }
 0x410   : > { %3410 = vpow2.f32 %v1023_v5  ;;  %v1013_v49 = vsub.f32 %v984_v30, %v996_v9 }
 0x411   : > { %3412 = vpow2.f32 %v1019_v59 }
 0x412   : > { %v1021_v13 = vmul.f32 1.442695, %v1013_v49 }
 0x413   : > { %v1002_v10 = vpop.xlane.xlu0 %1001 }
 0x414   : > { %v1015_v11 = vsub.f32 %v986_v39, %v1002_v10  ;;  %v1005_v12 = vpop.xlane.xlu1 %1004 }
 0x415   : > { %v1016_v0 = vsub.f32 %v987_v56, %v1005_v12  ;;  %v3090_v56 = vpop.f32.mrb[7].mxu1 }
 0x416   : > { %v1025_v16 = vmul.f32 1.442695, %v1015_v11 }
 0x417   : > { %v1027_v55 = vmul.f32 1.442695, %v1016_v0  ;;  %v1008_v34 = vpop.xlane.xlu0 %1007 }
 0x418   : > { %3414 = vpow2.f32 %v1025_v16  ;;  %v1011_v17 = vpop.xlane.xlu1 %1010  ;;  %v1017_v35 = vsub.f32 %v988_v58, %v1008_v34 }
 0x419   : > { %v1018_v18 = vsub.f32 %v989_v60, %v1011_v17  ;;  %3416 = vpow2.f32 %v1021_v13 }
 0x41a   : > { %v4011_v1 = vpop.eup %3410  ;;  %v1029_v36 = vmul.f32 1.442695, %v1017_v35 }
 0x41b   : > { %v1031_v21 = vmul.f32 1.442695, %v1018_v18  ;;  %v1039_v2 = vsel %vm990_vm8, %v4011_v1, 0.0  ;;  %v4015_v22 = vpop.eup %3412 }
 0x41c   : > { %v4017_v6 = vpop.permute.xlu1 %1251  ;;  %1040 = vadd.xlane.f32.xlu0 %v1039_v2  ;;  %v1033_v23 = vsel %vm990_vm8, %v4015_v22, 0.0 }
 0x41d   : > { %3418 = vpow2.f32 %v1031_v21  ;;  %3320 = vmatprep.subr.msk.bf16.mxu1 %vm887_vm4, %v4017_v6  ;;  %v1272_v11 = vsel %vm887_vm4, %v4017_v6, 0 }
 0x41e   : > { %3420 = vpow2.f32 %v1027_v55 }
 0x41f   : > { %3422 = vpow2.f32 %v1029_v36 }
 0x420   : > { %1034 = vadd.xlane.f32.xlu0 %v1033_v23 }
 0x422   : > { %v3415_v26 = vpop.eup %3414 }
 0x423   : > { %v1042_v7 = vsel %vm990_vm8, %v3415_v26, 0.0  ;;  %v3417_v8 = vpop.eup %3416 }
 0x424   : > { %1043 = vadd.xlane.f32.xlu1 %v1042_v7  ;;  %v1036_v28 = vsel %vm990_vm8, %v3417_v8, 0.0 }
 0x427   : > { %v4024_v27 = vpop.eup %3418 }
 0x428   : > { %1037 = vadd.xlane.f32.xlu1 %v1036_v28  ;;  %v1051_v14 = vsel %vm990_vm8, %v4024_v27, 0.0  ;;  %v4029_v29 = vpop.eup %3420 }
 0x429   : > { %1052 = vadd.xlane.f32.xlu0 %v1051_v14  ;;  %v1045_v30 = vsel %vm990_vm8, %v4029_v29, 0.0  ;;  %v3423_v39 = vpop.eup %3422 }
 0x42a   : > { %v1048_v41 = vsel %vm990_vm8, %v3423_v39, 0.0 }
 0x42d   : > { %1046 = vadd.xlane.f32.xlu0 %v1045_v30 }
 0x439   : > { %1255 = vrot.lane.b32.xlu1 %v3933_v63, %s3588_s14 }
 0x443   : > { %1253 = vrot.lane.b32.xlu0 %v3905_v33, %s3588_s14 }
 0x447   : > { %1245 = vrot.lane.b32.xlu0 %v3905_v33, %s3589_s15 }
 0x44b   : > { %1249 = vrot.lane.b32.xlu0 %v3937_v4, %s3589_s15 }
 0x44f   : > { %1633 = vrot.lane.b32.xlu0 %v3905_v33, %s3590_s16 }
 0x453   : > { %1637 = vrot.lane.b32.xlu0 %v3937_v4, %s3590_s16 }
 0x457   : > { %1625 = vrot.lane.b32.xlu0 %v3905_v33, %s3591_s20 }
 0x45b   : > { %1629 = vrot.lane.b32.xlu0 %v3937_v4, %s3591_s20 }
 0x45d   : > { %1049 = vadd.xlane.f32.xlu1 %v1048_v41 }
 0x46e   : > { %1257 = vrot.lane.b32.xlu1 %v3937_v4, %s3588_s14  ;;  %s400_s14 = scalar_lea.vmem %s4551_s11, %s3335_s19 }
 0x472   : > { %1243 = vrot.lane.b32.xlu1 %v3881_v19, %s3589_s15 }
 0x476   : > { %1247 = vrot.lane.b32.xlu1 %v3933_v63, %s3589_s15 }
 0x47a   : > { %1631 = vrot.lane.b32.xlu1 %v3881_v19, %s3590_s16 }
 0x47e   : > { %1635 = vrot.lane.b32.xlu1 %v3933_v63, %s3590_s16 }
 0x482   : > { %1623 = vrot.lane.b32.xlu1 %v3881_v19, %s3591_s20 }
 0x486   : > { %1627 = vrot.lane.b32.xlu1 %v3933_v63, %s3591_s20 }
 0x4a9   : > { %v1041_v42 = vpop.xlane.xlu0 %1040 }
 0x4ad   : > { %v1035_v54 = vpop.xlane.xlu0 %1034 }
 0x4b1   : > { %v1044_v57 = vpop.xlane.xlu1 %1043 }
 0x4b2   : > { %3424 = vrcp.f32 %v1044_v57 }
 0x4b3   : > { %3426 = vrcp.f32 %v1035_v54 }
 0x4b4   : > { %3428 = vrcp.f32 %v1041_v42 }
 0x4b5   : > { %v1038_v58 = vpop.xlane.xlu1 %1037 }
 0x4b6   : > { %3430 = vrcp.f32 %v1038_v58  ;;  %v1053_v60 = vpop.xlane.xlu0 %1052 }
 0x4b7   : > { %3432 = vrcp.f32 %v1053_v60 }
 0x4b9   : > { %v1256_v16 = vpop.permute.xlu1 %1255 }
 0x4ba   : > { %v1047_v3 = vpop.xlane.xlu0 %1046  ;;  %v1278_v0 = vsel %vm887_vm4, %v1256_v16, 0 }
 0x4bb   : > { %3434 = vrcp.f32 %v1047_v3 }
 0x4bc   : > { %v3425_v61 = vpop.eup %3424 }
 0x4bd   : > { %v3427_v62 = vpop.eup %3426  ;;  %v1064_v46 = vmul.f32 %v3425_v61, %v3415_v26 }
 0x4be   : > { %v3429_v25 = vpop.eup %3428  ;;  %v1061_v5 = vmul.f32 %v3427_v62, %v4015_v22  ;;  %v1254_v12 = vpop.permute.xlu0 %1253 }
 0x4bf   : > { %v1063_v9 = vmul.f32 %v3429_v25, %v4011_v1  ;;  %v1275_v13 = vsel %vm887_vm4, %v1254_v12, 0 }
 0x4c0   : > { %v3431_v44 = vpop.eup %3430 }
 0x4c1   : > { %v1062_v59 = vmul.f32 %v3431_v44, %v3417_v8  ;;  %v1069_v10 = vpack.c.bf16 %v1064_v46, %v1063_v9  ;;  %v3433_v55 = vpop.eup %3432 }
 0x4c2   : > { %v1067_v6 = vmul.f32 %v3433_v55, %v4024_v27  ;;  %v1246_v8 = vpop.permute.xlu0 %1245 }
 0x4c3   : > { %v1068_v49 = vpack.c.bf16 %v1062_v59, %v1061_v5 }
 0x4c4   : > { %v1071_v14 = vpack.c.bf16 %v1067_v6, %v1067_v6 }
 0x4c5   : > { %3115 = vmatprep.mubr.msk.bf16.mxu1 %vm990_vm8, %v1068_v49  ;;  %v3435_v2 = vpop.eup %3434 }
 0x4c6   : > { %3116 = vmatmul.mubr.msk.bf16.vlgmr.msra.gmra.mrb[8].mxu1 %vm990_vm8, %v1069_v10  ;;  %v1065_v26 = vmul.f32 %v3435_v2, %v4029_v29  ;;  %v1250_v34 = vpop.permute.xlu0 %1249 }
 0x4c7   : > { %3134 = vmatpush3.bf16.xpose.msra.mxu1 %v1272_v11 }
 0x4c8   : > { %3321 = vmatprep.subr.msk.bf16.mxu1 %vm887_vm4, %v1254_v12 }
 0x4ca   : > { %v1634_v27 = vpop.permute.xlu0 %1633 }
 0x4cb   : > { %v1655_v36 = vsel %vm887_vm4, %v1634_v27, 0 }
 0x4ce   : > { %v1638_v42 = vpop.permute.xlu0 %1637 }
 0x4cf   : > { %3136 = vmatpush3.bf16.xpose.msra.mxu1 %v1275_v13  ;;  %v1661_v47 = vsel %vm887_vm4, %v1638_v42, 0 }
 0x4d0   : > { %3322 = vmatprep.subr.msk.bf16.mxu1 %vm887_vm4, %v1256_v16 }
 0x4d2   : > { %v1626_v53 = vpop.permute.xlu0 %1625 }
 0x4d6   : > { %v1630_v54 = vpop.permute.xlu0 %1629 }
 0x4d7   : > { %3138 = vmatpush3.bf16.xpose.msra.mxu1 %v1278_v0 }
 0x4ea   : > { %v1050_v17 = vpop.xlane.xlu1 %1049 }
 0x4eb   : > { %3436 = vrcp.f32 %v1050_v17 }
 0x4ee   : > { %v1258_v18 = vpop.permute.xlu1 %1257 }
 0x4ef   : > { %v1281_v1 = vsel %vm887_vm4, %v1258_v18, 0  ;;  %3323 = vmatprep.subr.msk.bf16.mxu1 %vm887_vm4, %v1258_v18 }
 0x4f0   : > { %3140 = vmatpush3.bf16.xpose.msra.mxu1 %v1281_v1 }
 0x4f2   : > { %v1244_v21 = vpop.permute.xlu1 %1243 }
 0x4f5   : > { %v3437_v22 = vpop.eup %3436 }
 0x4f6   : > { %v1248_v23 = vpop.permute.xlu1 %1247  ;;  %v1066_v7 = vmul.f32 %v3437_v22, %v3423_v39 }
 0x4f8   : > { %v1070_v28 = vpack.c.bf16 %v1066_v7, %v1065_v26 }
 0x4fa   : > { %v1632_v30 = vpop.permute.xlu1 %1631  ;;  %3119 = vmatprep.mubr.msk.bf16.mxu1 %vm990_vm8, %v1070_v28 }
 0x4fb   : > { %3120 = vmatmul.mubr.msk.bf16.gmra.mrb[12].mxu1 %vm990_vm8, %v1071_v14  ;;  %3325 = vmatprep.subr.msk.bf16.mxu1 %vm887_vm4, %v1632_v30  ;;  %v1652_v35 = vsel %vm887_vm4, %v1632_v30, 0 }
 0x4fc   : > { %3141 = vmatprep.mubr.msk.bf16.mxu1 %vm887_vm4, %v1244_v21 }
 0x4fe   : > { %v1636_v29 = vpop.permute.xlu1 %1635 }
 0x4ff   : > { %v1658_v41 = vsel %vm887_vm4, %v1636_v29, 0 }
 0x502   : > { %v1624_v39 = vpop.permute.xlu1 %1623 }
 0x503   : > { %3142 = vmatmul.mubr.msk.bf16.vlgmr.msra.gmra.mrb[16].mxu1 %vm887_vm4, %v1246_v8 }
 0x504   : > { %3176 = vmatpush3.bf16.xpose.msra.mxu1 %v1652_v35  ;;  %3145 = vmatprep.mubr.msk.bf16.mxu1 %vm887_vm4, %v1248_v23 }
 0x505   : > { %3326 = vmatprep.subr.msk.bf16.mxu1 %vm887_vm4, %v1634_v27 }
 0x506   : > { %v1628_v56 = vpop.permute.xlu1 %1627 }
 0x50b   : > { %3146 = vmatmul.mubr.msk.bf16.gmra.mrb[20].mxu1 %vm887_vm4, %v1250_v34 }
 0x50c   : > { %3178 = vmatpush3.bf16.xpose.msra.mxu1 %v1655_v36  ;;  %3183 = vmatprep.mubr.msk.bf16.mxu1 %vm887_vm4, %v1624_v39 }
 0x50d   : > { %3327 = vmatprep.subr.msk.bf16.mxu1 %vm887_vm4, %v1636_v29 }
 0x514   : > { %3180 = vmatpush3.bf16.xpose.msra.mxu1 %v1658_v41 }
 0x515   : > { %3328 = vmatprep.subr.msk.bf16.mxu1 %vm887_vm4, %v1638_v42 }
 0x51c   : > { %3182 = vmatpush3.bf16.xpose.msra.mxu1 %v1661_v47 }
 0x523   : > { %3184 = vmatmul.mubr.msk.bf16.vlgmr.msra.gmra.mrb[24].mxu1 %vm887_vm4, %v1626_v53 }
 0x524   : > { %3187 = vmatprep.mubr.msk.bf16.mxu1 %vm887_vm4, %v1628_v56 }
 0x52b   : > { %3188 = vmatmul.mubr.msk.bf16.gmra.mrb[28].mxu1 %vm887_vm4, %v1630_v54 }
 0x599   : > { %v3117_v57 = vpop.f32.mrb[8].mxu1 }
 0x59a   : > { %v1122_v58 = vpop.f32.mrb[9].mxu1 }
 0x59b   : > { %v3118_v60 = vpop.f32.mrb[10].mxu1 }
 0x59c   : > { %v1153_v61 = vpack.c.bf16 %v3118_v60, %v3117_v57  ;;  %v1125_v62 = vpop.f32.mrb[11].mxu1 }
 0x59d   : > { %v1152_v25 = vpack.c.bf16 %v1125_v62, %v1122_v58 }
 0x59f   : > { %3125 = vmatprep.mubr.msk.bf16.mxu0 %vm887_vm4, %v1152_v25 }
 0x5a0   : > { %3126 = vmatmul.mubr.msk.bf16.vlgmr.msra.gmra.mrb[24].mxu0 %vm887_vm4, %v1153_v61 }
 0x5ce   : > { %v3121_v44 = vpop.f32.mrb[12].mxu1 }
 0x5cf   : > { %v1138_v46 = vpop.f32.mrb[13].mxu1  ;;  %v1155_v9 = vpack.c.bf16 %v3121_v44, %v3121_v44 }
 0x5d0   : > { %v3122_v3 = vpop.f32.mrb[14].mxu1 }
 0x5d1   : > { %v1141_v5 = vpop.f32.mrb[15].mxu1 }
 0x5d2   : > { %v1154_v59 = vpack.c.bf16 %v1141_v5, %v1138_v46 }
 0x5d4   : > { %3129 = vmatprep.mubr.msk.bf16.mxu0 %vm887_vm4, %v1154_v59 }
 0x5d5   : > { %3130 = vmatmul.mubr.msk.bf16.gmra.mrb[28].mxu0 %vm887_vm4, %v1155_v9 }
 0x5d6   : > { %v3143_v49 = vpop.f32.mrb[16].mxu1 }
 0x5d7   : > { %v1349_v10 = vmul.f32 0.25, %v3143_v49  ;;  %v1317_v11 = vpop.f32.mrb[17].mxu1 }
 0x5d8   : > { %v1347_v12 = vmul.f32 0.25, %v1317_v11  ;;  %v3144_v13 = vpop.f32.mrb[18].mxu1 }
 0x5d9   : > { %v1320_v16 = vpop.f32.mrb[19].mxu1  ;;  %v1356_v0 = vadd.f32 %v1349_v10, %v3967_v37  ;;  %v1350_v1 = vmul.f32 0.25, %v3144_v13 }
 0x5da   : > { %v1348_v17 = vmul.f32 0.25, %v1320_v16  ;;  %v1354_v18 = vadd.f32 %v1347_v12, %v3971_v20 }
 0x5db   : > { %v1367_v55 = vsel %vm990_vm8, %v1356_v0, -inf  ;;  %v1357_v26 = vadd.f32 %v1350_v1, %v3986_v31 }
 0x5dc   : > { %1368 = vmax.xlane.f32.xlu0 %v1367_v55  ;;  %v1361_v21 = vsel %vm990_vm8, %v1354_v18, -inf  ;;  %v1355_v2 = vadd.f32 %v1348_v17, %v3976_v24 }
 0x5dd   : > { %1362 = vmax.xlane.f32.xlu1 %v1361_v21  ;;  %v1370_v35 = vsel %vm990_vm8, %v1357_v26, -inf }
 0x5de   : > { %v3147_v22 = vpop.f32.mrb[20].mxu1  ;;  %v1364_v6 = vsel %vm990_vm8, %v1355_v2, -inf }
 0x5df   : > { %v1333_v23 = vpop.f32.mrb[21].mxu1  ;;  %v1353_v7 = vmul.f32 0.25, %v3147_v22 }
 0x5e0   : > { %v1351_v8 = vmul.f32 0.25, %v1333_v23  ;;  %1365 = vmax.xlane.f32.xlu0 %v1364_v6  ;;  %v3148_v28 = vpop.f32.mrb[22].mxu1 }
 0x5e1   : > { %v1336_v14 = vpop.f32.mrb[23].mxu1  ;;  %v1360_v36 = vadd.f32 %v1353_v7, %v4000_v52 }
 0x5e2   : > { %v1352_v30 = vmul.f32 0.25, %v1336_v14  ;;  %v1358_v34 = vadd.f32 %v1351_v8, %v3994_v40 }
 0x5e3   : > { %v1379_v41 = vsel %vm990_vm8, %v1360_v36, -inf }
 0x5e4   : > { %1371 = vmax.xlane.f32.xlu0 %v1370_v35  ;;  %v1373_v27 = vsel %vm990_vm8, %v1358_v34, -inf  ;;  %v4109_v29 = vadd.f32 %v1352_v30, %v3997_v50  ;;  %v1234_v35 = vsub.s32 0, %v3958_v15 }
 0x5e5   : > { %1374 = vmax.xlane.f32.xlu1 %v1373_v27 }
 0x5e6   : > { %v1376_v39 = vsel %vm990_vm8, %v4109_v29, -inf }
 0x5e8   : > { %1377 = vmax.xlane.f32.xlu0 %v1376_v39 }
 0x5e9   : > { %1380 = vmax.xlane.f32.xlu1 %v1379_v41 }
 0x5f6   : > { %v4115_v42 = vpop.f32.mrb[24].mxu1 }
 0x5f7   : > { %v4117_v47 = vpop.f32.mrb[25].mxu1 }
 0x5f8   : > { %v4119_v53 = vpop.f32.mrb[26].mxu1 }
 0x5f9   : > { %v4121_v56 = vpop.f32.mrb[27].mxu1 }
 0x5fa   : > { %1446 = vrot.lane.b32.xlu1 %v3804_v38, %s3589_s15 }
 0x5fe   : > { %v4125_v54 = vpop.f32.mrb[28].mxu1 }
 0x5ff   : > { %v4127_v57 = vpop.f32.mrb[29].mxu1 }
 0x600   : > { %v3190_v58 = vpop.f32.mrb[30].mxu1 }
 0x601   : > { %v4129_v60 = vpop.f32.mrb[31].mxu1 }
 0x669   : > { %v1369_v61 = vpop.xlane.xlu0 %1368 }
 0x66a   : > { %v1384_v62 = vsub.f32 %v1356_v0, %v1369_v61  ;;  %v1363_v25 = vpop.xlane.xlu1 %1362 }
 0x66b   : > { %v1382_v44 = vsub.f32 %v1354_v18, %v1363_v25 }
 0x66c   : > { %v1393_v46 = vmul.f32 1.442695, %v1384_v62 }
 0x66d   : > { %v1389_v3 = vmul.f32 1.442695, %v1382_v44  ;;  %v1366_v5 = vpop.xlane.xlu0 %1365 }
 0x66e   : > { %3438 = vpow2.f32 %v1393_v46  ;;  %v1383_v59 = vsub.f32 %v1355_v2, %v1366_v5  ;;  %v1728_v46 = vmul.f32 0.25, %v4121_v56 }
 0x66f   : > { %3440 = vpow2.f32 %v1389_v3  ;;  %v1729_v3 = vmul.f32 0.25, %v4115_v42  ;;  %v1732_v42 = vmul.f32 0.25, %v4129_v60 }
 0x670   : > { %v1391_v11 = vmul.f32 1.442695, %v1383_v59  ;;  %v4188_v5 = vadd.f32 %v1728_v46, %v3976_v24 }
 0x671   : > { %v1372_v9 = vpop.xlane.xlu0 %1371  ;;  %v4196_v59 = vadd.f32 %v1729_v3, %v3967_v37  ;;  %v3564_v3 = vld [vmem:[%s4546_s6 + $0x8] sm:$0xff]  }
 0x672   : > { %v1385_v49 = vsub.f32 %v1357_v26, %v1372_v9  ;;  %v1375_v10 = vpop.xlane.xlu1 %1374 }
 0x673   : > { %v1386_v13 = vsub.f32 %v1358_v34, %v1375_v10  ;;  %v1747_v56 = vsel %vm990_vm8, %v4196_v59, -inf  ;;  %v1727_v10 = vmul.f32 0.25, %v4117_v47 }
 0x674   : > { %v1395_v12 = vmul.f32 1.442695, %v1385_v49  ;;  %v4211_v49 = vadd.f32 %v1732_v42, %v3997_v50 }
 0x675   : > { %v1397_v0 = vmul.f32 1.442695, %v1386_v13  ;;  %v1378_v34 = vpop.xlane.xlu0 %1377  ;;  %v1733_v13 = vmul.f32 0.25, %v4125_v54 }
 0x676   : > { %3442 = vpow2.f32 %v1395_v12  ;;  %v1381_v16 = vpop.xlane.xlu1 %1380  ;;  %v1387_v27 = vsub.f32 %v4109_v29, %v1378_v34  ;;  %v1756_v60 = vsel %vm990_vm8, %v4211_v49, -inf  ;;  %v4222_v12 = vadd.f32 %v1727_v10, %v3971_v20 }
 0x677   : > { %v1388_v17 = vsub.f32 %v1360_v36, %v1381_v16  ;;  %3444 = vpow2.f32 %v1391_v11  ;;  %v4164_v36 = vrot.slane %v4060_v45, %v1234_v35  ;;  %v1731_v11 = vmul.f32 0.25, %v4127_v57 }
 0x678   : > { %v4131_v1 = vpop.eup %3438  ;;  %v1399_v41 = vmul.f32 1.442695, %v1387_v27  ;;  %v1741_v16 = vsel %vm990_vm8, %v4222_v12, -inf }
 0x679   : > { %v1401_v18 = vmul.f32 1.442695, %v1388_v17  ;;  %v1409_v55 = vsel %vm990_vm8, %v4131_v1, 0.0  ;;  %v4135_v21 = vpop.eup %3440 }
 0x67a   : > { %v1447_v2 = vpop.permute.xlu1 %1446  ;;  %1410 = vadd.xlane.f32.xlu0 %v1409_v55  ;;  %v1403_v22 = vsel %vm990_vm8, %v4135_v21, 0.0 }
 0x67b   : > { %3446 = vpow2.f32 %v1401_v18  ;;  %3149 = vmatprep.subr.bf16.mxu0 %v1447_v2 }
 0x67c   : > { %3150 = vmatpush3.bf16.msra.mxu0 %v1447_v2  ;;  %3448 = vpow2.f32 %v1397_v0 }
 0x67d   : > { %3450 = vpow2.f32 %v1399_v41 }
 0x67e   : > { %1404 = vadd.xlane.f32.xlu0 %v1403_v22 }
 0x680   : > { %v4139_v6 = vpop.eup %3442 }
 0x681   : > { %v1412_v23 = vsel %vm990_vm8, %v4139_v6, 0.0  ;;  %v4143_v26 = vpop.eup %3444 }
 0x682   : > { %1413 = vadd.xlane.f32.xlu1 %v1412_v23  ;;  %v1406_v8 = vsel %vm990_vm8, %v4143_v26, 0.0 }
 0x685   : > { %v4145_v7 = vpop.eup %3446 }
 0x686   : > { %1407 = vadd.xlane.f32.xlu1 %v1406_v8  ;;  %v1421_v28 = vsel %vm990_vm8, %v4145_v7, 0.0  ;;  %v4151_v14 = vpop.eup %3448 }
 0x687   : > { %1422 = vadd.xlane.f32.xlu0 %v1421_v28  ;;  %v1415_v30 = vsel %vm990_vm8, %v4151_v14, 0.0  ;;  %v4181_v45 = vpop.eup %3450 }
 0x688   : > { %v1418_v44 = vsel %vm990_vm8, %v4181_v45, 0.0 }
 0x68b   : > { %1416 = vadd.xlane.f32.xlu0 %v1415_v30 }
 0x697   : > { %1450 = vrot.lane.b32.xlu1 %v3832_v48, %s3589_s15 }
 0x6a1   : > { %1448 = vrot.lane.b32.xlu0 %v3816_v43, %s3589_s15 }
 0x6a5   : > { %2009 = vrot.lane.b32.xlu0 %v3905_v33, %s3592_s21 }
 0x6a8   : > { %v3131_v39 = vpop.f32.mrb[28].mxu0 }
 0x6a9   : > { %v4167_v58 = vadd.f32 %v3131_v39, %v4164_v36  ;;  %v1218_v61 = vpop.f32.mrb[29].mxu0  ;;  %2013 = vrot.lane.b32.xlu0 %v3937_v4, %s3592_s21 }
 0x6aa   : > { %v4172_v15 = vadd.f32 %v4164_v36, %v1218_v61  ;;  %v3132_v29 = vpop.f32.mrb[30].mxu0 }
 0x6ab   : > { %v1221_v62 = vpop.f32.mrb[31].mxu0 }
 0x6ac   : > { %v4175_v25 = vadd.f32 %v4164_v36, %v1221_v62 }
 0x6ad   : > { %2001 = vrot.lane.b32.xlu0 %v3905_v33, %s3593_s23  ;;  %v1730_v33 = vmul.f32 0.25, %v4119_v53 }
 0x6af   : > { %v4204_v9 = vadd.f32 %v1730_v33, %v3986_v31 }
 0x6b1   : > { %2005 = vrot.lane.b32.xlu0 %v3937_v4, %s3593_s23  ;;  %v1744_v4 = vsel %vm990_vm8, %v4188_v5, -inf  ;;  %v1750_v53 = vsel %vm990_vm8, %v4204_v9, -inf }
 0x6bb   : > { %1419 = vadd.xlane.f32.xlu1 %v1418_v44 }
 0x6cc   : > { %1452 = vrot.lane.b32.xlu1 %v3844_v51, %s3589_s15 }
 0x6d0   : > { %1745 = vmax.xlane.f32.xlu0 %v1744_v4  ;;  %2007 = vrot.lane.b32.xlu1 %v3881_v19, %s3592_s21 }
 0x6d4   : > { %1748 = vmax.xlane.f32.xlu0 %v1747_v56  ;;  %2011 = vrot.lane.b32.xlu1 %v3933_v63, %s3592_s21 }
 0x6d8   : > { %1751 = vmax.xlane.f32.xlu0 %v1750_v53  ;;  %1999 = vrot.lane.b32.xlu1 %v3881_v19, %s3593_s23  ;;  %v4228_v19 = vadd.f32 %v1731_v11, %v3994_v40 }
 0x6da   : > { %v1753_v17 = vsel %vm990_vm8, %v4228_v19, -inf }
 0x6dc   : > { %1757 = vmax.xlane.f32.xlu0 %v1756_v60  ;;  %2003 = vrot.lane.b32.xlu1 %v3933_v63, %s3593_s23  ;;  %v4233_v63 = vadd.f32 %v1733_v13, %v4000_v52 }
 0x6de   : > { %v1759_v47 = vsel %vm990_vm8, %v4233_v63, -inf }
 0x700   : > { %1742 = vmax.xlane.f32.xlu1 %v1741_v16 }
 0x704   : > { %1754 = vmax.xlane.f32.xlu1 %v1753_v17 }
 0x707   : > { %v1411_v57 = vpop.xlane.xlu0 %1410 }
 0x708   : > { %1760 = vmax.xlane.f32.xlu1 %v1759_v47 }
 0x70b   : > { %v1405_v54 = vpop.xlane.xlu0 %1404 }
 0x70c   : > { %3452 = vrcp.f32 %v1405_v54 }
 0x70f   : > { %v1414_v0 = vpop.xlane.xlu1 %1413 }
 0x713   : > { %v1408_v18 = vpop.xlane.xlu1 %1407 }
 0x714   : > { %3454 = vrcp.f32 %v1408_v18  ;;  %v1423_v55 = vpop.xlane.xlu0 %1422 }
 0x715   : > { %3456 = vrcp.f32 %v1414_v0 }
 0x716   : > { %v3453_v22 = vpop.eup %3452  ;;  %3458 = vrcp.f32 %v1411_v57 }
 0x717   : > { %v1451_v28 = vpop.permute.xlu1 %1450  ;;  %v1431_v30 = vmul.f32 %v3453_v22, %v4135_v21  ;;  %3460 = vrcp.f32 %v1423_v55 }
 0x718   : > { %v1417_v2 = vpop.xlane.xlu0 %1416 }
 0x719   : > { %1822 = vrot.lane.b32.xlu1 %v3804_v38, %s3591_s20  ;;  %3462 = vrcp.f32 %v1417_v2 }
 0x71c   : > { %v1449_v23 = vpop.permute.xlu0 %1448 }
 0x71d   : > { %3151 = vmatprep.subr.bf16.mxu0 %v1449_v23 }
 0x71e   : > { %v3455_v8 = vpop.eup %3454  ;;  %3152 = vmatpush3.bf16.msra.mxu0 %v1449_v23 }
 0x71f   : > { %3153 = vmatprep.subr.bf16.mxu0 %v1451_v28  ;;  %v1432_v34 = vmul.f32 %v3455_v8, %v4143_v26  ;;  %v3457_v39 = vpop.eup %3456 }
 0x720   : > { %v2010_v27 = vpop.permute.xlu0 %2009  ;;  %v3459_v61 = vpop.eup %3458  ;;  %v1434_v29 = vmul.f32 %v3457_v39, %v4139_v6 }
 0x721   : > { %v1438_v35 = vpack.c.bf16 %v1432_v34, %v1431_v30  ;;  %v1433_v21 = vmul.f32 %v3459_v61, %v4131_v1  ;;  %v3461_v33 = vpop.eup %3460  ;;  %v2031_v47 = vsel %vm887_vm4, %v2010_v27, 0 }
 0x722   : > { %3154 = vmatpush3.bf16.msra.mxu0 %v1451_v28  ;;  %v1437_v53 = vmul.f32 %v3461_v33, %v4145_v7 }
 0x723   : > { %3157 = vmatprep.mubr.msk.bf16.mxu0 %vm990_vm8, %v1438_v35  ;;  %v1439_v46 = vpack.c.bf16 %v1434_v29, %v1433_v21  ;;  %v3463_v42 = vpop.eup %3462 }
 0x724   : > { %v2014_v44 = vpop.permute.xlu0 %2013  ;;  %v1435_v10 = vmul.f32 %v3463_v42, %v4151_v14  ;;  %v1441_v16 = vpack.c.bf16 %v1437_v53, %v1437_v53 }
 0x725   : > { %v2037_v8 = vsel %vm887_vm4, %v2014_v44, 0 }
 0x728   : > { %v2002_v56 = vpop.permute.xlu0 %2001 }
 0x72c   : > { %v2006_v57 = vpop.permute.xlu0 %2005 }
 0x748   : > { %v1420_v41 = vpop.xlane.xlu1 %1419 }
 0x749   : > { %3464 = vrcp.f32 %v1420_v41 }
 0x74c   : > { %v1453_v62 = vpop.permute.xlu1 %1452 }
 0x74d   : > { %v1470_v26 = vsel %vm1084_vm2, %v1453_v62, 0  ;;  %3324 = vmatprep.subr.msk.bf16.mxu0 %vm1084_vm2, %v1453_v62 }
 0x74e   : > { %3156 = vmatpush3.bf16.msra.mxu0 %v1470_v26 }
 0x74f   : > { %3165 = vmatprep.subr.bf16.mxu0 %v3564_v3 }
 0x750   : > { %v2008_v4 = vpop.permute.xlu1 %2007 }
 0x751   : > { %v2028_v6 = vsel %vm887_vm4, %v2008_v4, 0  ;;  %3158 = vmatmul.mubr.msk.bf16.vlgmr.msra.gmra.mrb[32].mxu0 %vm990_vm8, %v1439_v46  ;;  %3330 = vmatprep.subr.msk.bf16.mxu1 %vm887_vm4, %v2008_v4 }
 0x752   : > { %3218 = vmatpush3.bf16.xpose.msra.mxu1 %v2028_v6  ;;  %3166 = vmatpush3.bf16.msra.mxu0 %v3564_v3 }
 0x753   : > { %v3465_v1 = vpop.eup %3464  ;;  %3331 = vmatprep.subr.msk.bf16.mxu1 %vm887_vm4, %v2010_v27 }
 0x754   : > { %v2012_v60 = vpop.permute.xlu1 %2011  ;;  %v1436_v11 = vmul.f32 %v3465_v1, %v4181_v45 }
 0x755   : > { %v2034_v14 = vsel %vm887_vm4, %v2012_v60, 0 }
 0x756   : > { %v1440_v13 = vpack.c.bf16 %v1436_v11, %v1435_v10 }
 0x758   : > { %v2000_v17 = vpop.permute.xlu1 %1999  ;;  %3161 = vmatprep.mubr.msk.bf16.mxu0 %vm990_vm8, %v1440_v13 }
 0x759   : > { %3162 = vmatmul.mubr.msk.bf16.gmra.mrb[36].mxu0 %vm990_vm8, %v1441_v16  ;;  %3225 = vmatprep.mubr.msk.bf16.mxu1 %vm887_vm4, %v2000_v17 }
 0x75a   : > { %3220 = vmatpush3.bf16.xpose.msra.mxu1 %v2031_v47 }
 0x75b   : > { %3332 = vmatprep.subr.msk.bf16.mxu1 %vm887_vm4, %v2012_v60 }
 0x75d   : > { %v1746_v7 = vpop.xlane.xlu0 %1745 }
 0x75e   : > { %v1763_v0 = vsub.f32 %v4188_v5, %v1746_v7 }
 0x760   : > { %v1771_v22 = vmul.f32 1.442695, %v1763_v0 }
 0x761   : > { %v1749_v54 = vpop.xlane.xlu0 %1748 }
 0x762   : > { %v1764_v45 = vsub.f32 %v4196_v59, %v1749_v54  ;;  %3222 = vmatpush3.bf16.xpose.msra.mxu1 %v2034_v14  ;;  %v2004_v59 = vpop.permute.xlu1 %2003 }
 0x763   : > { %3333 = vmatprep.subr.msk.bf16.mxu1 %vm887_vm4, %v2014_v44 }
 0x764   : > { %v1773_v18 = vmul.f32 1.442695, %v1764_v45 }
 0x765   : > { %v1752_v55 = vpop.xlane.xlu0 %1751 }
 0x766   : > { %3466 = vpow2.f32 %v1773_v18  ;;  %v1765_v2 = vsub.f32 %v4204_v9, %v1752_v55 }
 0x768   : > { %v1775_v23 = vmul.f32 1.442695, %v1765_v2 }
 0x769   : > { %v1758_v21 = vpop.xlane.xlu0 %1757 }
 0x76a   : > { %3468 = vpow2.f32 %v1775_v23  ;;  %3224 = vmatpush3.bf16.xpose.msra.mxu1 %v2037_v8  ;;  %v1767_v3 = vsub.f32 %v4211_v49, %v1758_v21 }
 0x76b   : > { %3470 = vpow2.f32 %v1771_v22 }
 0x76c   : > { %v1779_v42 = vmul.f32 1.442695, %v1767_v3 }
 0x770   : > { %v4267_v28 = vpop.eup %3466 }
 0x771   : > { %3226 = vmatmul.mubr.msk.bf16.vlgmr.msra.gmra.mrb[32].mxu1 %vm887_vm4, %v2002_v56  ;;  %v1789_v5 = vsel %vm990_vm8, %v4267_v28, 0.0 }
 0x772   : > { %3229 = vmatprep.mubr.msk.bf16.mxu1 %vm887_vm4, %v2004_v59  ;;  %1790 = vadd.xlane.f32.xlu0 %v1789_v5 }
 0x774   : > { %v4273_v30 = vpop.eup %3468 }
 0x775   : > { %v1792_v9 = vsel %vm990_vm8, %v4273_v30, 0.0  ;;  %v4277_v34 = vpop.eup %3470 }
 0x776   : > { %1793 = vadd.xlane.f32.xlu1 %v1792_v9  ;;  %v1786_v35 = vsel %vm990_vm8, %v4277_v34, 0.0 }
 0x779   : > { %3230 = vmatmul.mubr.msk.bf16.gmra.mrb[36].mxu1 %vm887_vm4, %v2006_v57 }
 0x77a   : > { %1787 = vadd.xlane.f32.xlu1 %v1786_v35  ;;  %2548 = vmatprep.mubr.bf16.mxu1 %v3583_v32 }
 0x78b   : > { %1826 = vrot.lane.b32.xlu1 %v3832_v48, %s3591_s20 }
 0x78d   : > { %v1743_v27 = vpop.xlane.xlu1 %1742 }
 0x78e   : > { %v1762_v39 = vsub.f32 %v4222_v12, %v1743_v27 }
 0x790   : > { %v1769_v41 = vmul.f32 1.442695, %v1762_v39 }
 0x791   : > { %v1755_v61 = vpop.xlane.xlu1 %1754 }
 0x792   : > { %3472 = vpow2.f32 %v1769_v41  ;;  %v1766_v29 = vsub.f32 %v4228_v19, %v1755_v61 }
 0x794   : > { %v1777_v26 = vmul.f32 1.442695, %v1766_v29 }
 0x795   : > { %v1761_v62 = vpop.xlane.xlu1 %1760 }
 0x796   : > { %v1768_v44 = vsub.f32 %v4233_v63, %v1761_v62 }
 0x798   : > { %v1781_v46 = vmul.f32 1.442695, %v1768_v44 }
 0x799   : > { %v1823_v33 = vpop.permute.xlu1 %1822 }
 0x79a   : > { %3474 = vpow2.f32 %v1781_v46  ;;  %3191 = vmatprep.subr.bf16.mxu0 %v1823_v33 }
 0x79b   : > { %3476 = vpow2.f32 %v1777_v26 }
 0x79c   : > { %v3473_v4 = vpop.eup %3472  ;;  %3478 = vpow2.f32 %v1779_v42 }
 0x79d   : > { %v1783_v12 = vsel %vm990_vm8, %v3473_v4, 0.0 }
 0x79e   : > { %1784 = vadd.xlane.f32.xlu0 %v1783_v12  ;;  %v3565_v12 = vld [vmem:[%s4546_s6 + $0x10] sm:$0xff]  }
 0x7a4   : > { %v4290_v6 = vpop.eup %3474 }
 0x7a5   : > { %v1801_v19 = vsel %vm990_vm8, %v4290_v6, 0.0  ;;  %v4294_v63 = vpop.eup %3476 }
 0x7a6   : > { %1802 = vadd.xlane.f32.xlu0 %v1801_v19  ;;  %v1795_v49 = vsel %vm990_vm8, %v4294_v63, 0.0  ;;  %v4298_v1 = vpop.eup %3478 }
 0x7a7   : > { %v1798_v56 = vsel %vm990_vm8, %v4298_v1, 0.0 }
 0x7aa   : > { %1796 = vadd.xlane.f32.xlu0 %v1795_v49 }
 0x7af   : > { %1799 = vadd.xlane.f32.xlu1 %v1798_v56 }
 0x7c0   : > { %1824 = vrot.lane.b32.xlu0 %v3816_v43, %s3591_s20  ;;  %1828 = vrot.lane.b32.xlu1 %v3844_v51, %s3591_s20 }
 0x7ff   : > { %v1791_v11 = vpop.xlane.xlu0 %1790 }
 0x803   : > { %v1794_v53 = vpop.xlane.xlu1 %1793 }
 0x807   : > { %v1788_v16 = vpop.xlane.xlu1 %1787 }
 0x808   : > { %3480 = vrcp.f32 %v1788_v16 }
 0x80b   : > { %v1827_v9 = vpop.permute.xlu1 %1826 }
 0x812   : > { %v3481_v22 = vpop.eup %3480 }
 0x813   : > { %v1812_v5 = vmul.f32 %v3481_v22, %v4277_v34 }
 0x824   : > { %v3159_v60 = vpop.f32.mrb[32].mxu0 }
 0x825   : > { %v1506_v10 = vpop.f32.mrb[33].mxu0 }
 0x826   : > { %v3160_v13 = vpop.f32.mrb[34].mxu0 }
 0x827   : > { %v1537_v17 = vpack.c.bf16 %v3160_v13, %v3159_v60  ;;  %v1509_v47 = vpop.f32.mrb[35].mxu0 }
 0x828   : > { %v1536_v57 = vpack.c.bf16 %v1509_v47, %v1506_v10 }
 0x82a   : > { %3167 = vmatprep.mubr.msk.bf16.mxu0 %vm887_vm4, %v1536_v57 }
 0x82b   : > { %3168 = vmatmul.mubr.msk.bf16.vlgmr.msra.gmra.mrb[24].mxu0 %vm887_vm4, %v1537_v17  ;;  %v1785_v7 = vpop.xlane.xlu0 %1784 }
 0x82c   : > { %3192 = vmatpush3.bf16.msra.mxu0 %v1823_v33  ;;  %3482 = vrcp.f32 %v1785_v7  ;;  %v3163_v14 = vpop.f32.mrb[36].mxu0 }
 0x82d   : > { %v1522_v54 = vpop.f32.mrb[37].mxu0  ;;  %v1539_v55 = vpack.c.bf16 %v3163_v14, %v3163_v14  ;;  %3484 = vrcp.f32 %v1794_v53 }
 0x82e   : > { %v3164_v45 = vpop.f32.mrb[38].mxu0  ;;  %3486 = vrcp.f32 %v1791_v11 }
 0x82f   : > { %v1525_v0 = vpop.f32.mrb[39].mxu0 }
 0x830   : > { %v1538_v18 = vpack.c.bf16 %v1525_v0, %v1522_v54 }
 0x832   : > { %3171 = vmatprep.mubr.msk.bf16.mxu0 %vm887_vm4, %v1538_v18 }
 0x833   : > { %3172 = vmatmul.mubr.msk.bf16.gmra.mrb[40].mxu0 %vm887_vm4, %v1539_v55  ;;  %v1803_v2 = vpop.xlane.xlu0 %1802 }
 0x836   : > { %v3483_v23 = vpop.eup %3482 }
 0x837   : > { %v1797_v8 = vpop.xlane.xlu0 %1796  ;;  %v1811_v59 = vmul.f32 %v3483_v23, %v3473_v4  ;;  %v3485_v41 = vpop.eup %3484 }
 0x838   : > { %3488 = vrcp.f32 %v1797_v8  ;;  %v3487_v29 = vpop.eup %3486  ;;  %v1814_v62 = vmul.f32 %v3485_v41, %v4273_v30 }
 0x839   : > { %v1818_v35 = vpack.c.bf16 %v1812_v5, %v1811_v59  ;;  %3490 = vrcp.f32 %v1803_v2  ;;  %v1813_v21 = vmul.f32 %v3487_v29, %v4267_v28 }
 0x83b   : > { %3199 = vmatprep.mubr.msk.bf16.mxu0 %vm990_vm8, %v1818_v35  ;;  %v1825_v27 = vpop.permute.xlu0 %1824  ;;  %v1819_v33 = vpack.c.bf16 %v1814_v62, %v1813_v21 }
 0x83c   : > { %v1800_v39 = vpop.xlane.xlu1 %1799  ;;  %3193 = vmatprep.subr.bf16.mxu0 %v1825_v27 }
 0x83d   : > { %3492 = vrcp.f32 %v1800_v39  ;;  %3194 = vmatpush3.bf16.msra.mxu0 %v1825_v27 }
 0x83e   : > { %3195 = vmatprep.subr.bf16.mxu0 %v1827_v9 }
 0x840   : > { %v1829_v61 = vpop.permute.xlu1 %1828 }
 0x841   : > { %3196 = vmatpush3.bf16.msra.mxu0 %v1827_v9  ;;  %v1846_v44 = vsel %vm1084_vm2, %v1829_v61, 0 }
 0x842   : > { %3329 = vmatprep.subr.msk.bf16.mxu0 %vm1084_vm2, %v1829_v61  ;;  %v3489_v34 = vpop.eup %3488 }
 0x843   : > { %v3491_v3 = vpop.eup %3490  ;;  %v1815_v49 = vmul.f32 %v3489_v34, %v4294_v63 }
 0x844   : > { %v3227_v26 = vpop.f32.mrb[32].mxu1  ;;  %v1817_v16 = vmul.f32 %v3491_v3, %v4290_v6 }
 0x845   : > { %3198 = vmatpush3.bf16.msra.mxu0 %v1846_v44  ;;  %v2073_v46 = vpop.f32.mrb[33].mxu1  ;;  %v2105_v56 = vmul.f32 0.25, %v3227_v26 }
 0x846   : > { %v2103_v4 = vmul.f32 0.25, %v2073_v46  ;;  %v3228_v42 = vpop.f32.mrb[34].mxu1  ;;  %3207 = vmatprep.subr.bf16.mxu0 %v3565_v12 }
 0x847   : > { %v3493_v30 = vpop.eup %3492  ;;  %v2076_v19 = vpop.f32.mrb[35].mxu1  ;;  %v2112_v17 = vadd.f32 %v2105_v56, %v3967_v37  ;;  %v2106_v63 = vmul.f32 0.25, %v3228_v42 }
 0x848   : > { %v2110_v28 = vadd.f32 %v2103_v4, %v3971_v20  ;;  %v2104_v53 = vmul.f32 0.25, %v2076_v19  ;;  %3200 = vmatmul.mubr.msk.bf16.vlgmr.msra.gmra.mrb[44].mxu0 %vm990_vm8, %v1819_v33  ;;  %v1816_v60 = vmul.f32 %v3493_v30, %v4298_v1 }
 0x849   : > { %3208 = vmatpush3.bf16.msra.mxu0 %v3565_v12  ;;  %v2113_v45 = vadd.f32 %v2106_v63, %v3986_v31  ;;  %v2123_v37 = vsel %vm990_vm8, %v2112_v17, -inf }
 0x84a   : > { %v2111_v10 = vadd.f32 %v2104_v53, %v3976_v24  ;;  %v2117_v11 = vsel %vm990_vm8, %v2110_v28, -inf  ;;  %v1820_v13 = vpack.c.bf16 %v1816_v60, %v1815_v49  ;;  %v1821_v24 = vpack.c.bf16 %v1817_v16, %v1817_v16 }
 0x84b   : > { %2118 = vmax.xlane.f32.xlu1 %v2117_v11  ;;  %v2126_v22 = vsel %vm990_vm8, %v2113_v45, -inf }
 0x84c   : > { %3203 = vmatprep.mubr.msk.bf16.mxu0 %vm990_vm8, %v1820_v13  ;;  %v3231_v20 = vpop.f32.mrb[36].mxu1  ;;  %v2120_v47 = vsel %vm990_vm8, %v2111_v10, -inf }
 0x84d   : > { %v2089_v57 = vpop.f32.mrb[37].mxu1  ;;  %2121 = vmax.xlane.f32.xlu0 %v2120_v47  ;;  %v2109_v1 = vmul.f32 0.25, %v3231_v20 }
 0x84e   : > { %v2107_v7 = vmul.f32 0.25, %v2089_v57  ;;  %v3232_v14 = vpop.f32.mrb[38].mxu1 }
 0x84f   : > { %v2092_v54 = vpop.f32.mrb[39].mxu1  ;;  %v2116_v18 = vadd.f32 %v2109_v1, %v4000_v52 }
 0x850   : > { %v2114_v6 = vadd.f32 %v2107_v7, %v3994_v40  ;;  %v2108_v0 = vmul.f32 0.25, %v2092_v54  ;;  %3204 = vmatmul.mubr.msk.bf16.gmra.mrb[48].mxu0 %vm990_vm8, %v1821_v24 }
 0x851   : > { %2124 = vmax.xlane.f32.xlu0 %v2123_v37  ;;  %v2135_v31 = vsel %vm990_vm8, %v2116_v18, -inf }
 0x852   : > { %v2129_v55 = vsel %vm990_vm8, %v2114_v6, -inf  ;;  %v2115_v2 = vadd.f32 %v2108_v0, %v3997_v50 }
 0x853   : > { %2130 = vmax.xlane.f32.xlu1 %v2129_v55 }
 0x854   : > { %v2132_v40 = vsel %vm990_vm8, %v2115_v2, -inf }
 0x855   : > { %2127 = vmax.xlane.f32.xlu0 %v2126_v22 }
 0x857   : > { %2136 = vmax.xlane.f32.xlu1 %v2135_v31 }
 0x859   : > { %2133 = vmax.xlane.f32.xlu0 %v2132_v40 }
 0x86f   : > { %2198 = vrot.lane.b32.xlu0 %v3804_v38, %s3593_s23 }
 0x8d8   : > { %v2119_v23 = vpop.xlane.xlu1 %2118 }
 0x8d9   : > { %v2138_v52 = vsub.f32 %v2110_v28, %v2119_v23 }
 0x8da   : > { %v2122_v8 = vpop.xlane.xlu0 %2121 }
 0x8db   : > { %v2145_v35 = vmul.f32 1.442695, %v2138_v52  ;;  %v2139_v50 = vsub.f32 %v2111_v10, %v2122_v8 }
 0x8dd   : > { %v2147_v29 = vmul.f32 1.442695, %v2139_v50 }
 0x8de   : > { %v2125_v59 = vpop.xlane.xlu0 %2124 }
 0x8df   : > { %v2140_v5 = vsub.f32 %v2112_v17, %v2125_v59 }
 0x8e0   : > { %v2131_v9 = vpop.xlane.xlu1 %2130 }
 0x8e1   : > { %v2149_v27 = vmul.f32 1.442695, %v2140_v5  ;;  %v2142_v38 = vsub.f32 %v2114_v6, %v2131_v9 }
 0x8e2   : > { %v2128_v39 = vpop.xlane.xlu0 %2127 }
 0x8e3   : > { %3494 = vpow2.f32 %v2149_v27  ;;  %v2141_v41 = vsub.f32 %v2113_v45, %v2128_v39  ;;  %v2153_v3 = vmul.f32 1.442695, %v2142_v38 }
 0x8e4   : > { %v2137_v61 = vpop.xlane.xlu1 %2136  ;;  %3496 = vpow2.f32 %v2145_v35 }
 0x8e5   : > { %v2151_v62 = vmul.f32 1.442695, %v2141_v41  ;;  %v2144_v34 = vsub.f32 %v2116_v18, %v2137_v61 }
 0x8e6   : > { %v2134_v21 = vpop.xlane.xlu0 %2133 }
 0x8e7   : > { %3498 = vpow2.f32 %v2151_v62  ;;  %v2157_v44 = vmul.f32 1.442695, %v2144_v34  ;;  %v2143_v33 = vsub.f32 %v2115_v2, %v2134_v21 }
 0x8e8   : > { %3500 = vpow2.f32 %v2147_v29 }
 0x8e9   : > { %3502 = vpow2.f32 %v2157_v44  ;;  %v2155_v30 = vmul.f32 1.442695, %v2143_v33 }
 0x8ea   : > { %v2199_v26 = vpop.permute.xlu0 %2198  ;;  %3504 = vpow2.f32 %v2153_v3 }
 0x8eb   : > { %3233 = vmatprep.subr.bf16.mxu0 %v2199_v26  ;;  %3506 = vpow2.f32 %v2155_v30 }
 0x8ed   : > { %v4341_v46 = vpop.eup %3494 }
 0x8ee   : > { %v2165_v4 = vsel %vm990_vm8, %v4341_v46, 0.0  ;;  %v4345_v42 = vpop.eup %3496 }
 0x8ef   : > { %2166 = vadd.xlane.f32.xlu0 %v2165_v4  ;;  %v2159_v19 = vsel %vm990_vm8, %v4345_v42, 0.0 }
 0x8f1   : > { %v4347_v12 = vpop.eup %3498 }
 0x8f2   : > { %v2168_v49 = vsel %vm990_vm8, %v4347_v12, 0.0  ;;  %v3501_v56 = vpop.eup %3500 }
 0x8f3   : > { %2160 = vadd.xlane.f32.xlu0 %v2159_v19  ;;  %2169 = vadd.xlane.f32.xlu1 %v2168_v49  ;;  %v2162_v28 = vsel %vm990_vm8, %v3501_v56, 0.0  ;;  %v4354_v53 = vpop.eup %3502 }
 0x8f4   : > { %v2177_v60 = vsel %vm990_vm8, %v4354_v53, 0.0  ;;  %v4358_v10 = vpop.eup %3504 }
 0x8f5   : > { %v2171_v11 = vsel %vm990_vm8, %v4358_v10, 0.0  ;;  %v4362_v13 = vpop.eup %3506 }
 0x8f6   : > { %v2174_v16 = vsel %vm990_vm8, %v4362_v13, 0.0 }
 0x8f7   : > { %2163 = vadd.xlane.f32.xlu1 %v2162_v28 }
 0x8fb   : > { %2178 = vadd.xlane.f32.xlu1 %v2177_v60 }
 0x8ff   : > { %2172 = vadd.xlane.f32.xlu1 %v2171_v11 }
 0x903   : > { %2175 = vadd.xlane.f32.xlu1 %v2174_v16 }
 0x906   : > { %v3173_v17 = vpop.f32.mrb[40].mxu0 }
 0x907   : > { %v4367_v63 = vadd.f32 %v3173_v17, %v4167_v58  ;;  %v1602_v20 = vpop.f32.mrb[41].mxu0 }
 0x908   : > { %v4370_v47 = vadd.f32 %v1602_v20, %v4172_v15  ;;  %v3174_v57 = vpop.f32.mrb[42].mxu0 }
 0x909   : > { %v1605_v1 = vpop.f32.mrb[43].mxu0  ;;  %2202 = vrot.lane.b32.xlu0 %v3832_v48, %s3593_s23 }
 0x90a   : > { %v4375_v7 = vadd.f32 %v1605_v1, %v4175_v25 }
 0x90d   : > { %2204 = vrot.lane.b32.xlu0 %v3844_v51, %s3593_s23 }
 0x914   : > { %2200 = vrot.lane.b32.xlu1 %v3816_v43, %s3593_s23 }
 0x91b   : > { %v3201_v58 = vpop.f32.mrb[44].mxu0 }
 0x91c   : > { %v1882_v14 = vpop.f32.mrb[45].mxu0 }
 0x91d   : > { %v3202_v24 = vpop.f32.mrb[46].mxu0 }
 0x91e   : > { %v1913_v54 = vpack.c.bf16 %v3202_v24, %v3201_v58  ;;  %v1885_v15 = vpop.f32.mrb[47].mxu0 }
 0x91f   : > { %v1912_v45 = vpack.c.bf16 %v1885_v15, %v1882_v14 }
 0x921   : > { %3209 = vmatprep.mubr.msk.bf16.mxu0 %vm887_vm4, %v1912_v45 }
 0x922   : > { %3210 = vmatmul.mubr.msk.bf16.vlgmr.msra.gmra.mrb[24].mxu0 %vm887_vm4, %v1913_v54 }
 0x923   : > { %3234 = vmatpush3.bf16.msra.mxu0 %v2199_v26  ;;  %v3205_v48 = vpop.f32.mrb[48].mxu0  ;;  %v3566_v26 = vld [vmem:[%s4546_s6 + $0x18] sm:$0xff]  }
 0x924   : > { %v1898_v25 = vpop.f32.mrb[49].mxu0  ;;  %v1915_v51 = vpack.c.bf16 %v3205_v48, %v3205_v48  ;;  %v3567_v48 = vld [vmem:[%s3670_s22] sm:$0xff] }
 0x925   : > { %v3206_v6 = vpop.f32.mrb[50].mxu0 }
 0x926   : > { %v1901_v0 = vpop.f32.mrb[51].mxu0 }
 0x927   : > { %v1914_v37 = vpack.c.bf16 %v1901_v0, %v1898_v25  ;;  %v3568_v0 = vld [vmem:[%s3670_s22 + $0x10] sm:$0xff] }
 0x929   : > { %3213 = vmatprep.mubr.msk.bf16.mxu0 %vm887_vm4, %v1914_v37 }
 0x92a   : > { %3214 = vmatmul.mubr.msk.bf16.gmra.mrb[52].mxu0 %vm887_vm4, %v1915_v51  ;;  %v3569_v51 = vld [vmem:[%s3670_s22 + $0x8] sm:$0xff] }
 0x97c   : > { %v2167_v43 = vpop.xlane.xlu0 %2166 }
 0x980   : > { %v2170_v18 = vpop.xlane.xlu1 %2169  ;;  %v2161_v55 = vpop.xlane.xlu0 %2160 }
 0x981   : > { %3508 = vrcp.f32 %v2161_v55 }
 0x984   : > { %v2164_v2 = vpop.xlane.xlu1 %2163  ;;  %v2203_v9 = vpop.permute.xlu0 %2202 }
 0x985   : > { %3510 = vrcp.f32 %v2164_v2 }
 0x986   : > { %3512 = vrcp.f32 %v2170_v18 }
 0x987   : > { %3514 = vrcp.f32 %v2167_v43 }
 0x988   : > { %v2179_v22 = vpop.xlane.xlu1 %2178  ;;  %v2205_v41 = vpop.permute.xlu0 %2204 }
 0x989   : > { %v2222_v21 = vsel %vm1084_vm2, %v2205_v41, 0 }
 0x98b   : > { %v3509_v40 = vpop.eup %3508 }
 0x98c   : > { %v2173_v31 = vpop.xlane.xlu1 %2172  ;;  %v2187_v52 = vmul.f32 %v3509_v40, %v4345_v42  ;;  %v3570_v40 = vld [vmem:[%s3670_s22 + $0x18] sm:$0xff] }
 0x98d   : > { %3516 = vrcp.f32 %v2173_v31 }
 0x98f   : > { %v3511_v23 = vpop.eup %3510 }
 0x990   : > { %v2176_v8 = vpop.xlane.xlu1 %2175  ;;  %v2188_v59 = vmul.f32 %v3511_v23, %v3501_v56  ;;  %v3513_v50 = vpop.eup %3512 }
 0x991   : > { %3518 = vrcp.f32 %v2176_v8  ;;  %v3515_v27 = vpop.eup %3514  ;;  %v2190_v29 = vmul.f32 %v3513_v50, %v4347_v12 }
 0x992   : > { %v2194_v5 = vpack.c.bf16 %v2188_v59, %v2187_v52  ;;  %3520 = vrcp.f32 %v2179_v22  ;;  %v2189_v34 = vmul.f32 %v3515_v27, %v4341_v46  ;;  %v3572_v27 = vld [vmem:[%s3670_s22 + $0x20] sm:$0xff] }
 0x994   : > { %v2201_v35 = vpop.permute.xlu1 %2200  ;;  %3241 = vmatprep.mubr.msk.bf16.mxu0 %vm990_vm8, %v2194_v5  ;;  %v2195_v44 = vpack.c.bf16 %v2190_v29, %v2189_v34 }
 0x995   : > { %3235 = vmatprep.subr.bf16.mxu0 %v2201_v35 }
 0x996   : > { %3236 = vmatpush3.bf16.msra.mxu0 %v2201_v35  ;;  %v3571_v35 = vld [vmem:[%s3670_s22 + $0x30] sm:$0xff] }
 0x997   : > { %3237 = vmatprep.subr.bf16.mxu0 %v2203_v9  ;;  %v3517_v39 = vpop.eup %3516 }
 0x998   : > { %v2191_v38 = vmul.f32 %v3517_v39, %v4358_v10 }
 0x99a   : > { %3238 = vmatpush3.bf16.msra.mxu0 %v2203_v9 }
 0x99b   : > { %v3519_v61 = vpop.eup %3518  ;;  %3334 = vmatprep.subr.msk.bf16.mxu0 %vm1084_vm2, %v2205_v41 }
 0x99c   : > { %v2192_v62 = vmul.f32 %v3519_v61, %v4362_v13  ;;  %v3521_v3 = vpop.eup %3520  ;;  %v3573_v61 = vld [vmem:[%s3670_s22 + $0x28] sm:$0xff] }
 0x99d   : > { %v2193_v46 = vmul.f32 %v3521_v3, %v4354_v53 }
 0x99e   : > { %3240 = vmatpush3.bf16.msra.mxu0 %v2222_v21  ;;  %v2196_v33 = vpack.c.bf16 %v2192_v62, %v2191_v38 }
 0x99f   : > { %3249 = vmatprep.subr.bf16.mxu0 %v3566_v26  ;;  %v2197_v4 = vpack.c.bf16 %v2193_v46, %v2193_v46 }
 0x9a1   : > { %3242 = vmatmul.mubr.msk.bf16.vlgmr.msra.gmra.mrb[56].mxu0 %vm990_vm8, %v2195_v44 }
 0x9a2   : > { %3245 = vmatprep.mubr.msk.bf16.mxu0 %vm990_vm8, %v2196_v33  ;;  %3250 = vmatpush3.bf16.msra.mxu0 %v3566_v26 }
 0x9a9   : > { %3246 = vmatmul.mubr.msk.bf16.gmra.mrb[60].mxu0 %vm990_vm8, %v2197_v4  ;;  %v3378_v4 = vld [vmem:[%s4549_s9 + $0x4] ss:$8 sps:$4 sm:$0xff]  }
 0x9aa   : > { %2516 = vmatprep.subr.bf16.mxu1 %v3378_v4  ;;  %v3389_v4 = vld [vmem:[%s4550_s10 + $0x8] sm:$0xff]  }
 0x9fd   : > { %v3215_v42 = vpop.f32.mrb[52].mxu0 }
 0x9fe   : > { %v1998_v12 = vadd.f32 %v3215_v42, %v4367_v63  ;;  %v1978_v30 = vpop.f32.mrb[53].mxu0  ;;  %v3376_v42 = vld [vmem:[%s4549_s9] ss:$8 sps:$4 sm:$0xff]  }
 0x9ff   : > { %v1996_v19 = vadd.f32 %v1978_v30, %v4370_v47  ;;  %v3216_v49 = vpop.f32.mrb[54].mxu0  ;;  %2517 = vmatpush1.bf16.msra.mxu1 %v3376_v42  ;;  %v3379_v30 = vld [vmem:[%s4549_s9 + $0x10] ss:$8 sps:$4 sm:$0xff]  }
 0xa00   : > { %v1981_v56 = vpop.f32.mrb[55].mxu0  ;;  %v3382_v49 = vld [vmem:[%s4549_s9 + $0x20] ss:$8 sps:$4 sm:$0xff]   ;;  %v3391_v42 = vld [vmem:[%s4550_s10 + $0x18] sm:$0xff]  }
 0xa01   : > { %v1997_v28 = vadd.f32 %v1981_v56, %v4375_v7  ;;  %v3387_v56 = vld [vmem:[%s4549_s9 + $0x34] ss:$8 sps:$4 sm:$0xff]  }
 0xa74   : > { %v3243_v60 = vpop.f32.mrb[56].mxu0 }
 0xa75   : > { %v2258_v10 = vpop.f32.mrb[57].mxu0 }
 0xa76   : > { %v3244_v11 = vpop.f32.mrb[58].mxu0 }
 0xa77   : > { %v2289_v13 = vpack.c.bf16 %v3244_v11, %v3243_v60  ;;  %v2261_v16 = vpop.f32.mrb[59].mxu0 }
 0xa78   : > { %v2288_v17 = vpack.c.bf16 %v2261_v16, %v2258_v10 }
 0xa7a   : > { %3251 = vmatprep.mubr.msk.bf16.mxu0 %vm887_vm4, %v2288_v17 }
 0xa7b   : > { %3252 = vmatmul.mubr.msk.bf16.vlgmr.msra.gmra.mrb[24].mxu0 %vm887_vm4, %v2289_v13 }
 0xa7c   : > { %v3247_v53 = vpop.f32.mrb[60].mxu0 }
 0xa7d   : > { %v2274_v63 = vpop.f32.mrb[61].mxu0  ;;  %v2291_v1 = vpack.c.bf16 %v3247_v53, %v3247_v53 }
 0xa7e   : > { %v3248_v20 = vpop.f32.mrb[62].mxu0 }
 0xa7f   : > { %v2277_v47 = vpop.f32.mrb[63].mxu0 }
 0xa80   : > { %v2290_v57 = vpack.c.bf16 %v2277_v47, %v2274_v63 }
 0xa82   : > { %3255 = vmatprep.mubr.msk.bf16.mxu0 %vm887_vm4, %v2290_v57 }
 0xa83   : > { %3256 = vmatmul.mubr.msk.bf16.gmra.mrb[64].mxu0 %vm887_vm4, %v2291_v1 }
 0xb4e   : > { %v3253_v7 = vpop.f32.mrb[24].mxu0 }
 0xb4f   : > { %v3299_v58 = vadd.f32 %v3253_v7, %v4164_v36  ;;  %v2338_v14 = vpop.f32.mrb[25].mxu0 }
 0xb50   : > { %v3300_v24 = vadd.f32 %v2338_v14, %v4164_v36  ;;  %v3254_v54 = vpop.f32.mrb[26].mxu0 }
 0xb51   : > { %v3301_v15 = vadd.f32 %v3254_v54, %v4164_v36  ;;  %v2341_v45 = vpop.f32.mrb[27].mxu0  ;;  %v4415_v37 = vadd.f32 %v3568_v0, %v3299_v58  ;;  %v2931_v0 = vld [vmem:[%s4548_s8] ss:$0 sm:$0xff] }
 0xb52   : > { %v4411_v25 = vadd.f32 %v3567_v48, %v3300_v24  ;;  %v3302_v6 = vadd.f32 %v2341_v45, %v4164_v36 }
 0xb53   : > { %v4426_v23 = vadd.f32 %v3570_v40, %v3301_v15  ;;  %v2384_v5 = vmul.f32 %v4415_v37, %v4415_v37 }
 0xb54   : > { %v4418_v43 = vadd.f32 %v3569_v51, %v3302_v6  ;;  %v2382_v18 = vmul.f32 %v4411_v25, %v4411_v25 }
 0xb55   : > { %v2395_v62 = vsel %vm416_vm0, %v2384_v5, 0.0  ;;  %v2385_v21 = vmul.f32 %v4426_v23, %v4426_v23 }
 0xb56   : > { %v3257_v55 = vpop.f32.mrb[64].mxu0  ;;  %v2389_v2 = vsel %vm416_vm0, %v2382_v18, 0.0  ;;  %v2383_v22 = vmul.f32 %v4418_v43, %v4418_v43 }
 0xb57   : > { %v2374_v31 = vadd.f32 %v3257_v55, %v1998_v12  ;;  %2390 = vadd.xlane.f32.xlu1 %v2389_v2  ;;  %v2354_v36 = vpop.f32.mrb[65].mxu0  ;;  %v2398_v26 = vsel %vm416_vm0, %v2385_v21, 0.0  ;;  %v3381_v12 = vld [vmem:[%s4549_s9 + $0x14] ss:$8 sps:$4 sm:$0xff]  }
 0xb58   : > { %v2372_v8 = vadd.f32 %v2354_v36, %v1996_v19  ;;  %v3258_v52 = vpop.f32.mrb[66].mxu0  ;;  %v2392_v59 = vsel %vm416_vm0, %v2383_v22, 0.0  ;;  %2518 = vmatprep.subr.bf16.mxu1 %v3381_v12  ;;  %v3384_v19 = vld [vmem:[%s4549_s9 + $0x24] ss:$8 sps:$4 sm:$0xff]  }
 0xb59   : > { %2393 = vadd.xlane.f32.xlu0 %v2392_v59  ;;  %v2357_v9 = vpop.f32.mrb[67].mxu0  ;;  %v4432_v50 = vadd.f32 %v3571_v35, %v2374_v31  ;;  %2519 = vmatpush1.bf16.msra.mxu1 %v3379_v30  ;;  %v3392_v12 = vld [vmem:[%s4550_s10 + $0x20] sm:$0xff]   ;;  %v3393_v30 = vld [vmem:[%s4550_s10 + $0x28] sm:$0xff]  }
 0xb5a   : > { %v4435_v39 = vadd.f32 %v3572_v27, %v2372_v8  ;;  %v2373_v41 = vadd.f32 %v2357_v9, %v1997_v28  ;;  %2520 = vmatprep.subr.bf16.mxu1 %v3384_v19  ;;  %v3385_v28 = vld [vmem:[%s4549_s9 + $0x30] ss:$8 sps:$4 sm:$0xff]  }
 0xb5b   : > { %v2388_v44 = vmul.f32 %v4432_v50, %v4432_v50  ;;  %v3394_v19 = vld [vmem:[%s4550_s10 + $0x30] sm:$0xff]  }
 0xb5c   : > { %v4438_v29 = vadd.f32 %v3573_v61, %v2373_v41  ;;  %v2386_v34 = vmul.f32 %v4435_v39, %v4435_v39 }
 0xb5d   : > { %2396 = vadd.xlane.f32.xlu0 %v2395_v62  ;;  %v2407_v33 = vsel %vm416_vm0, %v2388_v44, 0.0  ;;  %2521 = vmatpush1.bf16.msra.mxu1 %v3382_v49  ;;  %v3395_v49 = vld [vmem:[%s4550_s10 + $0x38] sm:$0xff]  }
 0xb5e   : > { %v2401_v38 = vsel %vm416_vm0, %v2386_v34, 0.0  ;;  %v2387_v3 = vmul.f32 %v4438_v29, %v4438_v29  ;;  %2522 = vmatprep.subr.bf16.mxu1 %v3387_v56 }
 0xb5f   : > { %2402 = vadd.xlane.f32.xlu1 %v2401_v38 }
 0xb60   : > { %v2404_v46 = vsel %vm416_vm0, %v2387_v3, 0.0 }
 0xb61   : > { %2399 = vadd.xlane.f32.xlu0 %v2398_v26  ;;  %2523 = vmatpush1.bf16.msra.mxu1 %v3385_v28 }
 0xb63   : > { %2408 = vadd.xlane.f32.xlu1 %v2407_v33 }
 0xb65   : > { %2405 = vadd.xlane.f32.xlu0 %v2404_v46  ;;  %v3388_v46 = vld [vmem:[%s4550_s10] sm:$0xff]  }
 0xb66   : > { %3259 = vmatprep.subr.bf16.mxu0 %v3388_v46  ;;  %3283 = vmatprep.subr.bf16.mxu1 %v3388_v46 }
 0xb67   : > { %3260 = vmatpush3.bf16.msra.mxu0 %v3388_v46 }
 0xb68   : > { %3261 = vmatprep.subr.bf16.mxu0 %v3389_v4 }
 0xb6b   : > { %3262 = vmatpush3.bf16.msra.mxu0 %v3389_v4 }
 0xbe4   : > { %v2391_v60 = vpop.xlane.xlu1 %2390 }
 0xbe5   : > { %v2410_v10 = vmul.f32 0.015625, %v2391_v60 }
 0xbe6   : > { %v2394_v11 = vpop.xlane.xlu0 %2393 }
 0xbe7   : > { %v2417_v13 = vadd.f32 1e-05, %v2410_v10  ;;  %v2411_v16 = vmul.f32 0.015625, %v2394_v11 }
 0xbe9   : > { %3522 = vrsqrt.f32 %v2417_v13  ;;  %v2418_v17 = vadd.f32 1e-05, %v2411_v16 }
 0xbea   : > { %v2397_v53 = vpop.xlane.xlu0 %2396 }
 0xbeb   : > { %3524 = vrsqrt.f32 %v2418_v17  ;;  %v2412_v63 = vmul.f32 0.015625, %v2397_v53 }
 0xbec   : > { %v2403_v20 = vpop.xlane.xlu1 %2402 }
 0xbed   : > { %v2419_v47 = vadd.f32 1e-05, %v2412_v63  ;;  %v2414_v57 = vmul.f32 0.015625, %v2403_v20 }
 0xbee   : > { %v2400_v1 = vpop.xlane.xlu0 %2399 }
 0xbef   : > { %3526 = vrsqrt.f32 %v2419_v47  ;;  %v2413_v7 = vmul.f32 0.015625, %v2400_v1  ;;  %v2421_v14 = vadd.f32 1e-05, %v2414_v57 }
 0xbf0   : > { %v2409_v24 = vpop.xlane.xlu1 %2408 }
 0xbf1   : > { %v2420_v58 = vadd.f32 1e-05, %v2413_v7  ;;  %v2416_v51 = vmul.f32 0.015625, %v2409_v24 }
 0xbf2   : > { %v2406_v54 = vpop.xlane.xlu0 %2405 }
 0xbf3   : > { %v3523_v15 = vpop.eup %3522  ;;  %3528 = vrsqrt.f32 %v2420_v58  ;;  %v2415_v45 = vmul.f32 0.015625, %v2406_v54  ;;  %v2423_v36 = vadd.f32 1e-05, %v2416_v51 }
 0xbf4   : > { %v2431_v48 = vmul.f32 %v3523_v15, %v4411_v25  ;;  %3530 = vrsqrt.f32 %v2421_v14 }
 0xbf5   : > { %v3525_v6 = vpop.eup %3524  ;;  %v2422_v18 = vadd.f32 1e-05, %v2415_v45 }
 0xbf6   : > { %v2432_v55 = vmul.f32 %v3525_v6, %v4418_v43  ;;  %v2445_v2 = vmul.f32 %v2931_v0, %v2431_v48 }
 0xbf7   : > { %3532 = vrsqrt.f32 %v2422_v18 }
 0xbf8   : > { %v2446_v22 = vmul.f32 %v2931_v0, %v2432_v55  ;;  %3534 = vrsqrt.f32 %v2423_v36 }
 0xbf9   : > { %v3527_v31 = vpop.eup %3526 }
 0xbfa   : > { %v2452_v40 = vpack.c.bf16 %v2446_v22, %v2445_v2  ;;  %v2433_v8 = vmul.f32 %v3527_v31, %v4415_v37 }
 0xbfc   : > { %2940 = vmatmul.mubr.msk.bf16.vlgmr.msra.gmra.mrb[40].mxu1 %vm416_vm0, %v2452_v40  ;;  %v2447_v9 = vmul.f32 %v2931_v0, %v2433_v8 }
 0xbfd   : > { %v3529_v52 = vpop.eup %3528  ;;  %2558 = vmatprep.mubr.bf16.mxu1 %v3583_v32  ;;  %3291 = vmatpush3.bf16.msra.mxu1 %v3388_v46 }
 0xbfe   : > { %v2434_v59 = vmul.f32 %v3529_v52, %v4426_v23  ;;  %v3531_v5 = vpop.eup %3530  ;;  %3284 = vmatprep.subr.bf16.mxu1 %v3389_v4 }
 0xbff   : > { %v2435_v62 = vmul.f32 %v3531_v5, %v4435_v39 }
 0xc00   : > { %v2448_v35 = vmul.f32 %v2931_v0, %v2434_v59 }
 0xc01   : > { %v3533_v27 = vpop.eup %3532  ;;  %v2449_v38 = vmul.f32 %v2931_v0, %v2435_v62  ;;  %3292 = vmatpush3.bf16.msra.mxu1 %v3389_v4 }
 0xc02   : > { %v2453_v41 = vpack.c.bf16 %v2448_v35, %v2447_v9  ;;  %v2436_v61 = vmul.f32 %v3533_v27, %v4438_v29  ;;  %v3535_v21 = vpop.eup %3534 }
 0xc03   : > { %v2437_v26 = vmul.f32 %v3535_v21, %v4432_v50 }
 0xc04   : > { %2941 = vmatmul.mubr.msk.bf16.gmra.mrb[44].mxu1 %vm416_vm0, %v2453_v41  ;;  %v2450_v34 = vmul.f32 %v2931_v0, %v2436_v61 }
 0xc05   : > { %2568 = vmatprep.mubr.bf16.mxu1 %v3583_v32  ;;  %v2451_v3 = vmul.f32 %v2931_v0, %v2437_v26 }
 0xc06   : > { %v2454_v44 = vpack.c.bf16 %v2450_v34, %v2449_v38 }
 0xc07   : > { %v2455_v33 = vpack.c.bf16 %v2451_v3, %v2451_v3 }
 0xc0c   : > { %2942 = vmatmul.mubr.msk.bf16.gmra.mrb[48].mxu1 %vm416_vm0, %v2454_v44 }
 0xc0d   : > { %2578 = vmatprep.mubr.bf16.mxu1 %v3583_v32  ;;  %v3390_v32 = vld [vmem:[%s4550_s10 + $0x10] sm:$0xff]  }
 0xc0e   : > { %3263 = vmatprep.subr.bf16.mxu0 %v3390_v32  ;;  %3285 = vmatprep.subr.bf16.mxu1 %v3390_v32 }
 0xc0f   : > { %3264 = vmatpush3.bf16.msra.mxu0 %v3390_v32  ;;  %3293 = vmatpush3.bf16.msra.mxu1 %v3390_v32 }
 0xc10   : > { %3265 = vmatprep.subr.bf16.mxu0 %v3391_v42  ;;  %3286 = vmatprep.subr.bf16.mxu1 %v3391_v42 }
 0xc13   : > { %3266 = vmatpush3.bf16.msra.mxu0 %v3391_v42  ;;  %3294 = vmatpush3.bf16.msra.mxu1 %v3391_v42 }
 0xc14   : > { %2943 = vmatmul.mubr.msk.bf16.gmra.mrb[52].mxu1 %vm416_vm0, %v2455_v33  ;;  %3267 = vmatprep.subr.bf16.mxu0 %v3392_v12 }
 0xc15   : > { %3287 = vmatprep.subr.bf16.mxu1 %v3392_v12 }
 0xc17   : > { %3268 = vmatpush3.bf16.msra.mxu0 %v3392_v12  ;;  %3295 = vmatpush3.bf16.msra.mxu1 %v3392_v12 }
 0xc18   : > { %3269 = vmatprep.subr.bf16.mxu0 %v3393_v30  ;;  %3288 = vmatprep.subr.bf16.mxu1 %v3393_v30 }
 0xc1b   : > { %3270 = vmatpush3.bf16.msra.mxu0 %v3393_v30  ;;  %3296 = vmatpush3.bf16.msra.mxu1 %v3393_v30 }
 0xc1c   : > { %3271 = vmatprep.subr.bf16.mxu0 %v3394_v19  ;;  %3289 = vmatprep.subr.bf16.mxu1 %v3394_v19 }
 0xc1f   : > { %3272 = vmatpush3.bf16.msra.mxu0 %v3394_v19  ;;  %3297 = vmatpush3.bf16.msra.mxu1 %v3394_v19 }
 0xc20   : > { %3273 = vmatprep.subr.bf16.mxu0 %v3395_v49  ;;  %3290 = vmatprep.subr.bf16.mxu1 %v3395_v49 }
 0xc23   : > { %3274 = vmatpush3.bf16.msra.mxu0 %v3395_v49  ;;  %3298 = vmatpush3.bf16.msra.mxu1 %v3395_v49 }
 0xccf   : > { %v2550_v56 = vpop.f32.mrb[40].mxu1 }
 0xcd0   : > { %v2944_v28 = vmul.f32 -1.442695, %v2550_v56  ;;  %v2552_v60 = vpop.f32.mrb[41].mxu1 }
 0xcd1   : > { %v2554_v10 = vpop.f32.mrb[42].mxu1 }
 0xcd2   : > { %3536 = vpow2.f32 %v2944_v28  ;;  %v2945_v11 = vmul.f32 -1.442695, %v2554_v10  ;;  %v2556_v13 = vpop.f32.mrb[43].mxu1 }
 0xcd4   : > { %3538 = vpow2.f32 %v2945_v11 }
 0xcd7   : > { %v2560_v16 = vpop.f32.mrb[44].mxu1 }
 0xcd8   : > { %v2946_v17 = vmul.f32 -1.442695, %v2560_v16  ;;  %v2562_v53 = vpop.f32.mrb[45].mxu1 }
 0xcd9   : > { %v2564_v63 = vpop.f32.mrb[46].mxu1 }
 0xcda   : > { %3540 = vpow2.f32 %v2946_v17  ;;  %v2947_v20 = vmul.f32 -1.442695, %v2564_v63  ;;  %v2566_v47 = vpop.f32.mrb[47].mxu1 }
 0xcdc   : > { %v3537_v57 = vpop.eup %3536  ;;  %3542 = vpow2.f32 %v2947_v20 }
 0xcdd   : > { %v2608_v1 = vadd.f32 1.0, %v3537_v57 }
 0xcde   : > { %v3539_v7 = vpop.eup %3538 }
 0xcdf   : > { %3544 = vrcp.f32 %v2608_v1  ;;  %v2609_v58 = vadd.f32 1.0, %v3539_v7  ;;  %v2570_v14 = vpop.f32.mrb[48].mxu1 }
 0xce0   : > { %v2948_v24 = vmul.f32 -1.442695, %v2570_v14  ;;  %v2572_v54 = vpop.f32.mrb[49].mxu1 }
 0xce1   : > { %3546 = vrcp.f32 %v2609_v58  ;;  %v2574_v15 = vpop.f32.mrb[50].mxu1 }
 0xce2   : > { %3548 = vpow2.f32 %v2948_v24  ;;  %v2949_v45 = vmul.f32 -1.442695, %v2574_v15  ;;  %v2576_v48 = vpop.f32.mrb[51].mxu1 }
 0xce4   : > { %v3541_v6 = vpop.eup %3540  ;;  %3550 = vpow2.f32 %v2949_v45 }
 0xce5   : > { %v2610_v0 = vadd.f32 1.0, %v3541_v6 }
 0xce6   : > { %v3543_v51 = vpop.eup %3542 }
 0xce7   : > { %3552 = vrcp.f32 %v2610_v0  ;;  %v2611_v18 = vadd.f32 1.0, %v3543_v51  ;;  %v2580_v55 = vpop.f32.mrb[52].mxu1 }
 0xce8   : > { %v2950_v2 = vmul.f32 -1.442695, %v2580_v55  ;;  %v2582_v22 = vpop.f32.mrb[53].mxu1 }
 0xce9   : > { %v3545_v31 = vpop.eup %3544  ;;  %3554 = vrcp.f32 %v2611_v18  ;;  %v2584_v36 = vpop.f32.mrb[54].mxu1 }
 0xcea   : > { %v2629_v40 = vmul.f32 %v3545_v31, %v2550_v56  ;;  %3556 = vpow2.f32 %v2950_v2  ;;  %v2585_v8 = vpop.f32.mrb[55].mxu1 }
 0xceb   : > { %v3547_v52 = vpop.eup %3546 }
 0xcec   : > { %v3549_v59 = vpop.eup %3548  ;;  %v2636_v5 = vmul.f32 %v2629_v40, %v2552_v60  ;;  %v2630_v9 = vmul.f32 %v3547_v52, %v2554_v10 }
 0xced   : > { %v2612_v35 = vadd.f32 1.0, %v3549_v59 }
 0xcee   : > { %v3551_v27 = vpop.eup %3550  ;;  %v2637_v41 = vmul.f32 %v2630_v9, %v2556_v13 }
 0xcef   : > { %3558 = vrcp.f32 %v2612_v35  ;;  %v2613_v61 = vadd.f32 1.0, %v3551_v27 }
 0xcf0   : > { %v2643_v62 = vpack.c.bf16 %v2637_v41, %v2636_v5 }
 0xcf1   : > { %v3553_v34 = vpop.eup %3552  ;;  %3560 = vrcp.f32 %v2613_v61 }
 0xcf2   : > { %v2631_v21 = vmul.f32 %v3553_v34, %v2560_v16  ;;  %3275 = vmatprep.mubr.bf16.mxu0 %v2643_v62 }
 0xcf3   : > { %v3555_v38 = vpop.eup %3554 }
 0xcf4   : > { %v3557_v44 = vpop.eup %3556  ;;  %v2638_v26 = vmul.f32 %v2631_v21, %v2562_v53  ;;  %v2632_v3 = vmul.f32 %v3555_v38, %v2564_v63 }
 0xcf5   : > { %v2614_v33 = vadd.f32 1.0, %v3557_v44 }
 0xcf6   : > { %v2639_v46 = vmul.f32 %v2632_v3, %v2566_v47 }
 0xcf7   : > { %3562 = vrcp.f32 %v2614_v33 }
 0xcf8   : > { %v2644_v4 = vpack.c.bf16 %v2639_v46, %v2638_v26 }
 0xcf9   : > { %v3559_v32 = vpop.eup %3558 }
 0xcfa   : > { %v2633_v42 = vmul.f32 %v3559_v32, %v2570_v14  ;;  %3276 = vmatmul.mubr.bf16.vlgmr.msra.gmra.mrb[68].mxu0 %v2644_v4 }
 0xcfb   : > { %v3561_v12 = vpop.eup %3560 }
 0xcfc   : > { %v2640_v30 = vmul.f32 %v2633_v42, %v2572_v54  ;;  %v2634_v19 = vmul.f32 %v3561_v12, %v2574_v15 }
 0xcfe   : > { %v2641_v49 = vmul.f32 %v2634_v19, %v2576_v48 }
 0xd00   : > { %v2645_v56 = vpack.c.bf16 %v2641_v49, %v2640_v30 }
 0xd01   : > { %v3563_v28 = vpop.eup %3562 }
 0xd02   : > { %v2635_v60 = vmul.f32 %v3563_v28, %v2580_v55  ;;  %3279 = vmatprep.mubr.bf16.mxu1 %v2645_v56 }
 0xd04   : > { %v2642_v10 = vmul.f32 %v2635_v60, %v2582_v22 }
 0xd06   : > { %v2646_v11 = vpack.c.bf16 %v2642_v10, %v2642_v10 }
 0xd08   : > { %3280 = vmatmul.mubr.bf16.vlgmr.msra.gmra.mrb[56].mxu1 %v2646_v11 }
 0xdcd   : > { %v3277_v13 = vpop.f32.mrb[68].mxu0 }
 0xdce   : > { %v2777_v16 = vadd.f32 %v3277_v13, %v4415_v37  ;;  %v2745_v17 = vpop.f32.mrb[69].mxu0 }
 0xdcf   : > { %v2775_v53 = vadd.f32 %v2745_v17, %v4411_v25  ;;  %v3278_v63 = vpop.f32.mrb[70].mxu0 }
 0xdd0   : > { %2784 = vst.msk [vmem:[%s400_s14 + $0x10] sm:$0xff] %vm416_vm0, %v2777_v16  ;;  %v2778_v20 = vadd.f32 %v3278_v63, %v4426_v23  ;;  %v2748_v47 = vpop.f32.mrb[71].mxu0 }
 0xdd1   : > { %2782 = vst.msk [vmem:[%s400_s14] sm:$0xff] %vm416_vm0, %v2775_v53  ;;  %v2776_v57 = vadd.f32 %v2748_v47, %v4418_v43 }
 0xdd2   : > { %2785 = vst.msk [vmem:[%s400_s14 + $0x18] sm:$0xff] %vm416_vm0, %v2778_v20 }
 0xdd3   : > { %2783 = vst.msk [vmem:[%s400_s14 + $0x8] sm:$0xff] %vm416_vm0, %v2776_v57 }
 0xddb   : > { %v3281_v1 = vpop.f32.mrb[56].mxu1 }
 0xddc   : > { %v2781_v37 = vadd.f32 %v3281_v1, %v4432_v50  ;;  %v2761_v7 = vpop.f32.mrb[57].mxu1 }
 0xddd   : > { %v2779_v25 = vadd.f32 %v2761_v7, %v4435_v39  ;;  %v3282_v58 = vpop.f32.mrb[58].mxu1 }
 0xdde   : > { %2788 = vst.msk [vmem:[%s400_s14 + $0x30] sm:$0xff] %vm416_vm0, %v2781_v37  ;;  %v2764_v14 = vpop.f32.mrb[59].mxu1 }
 0xddf   : > { %2786 = vst.msk [vmem:[%s400_s14 + $0x20] sm:$0xff] %vm416_vm0, %v2779_v25  ;;  %v2780_v23 = vadd.f32 %v2764_v14, %v4438_v29 }
 0xde1   : > { %2787 = vst.msk [vmem:[%s400_s14 + $0x28] sm:$0xff] %vm416_vm0, %v2780_v23 }
 0xde2 PF: > { %s21_s17 = sadd.s32 1, %s3580_s17  }
 0xde3   : > { %p18_p4 = scmp.ge.s32.totalorder %s21_s17, 4  }
 0xde5   :  { %20 = sbr.rel (!%p18_p4) target bundleno = 1 (0x1), region = 97 }

</bundles_post_ra>
